<compile_context>
chip_gen: v7x
topology: tpu7x:2x2x1
jax: 0.10.0
libtpu: 0.0.40
codegen_flags: <defaults>
</compile_context>

<pallas_src>
import functools

import jax
import jax.numpy as jnp
from jax.experimental import pallas as pl
from jax.experimental.pallas import tpu as pltpu


def _round_up(x, m):
    return (x + m - 1) // m * m


# ----------------------------- fused Pallas kernel ---------------------------

def _fused_sqex_conv_kernel(x_ref, sqw_ref, w1_ref, w2_ref, b_ref, mask_ref,
                            o_ref, col_ref, h1_ref, *,
                            hpwp, wpp, q, cp, cr, co1, co2,
                            base, delta, slab_h, inv_vol, cdt):
    # x_ref   : (1, cp, SLAB_X) cdt   zero-padded volume, flat padded spatial on lanes
    # sqw_ref : (cp + CRP, cp) f32    rows [0:cp]   = lin1_w.T (zero padded)
    #                                 rows [cp:cp+cr] = lin2_w.T (zero padded)
    # w1_ref  : (co1, 27*cp) f32      conv1 weight, BN folded, taps folded into K
    # w2_ref  : (co2, 27*co1) cdt     conv2 weight, BN folded
    # b_ref   : (co1 + co2, 1) f32    [b1 ; b2]
    # mask_ref: (1, q) f32            1.0 at flat positions that are real voxels
    # o_ref   : (1, co2, q) f32
    # col_ref : (27*cp, q) cdt        shared im2col scratch (conv1, then conv2)
    # h1_ref  : (co1, slab_h) cdt     h1 placed at 128-aligned lane base
    f32 = jnp.float32
    taps = [(kd, kh, kw) for kd in range(3) for kh in range(3) for kw in range(3)]

    # ---- SqEx gate: GAP + two tiny linears + sigmoid -------------------------
    # (halo / lane padding of x is exactly zero, so slab-sum == volume-sum)
    avg = jnp.sum(x_ref[0].astype(f32), axis=1, keepdims=True) * inv_vol     # (cp,1)
    wl1t = sqw_ref[0:cp, :]                                                  # (cp,cp)
    h = jnp.maximum(jnp.sum(wl1t * avg, axis=0, keepdims=True), 0.0)         # (1,cp)
    s_pre = sqw_ref[cp:cp + 1, :] * h[:, 0:1]
    for r in range(1, cr):
        s_pre = s_pre + sqw_ref[cp + r:cp + r + 1, :] * h[:, r:r + 1]
    s = jax.nn.sigmoid(s_pre)                                                # (1,cp)
    # (padded channels give sigmoid(0)=0.5 -- harmless: their w1 K-columns are 0)

    # ---- fold the gate into conv1's weight (perf item 1) ---------------------
    s_k = jnp.concatenate([s] * 27, axis=1)                                  # (1,27cp)
    w1s = (w1_ref[...] * s_k).astype(cdt)                                    # (co1,27cp)

    # ---- conv1: pure-copy im2col + ONE fat matmul -----------------------------
    for t, (kd, kh, kw) in enumerate(taps):
        off = kd * hpwp + kh * wpp + kw
        col_ref[t * cp:(t + 1) * cp, :] = x_ref[0, :, off:off + q]
    acc1 = jnp.dot(w1s, col_ref[...], preferred_element_type=f32)            # (co1,q)
    h1 = jnp.maximum(acc1 + b_ref[0:co1, :], 0.0)
    # mask is load-bearing: it zeroes the junk/halo lanes conv2 must read as 0.
    h1 = h1 * mask_ref[...]

    # ---- place h1 at a 128-aligned lane base; zero only prefix / suffix ------
    h1_ref[:, 0:base] = jnp.zeros((co1, base), cdt)
    if slab_h > base + q:
        h1_ref[:, base + q:slab_h] = jnp.zeros((co1, slab_h - base - q), cdt)
    h1_ref[:, base:base + q] = h1.astype(cdt)

    # ---- conv2: im2col into the SAME col scratch (col1 is dead) + matmul ------
    for t, (kd, kh, kw) in enumerate(taps):
        off = delta + kd * hpwp + kh * wpp + kw
        col_ref[t * co1:(t + 1) * co1, :] = h1_ref[:, off:off + q]
    acc2 = jnp.dot(w2_ref[...], col_ref[0:27 * co1, :],
                   preferred_element_type=f32)                               # (co2,q)
    o_ref[0] = jnp.maximum(acc2 + b_ref[co1:co1 + co2, :], 0.0).astype(o_ref.dtype)


# ------------------------------ Pallas wrapper --------------------------------

def fused_sqex_unetconv3(x, kp):
    """x: (N, C, D, H, W) concat activation. Returns (N, Cout, D, H, W) f32."""
    N, C, D, H, W = x.shape
    cdt = kp["cdt"]
    CP, CO1, CO2, Cout, Cr = kp["CP"], kp["CO1"], kp["CO2"], kp["out_size"], kp["Cr"]
    Dp, Hp, Wp = D + 2, H + 2, W + 2
    LS = Dp * Hp * Wp                           # flattened padded volume
    Q = _round_up(D * Hp * Wp, 128)             # lane-dense per-conv output length
    MAXOFF = 2 * Hp * Wp + 2 * Wp + 2           # largest 3x3x3 tap offset
    SLAB_X = _round_up(max(LS, Q + MAXOFF), 128)
    PADOFF = Hp * Wp + Wp + 1                   # flat offset of voxel (1,1,1)
    BASE = _round_up(PADOFF, 128)               # 128-aligned h1 store base
    DELTA = BASE - PADOFF                       # bias on conv2 tap offsets
    SLAB_H = _round_up(max(BASE + Q, DELTA + MAXOFF + Q), 128)

    # prologue (fused by XLA): channel pad + halo pad + flatten + cast to bf16
    xp = jnp.pad(x, ((0, 0), (0, CP - C), (1, 1), (1, 1), (1, 1)))
    xs = jnp.pad(xp.reshape(N, CP, LS),
                 ((0, 0), (0, 0), (0, SLAB_X - LS))).astype(cdt)

    qidx = jnp.arange(Q)
    mask = ((qidx // (Hp * Wp) < D)
            & ((qidx // Wp) % Hp < H)
            & (qidx % Wp < W)).astype(jnp.float32)[None, :]

    kern = functools.partial(
        _fused_sqex_conv_kernel, hpwp=Hp * Wp, wpp=Wp, q=Q, cp=CP, cr=Cr,
        co1=CO1, co2=CO2, base=BASE, delta=DELTA, slab_h=SLAB_H,
        inv_vol=1.0 / float(D * H * W), cdt=cdt)

    yflat = pl.pallas_call(
        kern,
        out_shape=jax.ShapeDtypeStruct((N, CO2, Q), jnp.float32),
        grid_spec=pltpu.PrefetchScalarGridSpec(
            num_scalar_prefetch=0,
            grid=(N,),
            in_specs=[
                pl.BlockSpec((1, CP, SLAB_X), lambda n: (n, 0, 0)),
                pl.BlockSpec(kp["sqw"].shape, lambda n: (0, 0)),
                pl.BlockSpec(kp["w1"].shape, lambda n: (0, 0)),
                pl.BlockSpec(kp["w2"].shape, lambda n: (0, 0)),
                pl.BlockSpec(kp["b"].shape, lambda n: (0, 0)),
                pl.BlockSpec((1, Q), lambda n: (0, 0)),
            ],
            out_specs=pl.BlockSpec((1, CO2, Q), lambda n: (n, 0, 0)),
            scratch_shapes=[
                pltpu.VMEM((27 * CP, Q), cdt),     # shared im2col (conv1 then conv2)
                pltpu.VMEM((CO1, SLAB_H), cdt),    # aligned-padded h1 slab
            ]),
        compiler_params=pltpu.CompilerParams(dimension_semantics=("parallel",)),
    )(xs, kp["sqw"], kp["w1"], kp["w2"], kp["b"], mask)

    # epilogue: gather the real output voxels (flat q = d*Hp*Wp + h*Wp + w)
    y = yflat[:, :Cout, :D * Hp * Wp].reshape(N, Cout, D, Hp, Wp)[:, :, :, :H, :W]
    return y


# ------------------------------- glue (JAX) ------------------------------------

def trilinear_upsample_x2_align_corners(x):
    # matches F.interpolate(scale_factor=(2,2,2), mode='trilinear', align_corners=True)
    def lerp_axis(a, axis, size_in):
        size_out = 2 * size_in
        if size_in == 1:
            return jnp.repeat(a, size_out, axis=axis)
        src = jnp.arange(size_out, dtype=jnp.float32) * ((size_in - 1) / (size_out - 1))
        i0 = jnp.floor(src).astype(jnp.int32)
        i1 = jnp.minimum(i0 + 1, size_in - 1)
        t = (src - i0.astype(jnp.float32)).astype(a.dtype)
        shape = [1] * a.ndim
        shape[axis] = size_out
        t = t.reshape(shape)
        return jnp.take(a, i0, axis=axis) * (1.0 - t) + jnp.take(a, i1, axis=axis) * t

    _, _, D, H, W = x.shape
    x = lerp_axis(x, 2, D)
    x = lerp_axis(x, 3, H)
    x = lerp_axis(x, 4, W)
    return x


def _pad_and_concat(inputs1, inputs2):
    x2u = trilinear_upsample_x2_align_corners(inputs2)
    offset = x2u.shape[2] - inputs1.shape[2]
    o2 = offset // 2
    # F.pad(inputs1, 2*[o2, o2, 0]) -> pads W:(o2,o2), H:(0,o2), D:(o2,0)
    x1p = jnp.pad(inputs1, ((0, 0), (0, 0), (o2, 0), (0, o2), (o2, o2)))
    return jnp.concatenate([x1p, x2u], axis=1)


def unet_up3_sqex_forward(inputs1, inputs2, kp):
    concat = _pad_and_concat(inputs1, inputs2)     # (N, C, D, H, W)
    return fused_sqex_unetconv3(concat, kp)


# pure-JAX reference (independent correctness check for SqEx + both convs)
def reference_forward(inputs1, inputs2, rp):
    x = _pad_and_concat(inputs1, inputs2)
    avg = jnp.mean(x, axis=(2, 3, 4))                              # (N, C)
    h = jnp.maximum(avg @ rp["lin1_w"].T, 0.0)
    s = jax.nn.sigmoid(h @ rp["lin2_w"].T)
    g = x * s[:, :, None, None, None]

    def conv(z, w, b):
        y = jax.lax.conv_general_dilated(
            z, w, window_strides=(1, 1, 1), padding="SAME",
            dimension_numbers=("NCDHW", "OIDHW", "NCDHW"))
        return jnp.maximum(y + b[None, :, None, None, None], 0.0)

    return conv(conv(g, rp["w1"], rp["b1"]), rp["w2"], rp["b2"])


# --------------------------- parameter construction ----------------------------

def init_params(key, in_size, out_size, reduction=6):
    C = in_size + out_size
    Cr = C // reduction
    eps = 1e-5
    keys = jax.random.split(key, 8)
    lin1_w = jax.random.normal(keys[0], (Cr, C), jnp.float32) * 0.5
    lin2_w = jax.random.normal(keys[1], (C, Cr), jnp.float32) * 0.5

    def conv_bn(kw, kb, kg, cin, cout):
        w = jax.random.normal(kw, (cout, cin, 3, 3, 3), jnp.float32) * 0.1   # OIDHW
        b = jax.random.normal(kb, (cout,), jnp.float32) * 0.1
        gamma = 1.0 + 0.02 * jax.random.normal(kg, (cout,), jnp.float32)
        beta = jnp.zeros((cout,), jnp.float32)
        running_mean = jnp.zeros((cout,), jnp.float32)
        running_var = jnp.ones((cout,), jnp.float32)
        scale = gamma / jnp.sqrt(running_var + eps)
        return (w * scale[:, None, None, None, None],
                (b - running_mean) * scale + beta)        # BN folded (inference)

    w1, b1 = conv_bn(keys[2], keys[3], keys[4], C, out_size)
    w2, b2 = conv_bn(keys[5], keys[6], keys[7], out_size, out_size)
    return dict(lin1_w=lin1_w, lin2_w=lin2_w, w1=w1, b1=b1, w2=w2, b2=b2)


def pack_params(rp, in_size, out_size, compute_dtype=jnp.bfloat16):
    """Repack reference params into the fused kernel's padded, lane-dense layout."""
    C = in_size + out_size
    Cr = rp["lin1_w"].shape[0]
    # channel padding multiple: 16 for bf16 (full packed sublane tiles), 8 for f32
    sub = 16 if jnp.dtype(compute_dtype).itemsize == 2 else 8
    CP = _round_up(C, sub)          # conv1 input channels  (12 -> 16)
    CO1 = _round_up(out_size, sub)  # conv1 output channels (4 -> 8 or 16)
    CO2 = _round_up(out_size, 8)    # conv2 output channels (4 -> 8)
    CRP = _round_up(Cr, 8)

    # SqEx linears packed into one small array (perf item: fewer tiny inputs).
    sqw = jnp.zeros((CP + CRP, CP), jnp.float32)
    sqw = sqw.at[:C, :Cr].set(rp["lin1_w"].T)           # rows [0:CP]    : lin1^T
    sqw = sqw.at[CP:CP + Cr, :C].set(rp["lin2_w"].T)    # rows [CP:CP+Cr]: lin2^T

    def pack_conv(w, cin, cinp, cout, coutp, wdtype):
        wt = jnp.transpose(w, (0, 2, 3, 4, 1))                    # (cout,3,3,3,cin)
        wp = jnp.zeros((coutp, 3, 3, 3, cinp), jnp.float32)
        wp = wp.at[:cout, :, :, :, :cin].set(wt)
        return wp.reshape(coutp, 27 * cinp).astype(wdtype)        # taps folded into K

    # w1 stays f32 (the per-sample SqEx scale is folded in-kernel, then cast);
    # w2 is stored directly in the compute dtype.
    w1 = pack_conv(rp["w1"], C, CP, out_size, CO1, jnp.float32)
    w2 = pack_conv(rp["w2"], out_size, CO1, out_size, CO2, compute_dtype)

    b = jnp.zeros((CO1 + CO2, 1), jnp.float32)
    b = b.at[:out_size, 0].set(rp["b1"])
    b = b.at[CO1:CO1 + out_size, 0].set(rp["b2"])

    return dict(sqw=sqw, w1=w1, w2=w2, b=b, CP=CP, CO1=CO1, CO2=CO2,
                Cr=Cr, out_size=out_size, cdt=compute_dtype)


# ------------------------------------ main --------------------------------------

if __name__ == "__main__":
    in_size, out_size, reduction = 8, 4, 6    # n_features = 12, divisible by 6
    N = 2
    D1 = H1 = W1 = 8                          # inputs1 spatial
    D2 = H2 = W2 = 4                          # inputs2 spatial (x2 upsample -> 8)

    key = jax.random.PRNGKey(0)
    k1, k2, kpar = jax.random.split(key, 3)
    inputs1 = jax.random.normal(k1, (N, out_size, D1, H1, W1), jnp.float32)
    inputs2 = jax.random.normal(k2, (N, in_size, D2, H2, W2), jnp.float32)

    rp = init_params(kpar, in_size, out_size, reduction)
    ref = reference_forward(inputs1, inputs2, rp)

    # float32 variant: strict numerics check of the fused kernel.
    kp32 = pack_params(rp, in_size, out_size, jnp.float32)
    fwd32 = jax.jit(lambda a, b: unet_up3_sqex_forward(a, b, kp32))
    out32 = fwd32(inputs1, inputs2)
    jax.block_until_ready(out32)
    assert out32.shape == (N, out_size, D1, H1, W1), out32.shape
    err32 = float(jnp.max(jnp.abs(out32 - ref)))
    assert err32 < 1e-3, f"f32 max abs err too large: {err32}"

    # bfloat16 im2col/weight path (perf-optimized default); bf16 tolerance.
    kp16 = pack_params(rp, in_size, out_size, jnp.bfloat16)
    fwd16 = jax.jit(lambda a, b: unet_up3_sqex_forward(a, b, kp16))
    out16 = fwd16(inputs1, inputs2)
    jax.block_until_ready(out16)
    assert out16.shape == (N, out_size, D1, H1, W1), out16.shape
    err16 = float(jnp.max(jnp.abs(out16 - ref)))
    assert err16 < 5e-2, f"bf16 max abs err too large: {err16}"

    print("KERNEL_OK")
</pallas_src>

<mosaic_0001>
module attributes {stable_mosaic.version = 11 : i64} {
  func.func @_fused_sqex_conv_kernel(%arg0: i32, %arg1: memref<1x16x1152xf32, #tpu.memory_space<vmem>>, %arg2: memref<24x16xf32, #tpu.memory_space<vmem>>, %arg3: memref<8x432xf32, #tpu.memory_space<vmem>>, %arg4: memref<8x216xf32, #tpu.memory_space<vmem>>, %arg5: memref<16x1xf32, #tpu.memory_space<vmem>>, %arg6: memref<1x896xf32, #tpu.memory_space<vmem>>, %arg7: memref<1x8x896xf32, #tpu.memory_space<vmem>>, %arg8: memref<432x896xf32, #tpu.memory_space<vmem>>, %arg9: memref<8x1152xf32, #tpu.memory_space<vmem>>) attributes {dimension_semantics = [#tpu.dimension_semantics<parallel>], iteration_bounds = array<i64: 2>, scalar_prefetch = 0 : i64, scratch_operands = 2 : i64, tpu.core_type = #tpu.core_type<tc>, window_params = [{transform_indices = @transform_0, window_bounds = array<i64: 1, 16, 1152>}, {pipeline_mode = #tpu.pipeline_mode<synchronous>, transform_indices = @transform_1, window_bounds = array<i64: 24, 16>}, {pipeline_mode = #tpu.pipeline_mode<synchronous>, transform_indices = @transform_2, window_bounds = array<i64: 8, 432>}, {pipeline_mode = #tpu.pipeline_mode<synchronous>, transform_indices = @transform_3, window_bounds = array<i64: 8, 216>}, {pipeline_mode = #tpu.pipeline_mode<synchronous>, transform_indices = @transform_4, window_bounds = array<i64: 16, 1>}, {pipeline_mode = #tpu.pipeline_mode<synchronous>, transform_indices = @transform_5, window_bounds = array<i64: 1, 896>}, {transform_indices = @transform_6, window_bounds = array<i64: 1, 8, 896>}]} {
    %c0 = arith.constant 0 : index
    %c0_0 = arith.constant 0 : index
    %c0_1 = arith.constant 0 : index
    %0 = vector.load %arg1[%c0, %c0_0, %c0_1] : memref<1x16x1152xf32, #tpu.memory_space<vmem>>, vector<1x16x1152xf32>
    %1 = vector.shape_cast %0 : vector<1x16x1152xf32> to vector<16x1152xf32>
    %cst = arith.constant dense<0.000000e+00> : vector<16xf32>
    %2 = vector.multi_reduction <add>, %1, %cst [1] : vector<16x1152xf32> to vector<16xf32>
    %3 = vector.shape_cast %2 : vector<16xf32> to vector<16x1xf32>
    %cst_2 = arith.constant 0.001953125 : f32
    %4 = vector.broadcast %cst_2 : f32 to vector<16x1xf32>
    %5 = arith.mulf %3, %4 : vector<16x1xf32>
    %c0_3 = arith.constant 0 : index
    %c0_4 = arith.constant 0 : index
    %6 = vector.load %arg2[%c0_3, %c0_4] : memref<24x16xf32, #tpu.memory_space<vmem>>, vector<16x16xf32>
    %7 = vector.broadcast %5 : vector<16x1xf32> to vector<16x16xf32>
    %8 = arith.mulf %6, %7 : vector<16x16xf32>
    %cst_5 = arith.constant dense<0.000000e+00> : vector<16xf32>
    %9 = vector.multi_reduction <add>, %8, %cst_5 [0] : vector<16x16xf32> to vector<16xf32>
    %10 = vector.shape_cast %9 : vector<16xf32> to vector<1x16xf32>
    %cst_6 = arith.constant 0.000000e+00 : f32
    %11 = vector.broadcast %cst_6 : f32 to vector<1x16xf32>
    %12 = arith.maximumf %10, %11 : vector<1x16xf32>
    %c16 = arith.constant 16 : index
    %c0_7 = arith.constant 0 : index
    %13 = vector.load %arg2[%c16, %c0_7] : memref<24x16xf32, #tpu.memory_space<vmem>>, vector<1x16xf32>
    %14 = vector.extract_strided_slice %12 {offsets = [0, 0], sizes = [1, 1], strides = [1, 1]} : vector<1x16xf32> to vector<1x1xf32>
    %15 = vector.broadcast %14 : vector<1x1xf32> to vector<1x16xf32>
    %16 = arith.mulf %13, %15 : vector<1x16xf32>
    %c17 = arith.constant 17 : index
    %c0_8 = arith.constant 0 : index
    %17 = vector.load %arg2[%c17, %c0_8] : memref<24x16xf32, #tpu.memory_space<vmem>>, vector<1x16xf32>
    %18 = vector.extract_strided_slice %12 {offsets = [0, 1], sizes = [1, 1], strides = [1, 1]} : vector<1x16xf32> to vector<1x1xf32>
    %19 = vector.broadcast %18 : vector<1x1xf32> to vector<1x16xf32>
    %20 = arith.mulf %17, %19 : vector<1x16xf32>
    %21 = arith.addf %16, %20 : vector<1x16xf32>
    %22 = arith.negf %21 : vector<1x16xf32>
    %23 = math.exp %22 : vector<1x16xf32>
    %cst_9 = arith.constant 1.000000e+00 : f32
    %24 = vector.broadcast %cst_9 : f32 to vector<1x16xf32>
    %25 = arith.addf %24, %23 : vector<1x16xf32>
    %26 = arith.divf %24, %25 : vector<1x16xf32>
    %27 = tpu.concatenate %26, %26, %26, %26, %26, %26, %26, %26, %26, %26, %26, %26, %26, %26, %26, %26 in 1 : vector<1x16xf32>, vector<1x16xf32>, vector<1x16xf32>, vector<1x16xf32>, vector<1x16xf32>, vector<1x16xf32>, vector<1x16xf32>, vector<1x16xf32>, vector<1x16xf32>, vector<1x16xf32>, vector<1x16xf32>, vector<1x16xf32>, vector<1x16xf32>, vector<1x16xf32>, vector<1x16xf32>, vector<1x16xf32> -> vector<1x256xf32>
    %28 = tpu.concatenate %26, %26, %26, %26, %26, %26, %26, %26, %26, %26, %26 in 1 : vector<1x16xf32>, vector<1x16xf32>, vector<1x16xf32>, vector<1x16xf32>, vector<1x16xf32>, vector<1x16xf32>, vector<1x16xf32>, vector<1x16xf32>, vector<1x16xf32>, vector<1x16xf32>, vector<1x16xf32> -> vector<1x176xf32>
    %29 = tpu.concatenate %27, %28 in 1 : vector<1x256xf32>, vector<1x176xf32> -> vector<1x432xf32>
    %c0_10 = arith.constant 0 : index
    %c0_11 = arith.constant 0 : index
    %30 = vector.load %arg3[%c0_10, %c0_11] : memref<8x432xf32, #tpu.memory_space<vmem>>, vector<8x432xf32>
    %31 = vector.broadcast %29 : vector<1x432xf32> to vector<8x432xf32>
    %32 = arith.mulf %30, %31 : vector<8x432xf32>
    %c0_12 = arith.constant 0 : index
    %c0_13 = arith.constant 0 : index
    %c0_14 = arith.constant 0 : index
    %33 = vector.load %arg1[%c0_12, %c0_13, %c0_14] : memref<1x16x1152xf32, #tpu.memory_space<vmem>>, vector<1x16x896xf32>
    %34 = vector.shape_cast %33 : vector<1x16x896xf32> to vector<16x896xf32>
    %c0_15 = arith.constant 0 : index
    %c0_16 = arith.constant 0 : index
    %35 = vector.load %arg8[%c0_15, %c0_16] : memref<432x896xf32, #tpu.memory_space<vmem>>, vector<16x896xf32>
    tpu.vector_store %arg8[%c0_15, %c0_16], %34 {strides = array<i32>} : memref<432x896xf32, #tpu.memory_space<vmem>>, vector<16x896xf32>,
    %c0_17 = arith.constant 0 : index
    %c0_18 = arith.constant 0 : index
    %c1 = arith.constant 1 : index
    %36 = vector.load %arg1[%c0_17, %c0_18, %c1] : memref<1x16x1152xf32, #tpu.memory_space<vmem>>, vector<1x16x896xf32>
    %37 = vector.shape_cast %36 : vector<1x16x896xf32> to vector<16x896xf32>
    %c16_19 = arith.constant 16 : index
    %c0_20 = arith.constant 0 : index
    %38 = vector.load %arg8[%c16_19, %c0_20] : memref<432x896xf32, #tpu.memory_space<vmem>>, vector<16x896xf32>
    tpu.vector_store %arg8[%c16_19, %c0_20], %37 {strides = array<i32>} : memref<432x896xf32, #tpu.memory_space<vmem>>, vector<16x896xf32>,
    %c0_21 = arith.constant 0 : index
    %c0_22 = arith.constant 0 : index
    %c2 = arith.constant 2 : index
    %39 = vector.load %arg1[%c0_21, %c0_22, %c2] : memref<1x16x1152xf32, #tpu.memory_space<vmem>>, vector<1x16x896xf32>
    %40 = vector.shape_cast %39 : vector<1x16x896xf32> to vector<16x896xf32>
    %c32 = arith.constant 32 : index
    %c0_23 = arith.constant 0 : index
    %41 = vector.load %arg8[%c32, %c0_23] : memref<432x896xf32, #tpu.memory_space<vmem>>, vector<16x896xf32>
    tpu.vector_store %arg8[%c32, %c0_23], %40 {strides = array<i32>} : memref<432x896xf32, #tpu.memory_space<vmem>>, vector<16x896xf32>,
    %c0_24 = arith.constant 0 : index
    %c0_25 = arith.constant 0 : index
    %c10 = arith.constant 10 : index
    %42 = vector.load %arg1[%c0_24, %c0_25, %c10] : memref<1x16x1152xf32, #tpu.memory_space<vmem>>, vector<1x16x896xf32>
    %43 = vector.shape_cast %42 : vector<1x16x896xf32> to vector<16x896xf32>
    %c48 = arith.constant 48 : index
    %c0_26 = arith.constant 0 : index
    %44 = vector.load %arg8[%c48, %c0_26] : memref<432x896xf32, #tpu.memory_space<vmem>>, vector<16x896xf32>
    tpu.vector_store %arg8[%c48, %c0_26], %43 {strides = array<i32>} : memref<432x896xf32, #tpu.memory_space<vmem>>, vector<16x896xf32>,
    %c0_27 = arith.constant 0 : index
    %c0_28 = arith.constant 0 : index
    %c11 = arith.constant 11 : index
    %45 = vector.load %arg1[%c0_27, %c0_28, %c11] : memref<1x16x1152xf32, #tpu.memory_space<vmem>>, vector<1x16x896xf32>
    %46 = vector.shape_cast %45 : vector<1x16x896xf32> to vector<16x896xf32>
    %c64 = arith.constant 64 : index
    %c0_29 = arith.constant 0 : index
    %47 = vector.load %arg8[%c64, %c0_29] : memref<432x896xf32, #tpu.memory_space<vmem>>, vector<16x896xf32>
    tpu.vector_store %arg8[%c64, %c0_29], %46 {strides = array<i32>} : memref<432x896xf32, #tpu.memory_space<vmem>>, vector<16x896xf32>,
    %c0_30 = arith.constant 0 : index
    %c0_31 = arith.constant 0 : index
    %c12 = arith.constant 12 : index
    %48 = vector.load %arg1[%c0_30, %c0_31, %c12] : memref<1x16x1152xf32, #tpu.memory_space<vmem>>, vector<1x16x896xf32>
    %49 = vector.shape_cast %48 : vector<1x16x896xf32> to vector<16x896xf32>
    %c80 = arith.constant 80 : index
    %c0_32 = arith.constant 0 : index
    %50 = vector.load %arg8[%c80, %c0_32] : memref<432x896xf32, #tpu.memory_space<vmem>>, vector<16x896xf32>
    tpu.vector_store %arg8[%c80, %c0_32], %49 {strides = array<i32>} : memref<432x896xf32, #tpu.memory_space<vmem>>, vector<16x896xf32>,
    %c0_33 = arith.constant 0 : index
    %c0_34 = arith.constant 0 : index
    %c20 = arith.constant 20 : index
    %51 = vector.load %arg1[%c0_33, %c0_34, %c20] : memref<1x16x1152xf32, #tpu.memory_space<vmem>>, vector<1x16x896xf32>
    %52 = vector.shape_cast %51 : vector<1x16x896xf32> to vector<16x896xf32>
    %c96 = arith.constant 96 : index
    %c0_35 = arith.constant 0 : index
    %53 = vector.load %arg8[%c96, %c0_35] : memref<432x896xf32, #tpu.memory_space<vmem>>, vector<16x896xf32>
    tpu.vector_store %arg8[%c96, %c0_35], %52 {strides = array<i32>} : memref<432x896xf32, #tpu.memory_space<vmem>>, vector<16x896xf32>,
    %c0_36 = arith.constant 0 : index
    %c0_37 = arith.constant 0 : index
    %c21 = arith.constant 21 : index
    %54 = vector.load %arg1[%c0_36, %c0_37, %c21] : memref<1x16x1152xf32, #tpu.memory_space<vmem>>, vector<1x16x896xf32>
    %55 = vector.shape_cast %54 : vector<1x16x896xf32> to vector<16x896xf32>
    %c112 = arith.constant 112 : index
    %c0_38 = arith.constant 0 : index
    %56 = vector.load %arg8[%c112, %c0_38] : memref<432x896xf32, #tpu.memory_space<vmem>>, vector<16x896xf32>
    tpu.vector_store %arg8[%c112, %c0_38], %55 {strides = array<i32>} : memref<432x896xf32, #tpu.memory_space<vmem>>, vector<16x896xf32>,
    %c0_39 = arith.constant 0 : index
    %c0_40 = arith.constant 0 : index
    %c22 = arith.constant 22 : index
    %57 = vector.load %arg1[%c0_39, %c0_40, %c22] : memref<1x16x1152xf32, #tpu.memory_space<vmem>>, vector<1x16x896xf32>
    %58 = vector.shape_cast %57 : vector<1x16x896xf32> to vector<16x896xf32>
    %c128 = arith.constant 128 : index
    %c0_41 = arith.constant 0 : index
    %59 = vector.load %arg8[%c128, %c0_41] : memref<432x896xf32, #tpu.memory_space<vmem>>, vector<16x896xf32>
    tpu.vector_store %arg8[%c128, %c0_41], %58 {strides = array<i32>} : memref<432x896xf32, #tpu.memory_space<vmem>>, vector<16x896xf32>,
    %c0_42 = arith.constant 0 : index
    %c0_43 = arith.constant 0 : index
    %c100 = arith.constant 100 : index
    %60 = vector.load %arg1[%c0_42, %c0_43, %c100] : memref<1x16x1152xf32, #tpu.memory_space<vmem>>, vector<1x16x896xf32>
    %61 = vector.shape_cast %60 : vector<1x16x896xf32> to vector<16x896xf32>
    %c144 = arith.constant 144 : index
    %c0_44 = arith.constant 0 : index
    %62 = vector.load %arg8[%c144, %c0_44] : memref<432x896xf32, #tpu.memory_space<vmem>>, vector<16x896xf32>
    tpu.vector_store %arg8[%c144, %c0_44], %61 {strides = array<i32>} : memref<432x896xf32, #tpu.memory_space<vmem>>, vector<16x896xf32>,
    %c0_45 = arith.constant 0 : index
    %c0_46 = arith.constant 0 : index
    %c101 = arith.constant 101 : index
    %63 = vector.load %arg1[%c0_45, %c0_46, %c101] : memref<1x16x1152xf32, #tpu.memory_space<vmem>>, vector<1x16x896xf32>
    %64 = vector.shape_cast %63 : vector<1x16x896xf32> to vector<16x896xf32>
    %c160 = arith.constant 160 : index
    %c0_47 = arith.constant 0 : index
    %65 = vector.load %arg8[%c160, %c0_47] : memref<432x896xf32, #tpu.memory_space<vmem>>, vector<16x896xf32>
    tpu.vector_store %arg8[%c160, %c0_47], %64 {strides = array<i32>} : memref<432x896xf32, #tpu.memory_space<vmem>>, vector<16x896xf32>,
    %c0_48 = arith.constant 0 : index
    %c0_49 = arith.constant 0 : index
    %c102 = arith.constant 102 : index
    %66 = vector.load %arg1[%c0_48, %c0_49, %c102] : memref<1x16x1152xf32, #tpu.memory_space<vmem>>, vector<1x16x896xf32>
    %67 = vector.shape_cast %66 : vector<1x16x896xf32> to vector<16x896xf32>
    %c176 = arith.constant 176 : index
    %c0_50 = arith.constant 0 : index
    %68 = vector.load %arg8[%c176, %c0_50] : memref<432x896xf32, #tpu.memory_space<vmem>>, vector<16x896xf32>
    tpu.vector_store %arg8[%c176, %c0_50], %67 {strides = array<i32>} : memref<432x896xf32, #tpu.memory_space<vmem>>, vector<16x896xf32>,
    %c0_51 = arith.constant 0 : index
    %c0_52 = arith.constant 0 : index
    %c110 = arith.constant 110 : index
    %69 = vector.load %arg1[%c0_51, %c0_52, %c110] : memref<1x16x1152xf32, #tpu.memory_space<vmem>>, vector<1x16x896xf32>
    %70 = vector.shape_cast %69 : vector<1x16x896xf32> to vector<16x896xf32>
    %c192 = arith.constant 192 : index
    %c0_53 = arith.constant 0 : index
    %71 = vector.load %arg8[%c192, %c0_53] : memref<432x896xf32, #tpu.memory_space<vmem>>, vector<16x896xf32>
    tpu.vector_store %arg8[%c192, %c0_53], %70 {strides = array<i32>} : memref<432x896xf32, #tpu.memory_space<vmem>>, vector<16x896xf32>,
    %c0_54 = arith.constant 0 : index
    %c0_55 = arith.constant 0 : index
    %c111 = arith.constant 111 : index
    %72 = vector.load %arg1[%c0_54, %c0_55, %c111] : memref<1x16x1152xf32, #tpu.memory_space<vmem>>, vector<1x16x896xf32>
    %73 = vector.shape_cast %72 : vector<1x16x896xf32> to vector<16x896xf32>
    %c208 = arith.constant 208 : index
    %c0_56 = arith.constant 0 : index
    %74 = vector.load %arg8[%c208, %c0_56] : memref<432x896xf32, #tpu.memory_space<vmem>>, vector<16x896xf32>
    tpu.vector_store %arg8[%c208, %c0_56], %73 {strides = array<i32>} : memref<432x896xf32, #tpu.memory_space<vmem>>, vector<16x896xf32>,
    %c0_57 = arith.constant 0 : index
    %c0_58 = arith.constant 0 : index
    %c112_59 = arith.constant 112 : index
    %75 = vector.load %arg1[%c0_57, %c0_58, %c112_59] : memref<1x16x1152xf32, #tpu.memory_space<vmem>>, vector<1x16x896xf32>
    %76 = vector.shape_cast %75 : vector<1x16x896xf32> to vector<16x896xf32>
    %c224 = arith.constant 224 : index
    %c0_60 = arith.constant 0 : index
    %77 = vector.load %arg8[%c224, %c0_60] : memref<432x896xf32, #tpu.memory_space<vmem>>, vector<16x896xf32>
    tpu.vector_store %arg8[%c224, %c0_60], %76 {strides = array<i32>} : memref<432x896xf32, #tpu.memory_space<vmem>>, vector<16x896xf32>,
    %c0_61 = arith.constant 0 : index
    %c0_62 = arith.constant 0 : index
    %c120 = arith.constant 120 : index
    %78 = vector.load %arg1[%c0_61, %c0_62, %c120] : memref<1x16x1152xf32, #tpu.memory_space<vmem>>, vector<1x16x896xf32>
    %79 = vector.shape_cast %78 : vector<1x16x896xf32> to vector<16x896xf32>
    %c240 = arith.constant 240 : index
    %c0_63 = arith.constant 0 : index
    %80 = vector.load %arg8[%c240, %c0_63] : memref<432x896xf32, #tpu.memory_space<vmem>>, vector<16x896xf32>
    tpu.vector_store %arg8[%c240, %c0_63], %79 {strides = array<i32>} : memref<432x896xf32, #tpu.memory_space<vmem>>, vector<16x896xf32>,
    %c0_64 = arith.constant 0 : index
    %c0_65 = arith.constant 0 : index
    %c121 = arith.constant 121 : index
    %81 = vector.load %arg1[%c0_64, %c0_65, %c121] : memref<1x16x1152xf32, #tpu.memory_space<vmem>>, vector<1x16x896xf32>
    %82 = vector.shape_cast %81 : vector<1x16x896xf32> to vector<16x896xf32>
    %c256 = arith.constant 256 : index
    %c0_66 = arith.constant 0 : index
    %83 = vector.load %arg8[%c256, %c0_66] : memref<432x896xf32, #tpu.memory_space<vmem>>, vector<16x896xf32>
    tpu.vector_store %arg8[%c256, %c0_66], %82 {strides = array<i32>} : memref<432x896xf32, #tpu.memory_space<vmem>>, vector<16x896xf32>,
    %c0_67 = arith.constant 0 : index
    %c0_68 = arith.constant 0 : index
    %c122 = arith.constant 122 : index
    %84 = vector.load %arg1[%c0_67, %c0_68, %c122] : memref<1x16x1152xf32, #tpu.memory_space<vmem>>, vector<1x16x896xf32>
    %85 = vector.shape_cast %84 : vector<1x16x896xf32> to vector<16x896xf32>
    %c272 = arith.constant 272 : index
    %c0_69 = arith.constant 0 : index
    %86 = vector.load %arg8[%c272, %c0_69] : memref<432x896xf32, #tpu.memory_space<vmem>>, vector<16x896xf32>
    tpu.vector_store %arg8[%c272, %c0_69], %85 {strides = array<i32>} : memref<432x896xf32, #tpu.memory_space<vmem>>, vector<16x896xf32>,
    %c0_70 = arith.constant 0 : index
    %c0_71 = arith.constant 0 : index
    %c200 = arith.constant 200 : index
    %87 = vector.load %arg1[%c0_70, %c0_71, %c200] : memref<1x16x1152xf32, #tpu.memory_space<vmem>>, vector<1x16x896xf32>
    %88 = vector.shape_cast %87 : vector<1x16x896xf32> to vector<16x896xf32>
    %c288 = arith.constant 288 : index
    %c0_72 = arith.constant 0 : index
    %89 = vector.load %arg8[%c288, %c0_72] : memref<432x896xf32, #tpu.memory_space<vmem>>, vector<16x896xf32>
    tpu.vector_store %arg8[%c288, %c0_72], %88 {strides = array<i32>} : memref<432x896xf32, #tpu.memory_space<vmem>>, vector<16x896xf32>,
    %c0_73 = arith.constant 0 : index
    %c0_74 = arith.constant 0 : index
    %c201 = arith.constant 201 : index
    %90 = vector.load %arg1[%c0_73, %c0_74, %c201] : memref<1x16x1152xf32, #tpu.memory_space<vmem>>, vector<1x16x896xf32>
    %91 = vector.shape_cast %90 : vector<1x16x896xf32> to vector<16x896xf32>
    %c304 = arith.constant 304 : index
    %c0_75 = arith.constant 0 : index
    %92 = vector.load %arg8[%c304, %c0_75] : memref<432x896xf32, #tpu.memory_space<vmem>>, vector<16x896xf32>
    tpu.vector_store %arg8[%c304, %c0_75], %91 {strides = array<i32>} : memref<432x896xf32, #tpu.memory_space<vmem>>, vector<16x896xf32>,
    %c0_76 = arith.constant 0 : index
    %c0_77 = arith.constant 0 : index
    %c202 = arith.constant 202 : index
    %93 = vector.load %arg1[%c0_76, %c0_77, %c202] : memref<1x16x1152xf32, #tpu.memory_space<vmem>>, vector<1x16x896xf32>
    %94 = vector.shape_cast %93 : vector<1x16x896xf32> to vector<16x896xf32>
    %c320 = arith.constant 320 : index
    %c0_78 = arith.constant 0 : index
    %95 = vector.load %arg8[%c320, %c0_78] : memref<432x896xf32, #tpu.memory_space<vmem>>, vector<16x896xf32>
    tpu.vector_store %arg8[%c320, %c0_78], %94 {strides = array<i32>} : memref<432x896xf32, #tpu.memory_space<vmem>>, vector<16x896xf32>,
    %c0_79 = arith.constant 0 : index
    %c0_80 = arith.constant 0 : index
    %c210 = arith.constant 210 : index
    %96 = vector.load %arg1[%c0_79, %c0_80, %c210] : memref<1x16x1152xf32, #tpu.memory_space<vmem>>, vector<1x16x896xf32>
    %97 = vector.shape_cast %96 : vector<1x16x896xf32> to vector<16x896xf32>
    %c336 = arith.constant 336 : index
    %c0_81 = arith.constant 0 : index
    %98 = vector.load %arg8[%c336, %c0_81] : memref<432x896xf32, #tpu.memory_space<vmem>>, vector<16x896xf32>
    tpu.vector_store %arg8[%c336, %c0_81], %97 {strides = array<i32>} : memref<432x896xf32, #tpu.memory_space<vmem>>, vector<16x896xf32>,
    %c0_82 = arith.constant 0 : index
    %c0_83 = arith.constant 0 : index
    %c211 = arith.constant 211 : index
    %99 = vector.load %arg1[%c0_82, %c0_83, %c211] : memref<1x16x1152xf32, #tpu.memory_space<vmem>>, vector<1x16x896xf32>
    %100 = vector.shape_cast %99 : vector<1x16x896xf32> to vector<16x896xf32>
    %c352 = arith.constant 352 : index
    %c0_84 = arith.constant 0 : index
    %101 = vector.load %arg8[%c352, %c0_84] : memref<432x896xf32, #tpu.memory_space<vmem>>, vector<16x896xf32>
    tpu.vector_store %arg8[%c352, %c0_84], %100 {strides = array<i32>} : memref<432x896xf32, #tpu.memory_space<vmem>>, vector<16x896xf32>,
    %c0_85 = arith.constant 0 : index
    %c0_86 = arith.constant 0 : index
    %c212 = arith.constant 212 : index
    %102 = vector.load %arg1[%c0_85, %c0_86, %c212] : memref<1x16x1152xf32, #tpu.memory_space<vmem>>, vector<1x16x896xf32>
    %103 = vector.shape_cast %102 : vector<1x16x896xf32> to vector<16x896xf32>
    %c368 = arith.constant 368 : index
    %c0_87 = arith.constant 0 : index
    %104 = vector.load %arg8[%c368, %c0_87] : memref<432x896xf32, #tpu.memory_space<vmem>>, vector<16x896xf32>
    tpu.vector_store %arg8[%c368, %c0_87], %103 {strides = array<i32>} : memref<432x896xf32, #tpu.memory_space<vmem>>, vector<16x896xf32>,
    %c0_88 = arith.constant 0 : index
    %c0_89 = arith.constant 0 : index
    %c220 = arith.constant 220 : index
    %105 = vector.load %arg1[%c0_88, %c0_89, %c220] : memref<1x16x1152xf32, #tpu.memory_space<vmem>>, vector<1x16x896xf32>
    %106 = vector.shape_cast %105 : vector<1x16x896xf32> to vector<16x896xf32>
    %c384 = arith.constant 384 : index
    %c0_90 = arith.constant 0 : index
    %107 = vector.load %arg8[%c384, %c0_90] : memref<432x896xf32, #tpu.memory_space<vmem>>, vector<16x896xf32>
    tpu.vector_store %arg8[%c384, %c0_90], %106 {strides = array<i32>} : memref<432x896xf32, #tpu.memory_space<vmem>>, vector<16x896xf32>,
    %c0_91 = arith.constant 0 : index
    %c0_92 = arith.constant 0 : index
    %c221 = arith.constant 221 : index
    %108 = vector.load %arg1[%c0_91, %c0_92, %c221] : memref<1x16x1152xf32, #tpu.memory_space<vmem>>, vector<1x16x896xf32>
    %109 = vector.shape_cast %108 : vector<1x16x896xf32> to vector<16x896xf32>
    %c400 = arith.constant 400 : index
    %c0_93 = arith.constant 0 : index
    %110 = vector.load %arg8[%c400, %c0_93] : memref<432x896xf32, #tpu.memory_space<vmem>>, vector<16x896xf32>
    tpu.vector_store %arg8[%c400, %c0_93], %109 {strides = array<i32>} : memref<432x896xf32, #tpu.memory_space<vmem>>, vector<16x896xf32>,
    %c0_94 = arith.constant 0 : index
    %c0_95 = arith.constant 0 : index
    %c222 = arith.constant 222 : index
    %111 = vector.load %arg1[%c0_94, %c0_95, %c222] : memref<1x16x1152xf32, #tpu.memory_space<vmem>>, vector<1x16x896xf32>
    %112 = vector.shape_cast %111 : vector<1x16x896xf32> to vector<16x896xf32>
    %c416 = arith.constant 416 : index
    %c0_96 = arith.constant 0 : index
    %113 = vector.load %arg8[%c416, %c0_96] : memref<432x896xf32, #tpu.memory_space<vmem>>, vector<16x896xf32>
    tpu.vector_store %arg8[%c416, %c0_96], %112 {strides = array<i32>} : memref<432x896xf32, #tpu.memory_space<vmem>>, vector<16x896xf32>,
    %c0_97 = arith.constant 0 : index
    %c0_98 = arith.constant 0 : index
    %114 = vector.load %arg8[%c0_97, %c0_98] : memref<432x896xf32, #tpu.memory_space<vmem>>, vector<432x896xf32>
    %cst_99 = arith.constant dense<0.000000e+00> : vector<8x896xf32>
    %115 = tpu.matmul %32, %114, %cst_99 {dimension_numbers = #tpu.dot_dimension_numbers<[1], [0], [0], [1], [0, 0, 1, 1], [], []>} : vector<8x432xf32>, vector<432x896xf32>, vector<8x896xf32> -> vector<8x896xf32>
    %c0_100 = arith.constant 0 : index
    %c0_101 = arith.constant 0 : index
    %116 = vector.load %arg5[%c0_100, %c0_101] : memref<16x1xf32, #tpu.memory_space<vmem>>, vector<8x1xf32>
    %117 = vector.broadcast %116 : vector<8x1xf32> to vector<8x896xf32>
    %118 = arith.addf %115, %117 : vector<8x896xf32>
    %cst_102 = arith.constant 0.000000e+00 : f32
    %119 = vector.broadcast %cst_102 : f32 to vector<8x896xf32>
    %120 = arith.maximumf %118, %119 : vector<8x896xf32>
    %c0_103 = arith.constant 0 : index
    %c0_104 = arith.constant 0 : index
    %121 = vector.load %arg6[%c0_103, %c0_104] : memref<1x896xf32, #tpu.memory_space<vmem>>, vector<1x896xf32>
    %122 = vector.broadcast %121 : vector<1x896xf32> to vector<8x896xf32>
    %123 = arith.mulf %120, %122 : vector<8x896xf32>
    %cst_105 = arith.constant 0.000000e+00 : f32
    %124 = vector.broadcast %cst_105 : f32 to vector<8x128xf32>
    %c0_106 = arith.constant 0 : index
    %c0_107 = arith.constant 0 : index
    %125 = vector.load %arg9[%c0_106, %c0_107] : memref<8x1152xf32, #tpu.memory_space<vmem>>, vector<8x128xf32>
    tpu.vector_store %arg9[%c0_106, %c0_107], %124 {strides = array<i32>} : memref<8x1152xf32, #tpu.memory_space<vmem>>, vector<8x128xf32>,
    %cst_108 = arith.constant 0.000000e+00 : f32
    %126 = vector.broadcast %cst_108 : f32 to vector<8x128xf32>
    %c0_109 = arith.constant 0 : index
    %c1024 = arith.constant 1024 : index
    %127 = vector.load %arg9[%c0_109, %c1024] : memref<8x1152xf32, #tpu.memory_space<vmem>>, vector<8x128xf32>
    tpu.vector_store %arg9[%c0_109, %c1024], %126 {strides = array<i32>} : memref<8x1152xf32, #tpu.memory_space<vmem>>, vector<8x128xf32>,
    %c0_110 = arith.constant 0 : index
    %c128_111 = arith.constant 128 : index
    %128 = vector.load %arg9[%c0_110, %c128_111] : memref<8x1152xf32, #tpu.memory_space<vmem>>, vector<8x896xf32>
    tpu.vector_store %arg9[%c0_110, %c128_111], %123 {strides = array<i32>} : memref<8x1152xf32, #tpu.memory_space<vmem>>, vector<8x896xf32>,
    %c0_112 = arith.constant 0 : index
    %c17_113 = arith.constant 17 : index
    %129 = vector.load %arg9[%c0_112, %c17_113] : memref<8x1152xf32, #tpu.memory_space<vmem>>, vector<8x896xf32>
    %c0_114 = arith.constant 0 : index
    %c0_115 = arith.constant 0 : index
    %130 = vector.load %arg8[%c0_114, %c0_115] : memref<432x896xf32, #tpu.memory_space<vmem>>, vector<8x896xf32>
    tpu.vector_store %arg8[%c0_114, %c0_115], %129 {strides = array<i32>} : memref<432x896xf32, #tpu.memory_space<vmem>>, vector<8x896xf32>,
    %c0_116 = arith.constant 0 : index
    %c18 = arith.constant 18 : index
    %131 = vector.load %arg9[%c0_116, %c18] : memref<8x1152xf32, #tpu.memory_space<vmem>>, vector<8x896xf32>
    %c8 = arith.constant 8 : index
    %c0_117 = arith.constant 0 : index
    %132 = vector.load %arg8[%c8, %c0_117] : memref<432x896xf32, #tpu.memory_space<vmem>>, vector<8x896xf32>
    tpu.vector_store %arg8[%c8, %c0_117], %131 {strides = array<i32>} : memref<432x896xf32, #tpu.memory_space<vmem>>, vector<8x896xf32>,
    %c0_118 = arith.constant 0 : index
    %c19 = arith.constant 19 : index
    %133 = vector.load %arg9[%c0_118, %c19] : memref<8x1152xf32, #tpu.memory_space<vmem>>, vector<8x896xf32>
    %c16_119 = arith.constant 16 : index
    %c0_120 = arith.constant 0 : index
    %134 = vector.load %arg8[%c16_119, %c0_120] : memref<432x896xf32, #tpu.memory_space<vmem>>, vector<8x896xf32>
    tpu.vector_store %arg8[%c16_119, %c0_120], %133 {strides = array<i32>} : memref<432x896xf32, #tpu.memory_space<vmem>>, vector<8x896xf32>,
    %c0_121 = arith.constant 0 : index
    %c27 = arith.constant 27 : index
    %135 = vector.load %arg9[%c0_121, %c27] : memref<8x1152xf32, #tpu.memory_space<vmem>>, vector<8x896xf32>
    %c24 = arith.constant 24 : index
    %c0_122 = arith.constant 0 : index
    %136 = vector.load %arg8[%c24, %c0_122] : memref<432x896xf32, #tpu.memory_space<vmem>>, vector<8x896xf32>
    tpu.vector_store %arg8[%c24, %c0_122], %135 {strides = array<i32>} : memref<432x896xf32, #tpu.memory_space<vmem>>, vector<8x896xf32>,
    %c0_123 = arith.constant 0 : index
    %c28 = arith.constant 28 : index
    %137 = vector.load %arg9[%c0_123, %c28] : memref<8x1152xf32, #tpu.memory_space<vmem>>, vector<8x896xf32>
    %c32_124 = arith.constant 32 : index
    %c0_125 = arith.constant 0 : index
    %138 = vector.load %arg8[%c32_124, %c0_125] : memref<432x896xf32, #tpu.memory_space<vmem>>, vector<8x896xf32>
    tpu.vector_store %arg8[%c32_124, %c0_125], %137 {strides = array<i32>} : memref<432x896xf32, #tpu.memory_space<vmem>>, vector<8x896xf32>,
    %c0_126 = arith.constant 0 : index
    %c29 = arith.constant 29 : index
    %139 = vector.load %arg9[%c0_126, %c29] : memref<8x1152xf32, #tpu.memory_space<vmem>>, vector<8x896xf32>
    %c40 = arith.constant 40 : index
    %c0_127 = arith.constant 0 : index
    %140 = vector.load %arg8[%c40, %c0_127] : memref<432x896xf32, #tpu.memory_space<vmem>>, vector<8x896xf32>
    tpu.vector_store %arg8[%c40, %c0_127], %139 {strides = array<i32>} : memref<432x896xf32, #tpu.memory_space<vmem>>, vector<8x896xf32>,
    %c0_128 = arith.constant 0 : index
    %c37 = arith.constant 37 : index
    %141 = vector.load %arg9[%c0_128, %c37] : memref<8x1152xf32, #tpu.memory_space<vmem>>, vector<8x896xf32>
    %c48_129 = arith.constant 48 : index
    %c0_130 = arith.constant 0 : index
    %142 = vector.load %arg8[%c48_129, %c0_130] : memref<432x896xf32, #tpu.memory_space<vmem>>, vector<8x896xf32>
    tpu.vector_store %arg8[%c48_129, %c0_130], %141 {strides = array<i32>} : memref<432x896xf32, #tpu.memory_space<vmem>>, vector<8x896xf32>,
    %c0_131 = arith.constant 0 : index
    %c38 = arith.constant 38 : index
    %143 = vector.load %arg9[%c0_131, %c38] : memref<8x1152xf32, #tpu.memory_space<vmem>>, vector<8x896xf32>
    %c56 = arith.constant 56 : index
    %c0_132 = arith.constant 0 : index
    %144 = vector.load %arg8[%c56, %c0_132] : memref<432x896xf32, #tpu.memory_space<vmem>>, vector<8x896xf32>
    tpu.vector_store %arg8[%c56, %c0_132], %143 {strides = array<i32>} : memref<432x896xf32, #tpu.memory_space<vmem>>, vector<8x896xf32>,
    %c0_133 = arith.constant 0 : index
    %c39 = arith.constant 39 : index
    %145 = vector.load %arg9[%c0_133, %c39] : memref<8x1152xf32, #tpu.memory_space<vmem>>, vector<8x896xf32>
    %c64_134 = arith.constant 64 : index
    %c0_135 = arith.constant 0 : index
    %146 = vector.load %arg8[%c64_134, %c0_135] : memref<432x896xf32, #tpu.memory_space<vmem>>, vector<8x896xf32>
    tpu.vector_store %arg8[%c64_134, %c0_135], %145 {strides = array<i32>} : memref<432x896xf32, #tpu.memory_space<vmem>>, vector<8x896xf32>,
    %c0_136 = arith.constant 0 : index
    %c117 = arith.constant 117 : index
    %147 = vector.load %arg9[%c0_136, %c117] : memref<8x1152xf32, #tpu.memory_space<vmem>>, vector<8x896xf32>
    %c72 = arith.constant 72 : index
    %c0_137 = arith.constant 0 : index
    %148 = vector.load %arg8[%c72, %c0_137] : memref<432x896xf32, #tpu.memory_space<vmem>>, vector<8x896xf32>
    tpu.vector_store %arg8[%c72, %c0_137], %147 {strides = array<i32>} : memref<432x896xf32, #tpu.memory_space<vmem>>, vector<8x896xf32>,
    %c0_138 = arith.constant 0 : index
    %c118 = arith.constant 118 : index
    %149 = vector.load %arg9[%c0_138, %c118] : memref<8x1152xf32, #tpu.memory_space<vmem>>, vector<8x896xf32>
    %c80_139 = arith.constant 80 : index
    %c0_140 = arith.constant 0 : index
    %150 = vector.load %arg8[%c80_139, %c0_140] : memref<432x896xf32, #tpu.memory_space<vmem>>, vector<8x896xf32>
    tpu.vector_store %arg8[%c80_139, %c0_140], %149 {strides = array<i32>} : memref<432x896xf32, #tpu.memory_space<vmem>>, vector<8x896xf32>,
    %c0_141 = arith.constant 0 : index
    %c119 = arith.constant 119 : index
    %151 = vector.load %arg9[%c0_141, %c119] : memref<8x1152xf32, #tpu.memory_space<vmem>>, vector<8x896xf32>
    %c88 = arith.constant 88 : index
    %c0_142 = arith.constant 0 : index
    %152 = vector.load %arg8[%c88, %c0_142] : memref<432x896xf32, #tpu.memory_space<vmem>>, vector<8x896xf32>
    tpu.vector_store %arg8[%c88, %c0_142], %151 {strides = array<i32>} : memref<432x896xf32, #tpu.memory_space<vmem>>, vector<8x896xf32>,
    %c0_143 = arith.constant 0 : index
    %c127 = arith.constant 127 : index
    %153 = vector.load %arg9[%c0_143, %c127] : memref<8x1152xf32, #tpu.memory_space<vmem>>, vector<8x896xf32>
    %c96_144 = arith.constant 96 : index
    %c0_145 = arith.constant 0 : index
    %154 = vector.load %arg8[%c96_144, %c0_145] : memref<432x896xf32, #tpu.memory_space<vmem>>, vector<8x896xf32>
    tpu.vector_store %arg8[%c96_144, %c0_145], %153 {strides = array<i32>} : memref<432x896xf32, #tpu.memory_space<vmem>>, vector<8x896xf32>,
    %c0_146 = arith.constant 0 : index
    %c128_147 = arith.constant 128 : index
    %155 = vector.load %arg9[%c0_146, %c128_147] : memref<8x1152xf32, #tpu.memory_space<vmem>>, vector<8x896xf32>
    %c104 = arith.constant 104 : index
    %c0_148 = arith.constant 0 : index
    %156 = vector.load %arg8[%c104, %c0_148] : memref<432x896xf32, #tpu.memory_space<vmem>>, vector<8x896xf32>
    tpu.vector_store %arg8[%c104, %c0_148], %155 {strides = array<i32>} : memref<432x896xf32, #tpu.memory_space<vmem>>, vector<8x896xf32>,
    %c0_149 = arith.constant 0 : index
    %c129 = arith.constant 129 : index
    %157 = vector.load %arg9[%c0_149, %c129] : memref<8x1152xf32, #tpu.memory_space<vmem>>, vector<8x896xf32>
    %c112_150 = arith.constant 112 : index
    %c0_151 = arith.constant 0 : index
    %158 = vector.load %arg8[%c112_150, %c0_151] : memref<432x896xf32, #tpu.memory_space<vmem>>, vector<8x896xf32>
    tpu.vector_store %arg8[%c112_150, %c0_151], %157 {strides = array<i32>} : memref<432x896xf32, #tpu.memory_space<vmem>>, vector<8x896xf32>,
    %c0_152 = arith.constant 0 : index
    %c137 = arith.constant 137 : index
    %159 = vector.load %arg9[%c0_152, %c137] : memref<8x1152xf32, #tpu.memory_space<vmem>>, vector<8x896xf32>
    %c120_153 = arith.constant 120 : index
    %c0_154 = arith.constant 0 : index
    %160 = vector.load %arg8[%c120_153, %c0_154] : memref<432x896xf32, #tpu.memory_space<vmem>>, vector<8x896xf32>
    tpu.vector_store %arg8[%c120_153, %c0_154], %159 {strides = array<i32>} : memref<432x896xf32, #tpu.memory_space<vmem>>, vector<8x896xf32>,
    %c0_155 = arith.constant 0 : index
    %c138 = arith.constant 138 : index
    %161 = vector.load %arg9[%c0_155, %c138] : memref<8x1152xf32, #tpu.memory_space<vmem>>, vector<8x896xf32>
    %c128_156 = arith.constant 128 : index
    %c0_157 = arith.constant 0 : index
    %162 = vector.load %arg8[%c128_156, %c0_157] : memref<432x896xf32, #tpu.memory_space<vmem>>, vector<8x896xf32>
    tpu.vector_store %arg8[%c128_156, %c0_157], %161 {strides = array<i32>} : memref<432x896xf32, #tpu.memory_space<vmem>>, vector<8x896xf32>,
    %c0_158 = arith.constant 0 : index
    %c139 = arith.constant 139 : index
    %163 = vector.load %arg9[%c0_158, %c139] : memref<8x1152xf32, #tpu.memory_space<vmem>>, vector<8x896xf32>
    %c136 = arith.constant 136 : index
    %c0_159 = arith.constant 0 : index
    %164 = vector.load %arg8[%c136, %c0_159] : memref<432x896xf32, #tpu.memory_space<vmem>>, vector<8x896xf32>
    tpu.vector_store %arg8[%c136, %c0_159], %163 {strides = array<i32>} : memref<432x896xf32, #tpu.memory_space<vmem>>, vector<8x896xf32>,
    %c0_160 = arith.constant 0 : index
    %c217 = arith.constant 217 : index
    %165 = vector.load %arg9[%c0_160, %c217] : memref<8x1152xf32, #tpu.memory_space<vmem>>, vector<8x896xf32>
    %c144_161 = arith.constant 144 : index
    %c0_162 = arith.constant 0 : index
    %166 = vector.load %arg8[%c144_161, %c0_162] : memref<432x896xf32, #tpu.memory_space<vmem>>, vector<8x896xf32>
    tpu.vector_store %arg8[%c144_161, %c0_162], %165 {strides = array<i32>} : memref<432x896xf32, #tpu.memory_space<vmem>>, vector<8x896xf32>,
    %c0_163 = arith.constant 0 : index
    %c218 = arith.constant 218 : index
    %167 = vector.load %arg9[%c0_163, %c218] : memref<8x1152xf32, #tpu.memory_space<vmem>>, vector<8x896xf32>
    %c152 = arith.constant 152 : index
    %c0_164 = arith.constant 0 : index
    %168 = vector.load %arg8[%c152, %c0_164] : memref<432x896xf32, #tpu.memory_space<vmem>>, vector<8x896xf32>
    tpu.vector_store %arg8[%c152, %c0_164], %167 {strides = array<i32>} : memref<432x896xf32, #tpu.memory_space<vmem>>, vector<8x896xf32>,
    %c0_165 = arith.constant 0 : index
    %c219 = arith.constant 219 : index
    %169 = vector.load %arg9[%c0_165, %c219] : memref<8x1152xf32, #tpu.memory_space<vmem>>, vector<8x896xf32>
    %c160_166 = arith.constant 160 : index
    %c0_167 = arith.constant 0 : index
    %170 = vector.load %arg8[%c160_166, %c0_167] : memref<432x896xf32, #tpu.memory_space<vmem>>, vector<8x896xf32>
    tpu.vector_store %arg8[%c160_166, %c0_167], %169 {strides = array<i32>} : memref<432x896xf32, #tpu.memory_space<vmem>>, vector<8x896xf32>,
    %c0_168 = arith.constant 0 : index
    %c227 = arith.constant 227 : index
    %171 = vector.load %arg9[%c0_168, %c227] : memref<8x1152xf32, #tpu.memory_space<vmem>>, vector<8x896xf32>
    %c168 = arith.constant 168 : index
    %c0_169 = arith.constant 0 : index
    %172 = vector.load %arg8[%c168, %c0_169] : memref<432x896xf32, #tpu.memory_space<vmem>>, vector<8x896xf32>
    tpu.vector_store %arg8[%c168, %c0_169], %171 {strides = array<i32>} : memref<432x896xf32, #tpu.memory_space<vmem>>, vector<8x896xf32>,
    %c0_170 = arith.constant 0 : index
    %c228 = arith.constant 228 : index
    %173 = vector.load %arg9[%c0_170, %c228] : memref<8x1152xf32, #tpu.memory_space<vmem>>, vector<8x896xf32>
    %c176_171 = arith.constant 176 : index
    %c0_172 = arith.constant 0 : index
    %174 = vector.load %arg8[%c176_171, %c0_172] : memref<432x896xf32, #tpu.memory_space<vmem>>, vector<8x896xf32>
    tpu.vector_store %arg8[%c176_171, %c0_172], %173 {strides = array<i32>} : memref<432x896xf32, #tpu.memory_space<vmem>>, vector<8x896xf32>,
    %c0_173 = arith.constant 0 : index
    %c229 = arith.constant 229 : index
    %175 = vector.load %arg9[%c0_173, %c229] : memref<8x1152xf32, #tpu.memory_space<vmem>>, vector<8x896xf32>
    %c184 = arith.constant 184 : index
    %c0_174 = arith.constant 0 : index
    %176 = vector.load %arg8[%c184, %c0_174] : memref<432x896xf32, #tpu.memory_space<vmem>>, vector<8x896xf32>
    tpu.vector_store %arg8[%c184, %c0_174], %175 {strides = array<i32>} : memref<432x896xf32, #tpu.memory_space<vmem>>, vector<8x896xf32>,
    %c0_175 = arith.constant 0 : index
    %c237 = arith.constant 237 : index
    %177 = vector.load %arg9[%c0_175, %c237] : memref<8x1152xf32, #tpu.memory_space<vmem>>, vector<8x896xf32>
    %c192_176 = arith.constant 192 : index
    %c0_177 = arith.constant 0 : index
    %178 = vector.load %arg8[%c192_176, %c0_177] : memref<432x896xf32, #tpu.memory_space<vmem>>, vector<8x896xf32>
    tpu.vector_store %arg8[%c192_176, %c0_177], %177 {strides = array<i32>} : memref<432x896xf32, #tpu.memory_space<vmem>>, vector<8x896xf32>,
    %c0_178 = arith.constant 0 : index
    %c238 = arith.constant 238 : index
    %179 = vector.load %arg9[%c0_178, %c238] : memref<8x1152xf32, #tpu.memory_space<vmem>>, vector<8x896xf32>
    %c200_179 = arith.constant 200 : index
    %c0_180 = arith.constant 0 : index
    %180 = vector.load %arg8[%c200_179, %c0_180] : memref<432x896xf32, #tpu.memory_space<vmem>>, vector<8x896xf32>
    tpu.vector_store %arg8[%c200_179, %c0_180], %179 {strides = array<i32>} : memref<432x896xf32, #tpu.memory_space<vmem>>, vector<8x896xf32>,
    %c0_181 = arith.constant 0 : index
    %c239 = arith.constant 239 : index
    %181 = vector.load %arg9[%c0_181, %c239] : memref<8x1152xf32, #tpu.memory_space<vmem>>, vector<8x896xf32>
    %c208_182 = arith.constant 208 : index
    %c0_183 = arith.constant 0 : index
    %182 = vector.load %arg8[%c208_182, %c0_183] : memref<432x896xf32, #tpu.memory_space<vmem>>, vector<8x896xf32>
    tpu.vector_store %arg8[%c208_182, %c0_183], %181 {strides = array<i32>} : memref<432x896xf32, #tpu.memory_space<vmem>>, vector<8x896xf32>,
    %c0_184 = arith.constant 0 : index
    %c0_185 = arith.constant 0 : index
    %183 = vector.load %arg4[%c0_184, %c0_185] : memref<8x216xf32, #tpu.memory_space<vmem>>, vector<8x216xf32>
    %c0_186 = arith.constant 0 : index
    %c0_187 = arith.constant 0 : index
    %184 = vector.load %arg8[%c0_186, %c0_187] : memref<432x896xf32, #tpu.memory_space<vmem>>, vector<216x896xf32>
    %cst_188 = arith.constant dense<0.000000e+00> : vector<8x896xf32>
    %185 = tpu.matmul %183, %184, %cst_188 {dimension_numbers = #tpu.dot_dimension_numbers<[1], [0], [0], [1], [0, 0, 1, 1], [], []>} : vector<8x216xf32>, vector<216x896xf32>, vector<8x896xf32> -> vector<8x896xf32>
    %c8_189 = arith.constant 8 : index
    %c0_190 = arith.constant 0 : index
    %186 = vector.load %arg5[%c8_189, %c0_190] : memref<16x1xf32, #tpu.memory_space<vmem>>, vector<8x1xf32>
    %187 = vector.broadcast %186 : vector<8x1xf32> to vector<8x896xf32>
    %188 = arith.addf %185, %187 : vector<8x896xf32>
    %cst_191 = arith.constant 0.000000e+00 : f32
    %189 = vector.broadcast %cst_191 : f32 to vector<8x896xf32>
    %190 = arith.maximumf %188, %189 : vector<8x896xf32>
    %c0_192 = arith.constant 0 : index
    %c0_193 = arith.constant 0 : index
    %c0_194 = arith.constant 0 : index
    %191 = vector.load %arg7[%c0_192, %c0_193, %c0_194] : memref<1x8x896xf32, #tpu.memory_space<vmem>>, vector<1x8x896xf32>
    %192 = vector.shape_cast %191 : vector<1x8x896xf32> to vector<8x896xf32>
    %193 = vector.shape_cast %190 : vector<8x896xf32> to vector<1x8x896xf32>
    tpu.vector_store %arg7[%c0_192, %c0_193, %c0_194], %193 {strides = array<i32>} : memref<1x8x896xf32, #tpu.memory_space<vmem>>, vector<1x8x896xf32>,
    return
  }
  func.func @transform_0(%arg0: i32) -> (i32, i32, i32) {
    %c0_i32 = arith.constant 0 : i32
    %c0_i32_0 = arith.constant 0 : i32
    %c0_i32_1 = arith.constant 0 : i32
    return %arg0, %c0_i32, %c0_i32_0 : i32, i32, i32
  }
  func.func @transform_1(%arg0: i32) -> (i32, i32) {
    %c0_i32 = arith.constant 0 : i32
    %c0_i32_0 = arith.constant 0 : i32
    %c0_i32_1 = arith.constant 0 : i32
    return %c0_i32, %c0_i32_0 : i32, i32
  }
  func.func @transform_2(%arg0: i32) -> (i32, i32) {
    %c0_i32 = arith.constant 0 : i32
    %c0_i32_0 = arith.constant 0 : i32
    %c0_i32_1 = arith.constant 0 : i32
    return %c0_i32, %c0_i32_0 : i32, i32
  }
  func.func @transform_3(%arg0: i32) -> (i32, i32) {
    %c0_i32 = arith.constant 0 : i32
    %c0_i32_0 = arith.constant 0 : i32
    %c0_i32_1 = arith.constant 0 : i32
    return %c0_i32, %c0_i32_0 : i32, i32
  }
  func.func @transform_4(%arg0: i32) -> (i32, i32) {
    %c0_i32 = arith.constant 0 : i32
    %c0_i32_0 = arith.constant 0 : i32
    %c0_i32_1 = arith.constant 0 : i32
    return %c0_i32, %c0_i32_0 : i32, i32
  }
  func.func @transform_5(%arg0: i32) -> (i32, i32) {
    %c0_i32 = arith.constant 0 : i32
    %c0_i32_0 = arith.constant 0 : i32
    %c0_i32_1 = arith.constant 0 : i32
    return %c0_i32, %c0_i32_0 : i32, i32
  }
  func.func @transform_6(%arg0: i32) -> (i32, i32, i32) {
    %c0_i32 = arith.constant 0 : i32
    %c0_i32_0 = arith.constant 0 : i32
    %c0_i32_1 = arith.constant 0 : i32
    return %arg0, %c0_i32, %c0_i32_0 : i32, i32, i32
  }
}

</mosaic_0001>

<bundles_post_ra>
// kernel: _lambda_.1
= control target key start
LH: loop header
LB: loop body
LE: loop exit
PB: predicated region body
PF: predicated region fallthrough
CT: control target
= control target key end

     0   :  { %s8459_s21 = smov 0   ;;  %s11879_s0 = inlined_call_operand.vmem [shape: f32[2,16,1152], index: 0, kind: input, shape index: {}]   ;;  %s11880_s1 = inlined_call_operand.vmem [shape: f32[24,16], index: 1, kind: input, shape index: {}]   ;;  %s11881_s2 = inlined_call_operand.vmem [shape: f32[8,432], index: 2, kind: input, shape index: {}]   ;;  %s11882_s3 = inlined_call_operand.vmem [shape: f32[8,216], index: 3, kind: input, shape index: {}]   ;;  %s11883_s4 = inlined_call_operand.vmem [shape: f32[16,1], index: 4, kind: input, shape index: {}]   ;;  %s11884_s5 = inlined_call_operand.vmem [shape: f32[1,896], index: 5, kind: input, shape index: {}]   ;;  %s11885_s6 = inlined_call_operand.vmem [shape: f32[2,8,896], index: 6, kind: output, shape index: {}]  }
   0x1 LB: > { %s6164_s22 = sadd.s32 4294967295, %s8367_s21   ;;  %p6168_p0 = scmp.ge.s32.totalorder %s8367_s21, 1  ;;  %s8367_s21 = sphi %s8459_s21, %s16_s21  }
   0x2   : > { %p212_p1 = scmp.lt.s32.totalorder %s8367_s21, 3 }
   0x4   : > { %p213_p2 = pnand %p6168_p0, %p212_p1 }
   0x6   : > { %216 = sbr.rel (%p213_p2) target bundleno = 1442 (0x5a2), region = 44 }
   0xd   : > { %p242_p3 = scmp.lt.s32.totalorder %s6164_s22, 1  ;;  %s12080_s27 = smov 127   ;;  %v8375_v46 = vmov 0   ;;  %vm12032_vm0 = vcmask 1039360   ;;  %vm11975_vm1 = vcmask 130048   ;;  %vm577_vm2 = vcmask 1031168  }
   0xe   : > { %s8370_s28 = smov 126   ;;  %s12079_s29 = smov 118   ;;  %7333 = vset.pattern.permute.xlu1 %v8375_v46  ;;  %7920 = vset.pattern.permute.xlu0 %v8375_v46  ;;  %vm12033_vm3 = vcmask 965632   ;;  %vm791_vm4 = vcmask 957440   ;;  %vm898_vm5 = vcmask 949248   ;;  %vm1005_vm6 = vcmask 883712  }
   0xf   : > { %s12751_s22 = smov (!%p242_p3, %s6164_s22), 1  ;;  %s8372_s30 = smov 117   ;;  %vm12001_vm7 = vcmask 875520   ;;  %vm11997_vm8 = vcmask 867328   ;;  %vm11980_vm9 = vcmask 228352   ;;  %vm11971_vm10 = vcmask 220160  }
  0x10   : > { %s6813_s23 = smul.u32 144, %s12751_s22  ;;  %s8373_s7 = smov 116   ;;  %vm11970_vm11 = vcmask 211968   ;;  %vm11969_vm12 = vcmask 146432   ;;  %vm11967_vm13 = vcmask 138240   ;;  %vm1967_vm14 = vcmask 64512  }
  0x11   : > { %s8374_s8 = smov 108   ;;  %s8376_s9 = smov 107   ;;  %vm2074_vm15 = vcmask 56320  }
  0x12   : > { %s8473_s26 = scalar_lea.vmem %s11879_s0, %s6813_s23  ;;  %s8377_s10 = smov 106  }
  0x13   : > { %v408_v0 = vld [vmem:[%s8473_s26 + $0x10] sm:$0xff]  ;;  %v409_v1 = vld [vmem:[%s8473_s26 + $0x18] sm:$0xff]  ;;  %v406_v2 = vld [vmem:[%s8473_s26] sm:$0xff]  ;;  %s12097_s11 = smov 28   ;;  %s8379_s12 = smov 27  }
  0x14   : > { %v8478_v3 = vpack.i.bf16 %v409_v1, %v408_v0  ;;  %v407_v4 = vld [vmem:[%s8473_s26 + $0x8] sm:$0xff]  ;;  %v412_v5 = vld [vmem:[%s8473_s26 + $0x30] sm:$0xff]  ;;  %v413_v6 = vld [vmem:[%s8473_s26 + $0x38] sm:$0xff]  ;;  %s8380_s13 = smov 26   ;;  %s11982_s14 = smov 18  }
  0x15   : > { %v8483_v7 = vpack.i.bf16 %v407_v4, %v406_v2  ;;  %v410_v8 = vld [vmem:[%s8473_s26 + $0x20] sm:$0xff]  ;;  %v411_v9 = vld [vmem:[%s8473_s26 + $0x28] sm:$0xff]  ;;  %v8489_v10 = vpack.i.bf16 %v413_v6, %v412_v5  ;;  %v416_v11 = vld [vmem:[%s8473_s26 + $0x58] sm:$0xff]  ;;  %v270_v28 = vadd.f32 %v407_v4, %v406_v2  ;;  %s12095_s19 = smov 17   ;;  %s8384_s20 = smov 16  }
  0x16   : > { %6884 = vrot.lane.b32.xlu1 %v8478_v3, %s12080_s27  ;;  %v8494_v12 = vpack.i.bf16 %v411_v9, %v410_v8  ;;  %v417_v13 = vld [vmem:[%s8473_s26 + $0x60] sm:$0xff]  ;;  %v414_v14 = vld [vmem:[%s8473_s26 + $0x48] sm:$0xff]  ;;  %v415_v15 = vld [vmem:[%s8473_s26 + $0x50] sm:$0xff]  ;;  %v6327_v19 = vpack.c.bf16 %v416_v11, %v408_v0  ;;  %s8385_s23 = smov 8   ;;  %s8386_s24 = smov 7  }
  0x17   : > { %6879 = vrot.lane.b32.xlu0 %v8483_v7, %s12080_s27  ;;  %v6217_v16 = vpack.c.bf16 %v415_v15, %v407_v4  ;;  %v6219_v17 = vpack.c.bf16 %v414_v14, %v406_v2  ;;  %v6325_v18 = vpack.c.bf16 %v417_v13, %v409_v1  ;;  %v8501_v20 = vpack.i.bf16 %v417_v13, %v416_v11  ;;  %v420_v22 = vld [vmem:[%s8473_s26 + $0x78] sm:$0xff]  ;;  %v421_v23 = vld [vmem:[%s8473_s26 + $0x80] sm:$0xff]  ;;  %v418_v24 = vld [vmem:[%s8473_s26 + $0x68] sm:$0xff]  ;;  %s8387_s25 = smov 6   ;;  %s8390_s15 = smov 32  }
  0x18   : > { %v8505_v21 = vpack.i.bf16 %v415_v15, %v414_v14  ;;  %v419_v25 = vld [vmem:[%s8473_s26 + $0x70] sm:$0xff]  ;;  %v8513_v26 = vpack.i.bf16 %v421_v23, %v420_v22  ;;  %v271_v29 = vadd.f32 %v408_v0, %v270_v28  ;;  %v280_v30 = vadd.f32 %v415_v15, %v414_v14  ;;  %v260_v41 = vld [vmem:[%s8473_s26 + $0x40] sm:$0xff]  ;;  %v269_v44 = vld [vmem:[%s8473_s26 + $0x88] sm:$0xff]  ;;  %s8391_s16 = smov 48   ;;  %s8392_s17 = smov 64  }
  0x19   : > { %6218 = vmatprep.subr.bf16.mxu0 %v6217_v16  ;;  %6326 = vmatprep.subr.bf16.mxu1 %v6325_v18  ;;  %v8517_v27 = vpack.i.bf16 %v419_v25, %v418_v24  ;;  %s8393_s18 = smov 80  }
  0x1a   : > { %6894 = vrot.lane.b32.xlu1 %v8489_v10, %s12080_s27  ;;  %6220 = vmatpush1.bf16.msra.mxu0 %v6219_v17  ;;  %v272_v31 = vadd.f32 %v409_v1, %v271_v29  ;;  %v281_v32 = vadd.f32 %v416_v11, %v280_v30 }
  0x1b   : > { %6889 = vrot.lane.b32.xlu0 %v8494_v12, %s12080_s27  ;;  %6328 = vmatpush1.bf16.msra.mxu1 %v6327_v19 }
  0x1c   : > { %v273_v33 = vadd.f32 %v410_v8, %v272_v31  ;;  %v282_v34 = vadd.f32 %v417_v13, %v281_v32 }
  0x1e   : > { %6904 = vrot.lane.b32.xlu1 %v8501_v20, %s12080_s27  ;;  %v274_v35 = vadd.f32 %v411_v9, %v273_v33  ;;  %v283_v36 = vadd.f32 %v418_v24, %v282_v34 }
  0x1f   : > { %6899 = vrot.lane.b32.xlu0 %v8505_v21, %s12080_s27 }
  0x20   : > { %v275_v37 = vadd.f32 %v412_v5, %v274_v35  ;;  %v284_v38 = vadd.f32 %v419_v25, %v283_v36  ;;  %v1585_v36 = vld [vmem:[%s8473_s26 + $0x10] sm:$0xff] }
  0x22   : > { %6914 = vrot.lane.b32.xlu1 %v8513_v26, %s12080_s27  ;;  %v276_v39 = vadd.f32 %v413_v6, %v275_v37  ;;  %v285_v40 = vadd.f32 %v420_v22, %v284_v38  ;;  %v1586_v37 = vld [vmem:[%s8473_s26 + $0x18] sm:$0xff] }
  0x23   : > { %6909 = vrot.lane.b32.xlu0 %v8517_v27, %s12080_s27  ;;  %v8715_v38 = vpack.i.bf16 %v1586_v37, %v1585_v36 }
  0x24   : > { %v277_v42 = vadd.f32 %v276_v39, %v260_v41  ;;  %v286_v43 = vadd.f32 %v421_v23, %v285_v40 }
  0x26   : > { %6924 = vrot.lane.b32.xlu1 %v8478_v3, %s8370_s28  ;;  %v287_v45 = vadd.f32 %v286_v43, %v269_v44  ;;  %v292_v44 = vld [vmem:[%s11880_s1] sm:$0xff] }
  0x27   : > { %6919 = vrot.lane.b32.xlu0 %v8483_v7, %s8370_s28 }
  0x2a   : > { %6934 = vrot.lane.b32.xlu1 %v8489_v10, %s8370_s28 }
  0x2e   : > { %6944 = vrot.lane.b32.xlu1 %v8501_v20, %s8370_s28 }
  0x32   : > { %6954 = vrot.lane.b32.xlu1 %v8513_v26, %s8370_s28 }
  0x36   : > { %6964 = vrot.lane.b32.xlu1 %v8478_v3, %s12079_s29 }
  0x3a   : > { %6974 = vrot.lane.b32.xlu1 %v8489_v10, %s12079_s29 }
  0x3e   : > { %6984 = vrot.lane.b32.xlu1 %v8501_v20, %s12079_s29 }
  0x42   : > { %6994 = vrot.lane.b32.xlu1 %v8513_v26, %s12079_s29 }
  0x46   : > { %278 = vadd.xlane.f32.xlu0 %v277_v42  ;;  %7004 = vrot.lane.b32.xlu1 %v8478_v3, %s8372_s30 }
  0x4a   : > { %288 = vadd.xlane.f32.xlu0 %v287_v45  ;;  %7014 = vrot.lane.b32.xlu1 %v8489_v10, %s8372_s30  ;;  %v293_v45 = vld [vmem:[%s11880_s1 + $0x8] sm:$0xff] }
  0x4e   : > { %7024 = vrot.lane.b32.xlu1 %v8501_v20, %s8372_s30 }
  0x52   : > { %7034 = vrot.lane.b32.xlu1 %v8513_v26, %s8372_s30 }
  0x56   : > { %7044 = vrot.lane.b32.xlu1 %v8478_v3, %s8373_s7 }
  0x5a   : > { %7054 = vrot.lane.b32.xlu1 %v8489_v10, %s8373_s7 }
  0x5e   : > { %7064 = vrot.lane.b32.xlu1 %v8501_v20, %s8373_s7 }
  0x60   : > { %6929 = vrot.lane.b32.xlu0 %v8494_v12, %s8370_s28 }
  0x62   : > { %7074 = vrot.lane.b32.xlu1 %v8513_v26, %s8373_s7 }
  0x64   : > { %6939 = vrot.lane.b32.xlu0 %v8505_v21, %s8370_s28 }
  0x66   : > { %7084 = vrot.lane.b32.xlu1 %v8478_v3, %s8374_s8 }
  0x68   : > { %6949 = vrot.lane.b32.xlu0 %v8517_v27, %s8370_s28  ;;  %s8388_s28 = smov 56  }
  0x6a   : > { %7094 = vrot.lane.b32.xlu1 %v8489_v10, %s8374_s8 }
  0x6c   : > { %6959 = vrot.lane.b32.xlu0 %v8483_v7, %s12079_s29 }
  0x6e   : > { %7104 = vrot.lane.b32.xlu1 %v8501_v20, %s8374_s8 }
  0x70   : > { %6969 = vrot.lane.b32.xlu0 %v8494_v12, %s12079_s29 }
  0x72   : > { %7114 = vrot.lane.b32.xlu1 %v8513_v26, %s8374_s8 }
  0x74   : > { %6979 = vrot.lane.b32.xlu0 %v8505_v21, %s12079_s29 }
  0x76   : > { %7124 = vrot.lane.b32.xlu1 %v8478_v3, %s8376_s9 }
  0x78   : > { %6989 = vrot.lane.b32.xlu0 %v8517_v27, %s12079_s29 }
  0x7a   : > { %7134 = vrot.lane.b32.xlu1 %v8489_v10, %s8376_s9 }
  0x7c   : > { %6999 = vrot.lane.b32.xlu0 %v8483_v7, %s8372_s30 }
  0x7e   : > { %7144 = vrot.lane.b32.xlu1 %v8501_v20, %s8376_s9 }
  0x80   : > { %7009 = vrot.lane.b32.xlu0 %v8494_v12, %s8372_s30 }
  0x82   : > { %7154 = vrot.lane.b32.xlu1 %v8513_v26, %s8376_s9 }
  0x84   : > { %7019 = vrot.lane.b32.xlu0 %v8505_v21, %s8372_s30 }
  0x86   : > { %7164 = vrot.lane.b32.xlu1 %v8478_v3, %s8377_s10 }
  0x88   : > { %v6885_v47 = vpop.permute.xlu1 %6884  ;;  %7029 = vrot.lane.b32.xlu0 %v8517_v27, %s8372_s30 }
  0x89   : > { %v6880_v48 = vpop.permute.xlu0 %6879  ;;  %v6886_v51 = vunpack.i.l.bf16 %v6885_v47  ;;  %v6887_v55 = vunpack.i.h.bf16 %v6885_v47 }
  0x8a   : > { %7174 = vrot.lane.b32.xlu1 %v8489_v10, %s8377_s10  ;;  %v6882_v52 = vunpack.i.h.bf16 %v6880_v48  ;;  %v6881_v53 = vunpack.i.l.bf16 %v6880_v48 }
  0x8b   : > { %v473_v62 = vsel %vm12032_vm0, %v6886_v51, %v6887_v55 }
  0x8c   : > { %v8603_v49 = vpop.permute.xlu1 %6894  ;;  %7039 = vrot.lane.b32.xlu0 %v8483_v7, %s8373_s7  ;;  %v472_v0 = vsel %vm12032_vm0, %v6882_v52, %v6886_v51  ;;  %v471_v2 = vsel %vm12032_vm0, %v6881_v53, %v6882_v52  ;;  %v1374_v51 = vld [vmem:[%s8473_s26 + $0x28] sm:$0xff] }
  0x8d   : > { %v8607_v50 = vpop.permute.xlu0 %6889 }
  0x8e   : > { %7184 = vrot.lane.b32.xlu1 %v8501_v20, %s8377_s10  ;;  %v6891_v60 = vunpack.i.l.bf16 %v8607_v50  ;;  %v11890_v5 = vunpack.i.h.bf16 %v8607_v50 }
  0x90   : > { %v6905_v54 = vpop.permute.xlu1 %6904  ;;  %7049 = vrot.lane.b32.xlu0 %v8494_v12, %s8373_s7  ;;  %v474_v15 = vsel %vm12032_vm0, %v6887_v55, %v6891_v60  ;;  %v8647_v22 = vsel %vm12032_vm0, %v6891_v60, %v11890_v5  ;;  %v8761_v60 = vld [vmem:[%s8473_s26 + $0x48] sm:$0xff] }
  0x91   : > { %v6906_v56 = vunpack.i.l.bf16 %v6905_v54  ;;  %v6900_v57 = vpop.permute.xlu0 %6899  ;;  %v6907_v61 = vunpack.i.h.bf16 %v6905_v54 }
  0x92   : > { %v6902_v58 = vunpack.i.h.bf16 %v6900_v57  ;;  %v6901_v59 = vunpack.i.l.bf16 %v6900_v57  ;;  %7194 = vrot.lane.b32.xlu1 %v8513_v26, %s8377_s10 }
  0x93   : > { %v480_v11 = vsel %vm12032_vm0, %v6906_v56, %v6907_v61 }
  0x94   : > { %v8617_v63 = vpop.permute.xlu1 %6914  ;;  %v479_v1 = vsel %vm12032_vm0, %v6902_v58, %v6906_v56  ;;  %v478_v4 = vsel %vm12032_vm0, %v6901_v59, %v6902_v58  ;;  %7059 = vrot.lane.b32.xlu0 %v8505_v21, %s8373_s7  ;;  %v6331_v19 = vpack.c.bf16 %v480_v11, %v473_v62 }
  0x95   : > { %v8626_v6 = vpop.permute.xlu0 %6909  ;;  %v6221_v8 = vpack.c.bf16 %v479_v1, %v472_v0  ;;  %v6223_v9 = vpack.c.bf16 %v478_v4, %v471_v2 }
  0x96   : > { %v11891_v13 = vunpack.i.h.bf16 %v8626_v6  ;;  %v6911_v14 = vunpack.i.l.bf16 %v8626_v6  ;;  %7204 = vrot.lane.b32.xlu1 %v8478_v3, %s12097_s11 }
  0x97   : > { %6222 = vmatprep.subr.bf16.mxu0 %v6221_v8 }
  0x98   : > { %v8637_v16 = vsel %vm12032_vm0, %v6911_v14, %v11891_v13  ;;  %6224 = vmatpush1.bf16.msra.mxu0 %v6223_v9  ;;  %v8639_v17 = vpop.permute.xlu1 %6924  ;;  %v481_v18 = vsel %vm12032_vm0, %v6907_v61, %v6911_v14  ;;  %7069 = vrot.lane.b32.xlu0 %v8517_v27, %s8373_s7  ;;  %v8764_v61 = vld [vmem:[%s8473_s26 + $0x50] sm:$0xff]  ;;  %s8389_s7 = smov 55  }
  0x99   : > { %v6329_v23 = vpack.c.bf16 %v481_v18, %v474_v15  ;;  %v6920_v39 = vpop.permute.xlu0 %6919  ;;  %v6926_v58 = vunpack.i.l.bf16 %v8639_v17  ;;  %v8771_v8 = vpack.i.bf16 %v8764_v61, %v8761_v60  ;;  %v6927_v11 = vunpack.i.h.bf16 %v8639_v17 }
  0x9a   : > { %7214 = vrot.lane.b32.xlu1 %v8489_v10, %s12097_s11  ;;  %v6921_v62 = vunpack.i.l.bf16 %v6920_v39 }
  0x9b   : > { %6330 = vmatprep.subr.bf16.mxu1 %v6329_v23  ;;  %v1382_v23 = vld [vmem:[%s8473_s26 + $0x70] sm:$0xff] }
  0x9c   : > { %7079 = vrot.lane.b32.xlu0 %v8483_v7, %s8374_s8  ;;  %6332 = vmatpush1.bf16.msra.mxu1 %v6331_v19  ;;  %v8655_v25 = vpop.permute.xlu1 %6934  ;;  %v1381_v19 = vld [vmem:[%s8473_s26 + $0x68] sm:$0xff] }
  0x9e   : > { %7224 = vrot.lane.b32.xlu1 %v8501_v20, %s12097_s11 }
  0xa0   : > { %7089 = vrot.lane.b32.xlu0 %v8494_v12, %s8374_s8  ;;  %v8661_v28 = vpop.permute.xlu1 %6944 }
  0xa1   : > { %v6946_v2 = vunpack.i.l.bf16 %v8661_v28  ;;  %v6947_v14 = vunpack.i.h.bf16 %v8661_v28 }
  0xa2   : > { %7234 = vrot.lane.b32.xlu1 %v8513_v26, %s12097_s11 }
  0xa4   : > { %7099 = vrot.lane.b32.xlu0 %v8505_v21, %s8374_s8  ;;  %v8667_v29 = vpop.permute.xlu1 %6954 }
  0xa6   : > { %7244 = vrot.lane.b32.xlu1 %v8478_v3, %s8379_s12 }
  0xa8   : > { %7109 = vrot.lane.b32.xlu0 %v8517_v27, %s8374_s8  ;;  %v8673_v30 = vpop.permute.xlu1 %6964  ;;  %s8395_s8 = smov 96  }
  0xaa   : > { %7254 = vrot.lane.b32.xlu1 %v8489_v10, %s8379_s12 }
  0xac   : > { %7119 = vrot.lane.b32.xlu0 %v8483_v7, %s8376_s9  ;;  %v8679_v31 = vpop.permute.xlu1 %6974 }
  0xae   : > { %7264 = vrot.lane.b32.xlu1 %v8501_v20, %s8379_s12 }
  0xb0   : > { %7129 = vrot.lane.b32.xlu0 %v8494_v12, %s8376_s9  ;;  %v8685_v32 = vpop.permute.xlu1 %6984 }
  0xb2   : > { %7274 = vrot.lane.b32.xlu1 %v8513_v26, %s8379_s12 }
  0xb4   : > { %7139 = vrot.lane.b32.xlu0 %v8505_v21, %s8376_s9  ;;  %v8691_v33 = vpop.permute.xlu1 %6994 }
  0xb6   : > { %7284 = vrot.lane.b32.xlu1 %v8478_v3, %s8380_s13 }
  0xb8   : > { %7149 = vrot.lane.b32.xlu0 %v8517_v27, %s8376_s9  ;;  %v8697_v34 = vpop.permute.xlu1 %7004  ;;  %s8396_s9 = smov 112  }
  0xba   : > { %7294 = vrot.lane.b32.xlu1 %v8489_v10, %s8380_s13 }
  0xbc   : > { %7159 = vrot.lane.b32.xlu0 %v8483_v7, %s8377_s10  ;;  %v8703_v35 = vpop.permute.xlu1 %7014 }
  0xbe   : > { %7304 = vrot.lane.b32.xlu1 %v8501_v20, %s8380_s13 }
  0xc0   : > { %7169 = vrot.lane.b32.xlu0 %v8494_v12, %s8377_s10  ;;  %v8711_v3 = vpop.permute.xlu1 %7024 }
  0xc2   : > { %7314 = vrot.lane.b32.xlu1 %v8513_v26, %s8380_s13 }
  0xc4   : > { %7179 = vrot.lane.b32.xlu0 %v8505_v21, %s8377_s10  ;;  %v8719_v10 = vpop.permute.xlu1 %7034 }
  0xc6   : > { %7324 = vrot.lane.b32.xlu1 %v8715_v38, %s11982_s14 }
  0xc8   : > { %7189 = vrot.lane.b32.xlu0 %v8517_v27, %s8377_s10  ;;  %v8725_v20 = vpop.permute.xlu1 %7044  ;;  %s8397_s10 = smov 46  }
  0xcc   : > { %7199 = vrot.lane.b32.xlu0 %v8483_v7, %s12097_s11  ;;  %v8729_v26 = vpop.permute.xlu1 %7054 }
  0xcd   : > { %12150 = vst [vmem:[#allocation4_spill] sm:$0xff] %v8729_v26 }
  0xd0   : > { %7209 = vrot.lane.b32.xlu0 %v8494_v12, %s12097_s11  ;;  %v8733_v40 = vpop.permute.xlu1 %7064 }
  0xd3   : > { %v279_v41 = vpop.xlane.xlu0 %278 }
  0xd4   : > { %v290_v42 = vmul.f32 0.001953125, %v279_v41  ;;  %7219 = vrot.lane.b32.xlu0 %v8505_v21, %s12097_s11  ;;  %v8737_v43 = vpop.permute.xlu1 %7074  ;;  %v1373_v21 = vld [vmem:[%s8473_s26 + $0x20] sm:$0xff] }
  0xd5   : > { %12151 = vst [vmem:[#allocation5_spill] sm:$0xff] %v8737_v43  ;;  %v8757_v57 = vpack.i.bf16 %v1374_v51, %v1373_v21  ;;  %v580_v51 = vsel %vm577_vm2, %v6926_v58, %v6927_v11 }
  0xd6   : > { %v294_v48 = vmul.f32 %v292_v44, %v290_v42 }
  0xd7   : > { %v289_v47 = vpop.xlane.xlu0 %288 }
  0xd8   : > { %v291_v12 = vmul.f32 0.001953125, %v289_v47  ;;  %7229 = vrot.lane.b32.xlu0 %v8517_v27, %s12097_s11  ;;  %v8749_v53 = vpop.permute.xlu1 %7084  ;;  %v297_v55 = vsel %vm11975_vm1, %v294_v48, 0.0  ;;  %v6922_v27 = vunpack.i.h.bf16 %v6920_v39 }
  0xda   : > { %v295_v52 = vmul.f32 %v293_v45, %v291_v12  ;;  %v579_v15 = vsel %vm577_vm2, %v6922_v27, %v6926_v58  ;;  %v578_v39 = vsel %vm577_vm2, %v6921_v62, %v6922_v27  ;;  %v8791_v12 = vpack.i.bf16 %v1382_v23, %v1381_v19  ;;  %v8804_v27 = vld [vmem:[%s8473_s26 + $0x8] sm:$0xff] }
  0xdb   : > { %v8751_v54 = vpop.permute.xlu0 %6929 }
  0xdc   : > { %v298_v56 = vsel %vm11975_vm1, %v295_v52, 0.0  ;;  %7239 = vrot.lane.b32.xlu0 %v8483_v7, %s8379_s12  ;;  %v8773_v9 = vpop.permute.xlu1 %7094  ;;  %v6931_v36 = vunpack.i.l.bf16 %v8751_v54  ;;  %v11887_v42 = vunpack.i.h.bf16 %v8751_v54  ;;  %v587_v52 = vsel %vm577_vm2, %v6946_v2, %v6947_v14 }
  0xdd   : > { %v299_v59 = vadd.f32 %v298_v56, %v297_v55  ;;  %12152 = vst [vmem:[#allocation6_spill] sm:$0xff] %v8773_v9  ;;  %v8801_v56 = vld [vmem:[%s8473_s26] sm:$0xff] }
  0xde   : > { %v8796_v21 = vsel %vm577_vm2, %v6931_v36, %v11887_v42  ;;  %v581_v62 = vsel %vm577_vm2, %v6927_v11, %v6931_v36 }
  0xdf   : > { %v300_v0 = vrot.slane %v299_v59, 4  ;;  %v6940_v1 = vpop.permute.xlu0 %6939  ;;  %12153 = vst [vmem:[#allocation7_spill] sm:$0xff] %v8796_v21 }
  0xe0   : > { %v6942_v4 = vunpack.i.h.bf16 %v6940_v1  ;;  %v6941_v7 = vunpack.i.l.bf16 %v6940_v1  ;;  %7249 = vrot.lane.b32.xlu0 %v8757_v57, %s8379_s12  ;;  %v8813_v1 = vpop.permute.xlu1 %7104 }
  0xe1   : > { %v301_v18 = vadd.f32 %v300_v0, %v299_v59 }
  0xe2   : > { %v586_v37 = vsel %vm577_vm2, %v6942_v4, %v6946_v2  ;;  %v585_v41 = vsel %vm577_vm2, %v6941_v7, %v6942_v4  ;;  %v6335_v7 = vpack.c.bf16 %v587_v52, %v580_v51 }
  0xe3   : > { %v8785_v17 = vpop.permute.xlu0 %6949  ;;  %v6225_v28 = vpack.c.bf16 %v586_v37, %v579_v15  ;;  %v6227_v44 = vpack.c.bf16 %v585_v41, %v578_v39  ;;  %v302_v45 = vrot.slane %v301_v18, 2  ;;  %v8819_v15 = vpack.i.bf16 %v8804_v27, %v8801_v56  ;;  %v1589_v39 = vld [vmem:[%s8473_s26 + $0x30] sm:$0xff]  ;;  %v1590_v41 = vld [vmem:[%s8473_s26 + $0x38] sm:$0xff] }
  0xe4   : > { %v11889_v47 = vunpack.i.h.bf16 %v8785_v17  ;;  %v6951_v48 = vunpack.i.l.bf16 %v8785_v17  ;;  %7259 = vrot.lane.b32.xlu0 %v8771_v8, %s8379_s12  ;;  %v8827_v36 = vpop.permute.xlu1 %7114 }
  0xe5   : > { %6226 = vmatprep.subr.bf16.mxu0 %v6225_v28  ;;  %v303_v55 = vadd.f32 %v302_v45, %v301_v18  ;;  %12155 = vst [vmem:[#allocation9_spill] sm:$0xff] %v8827_v36  ;;  %v6966_v28 = vunpack.i.l.bf16 %v8673_v30  ;;  %v6986_v45 = vunpack.i.l.bf16 %v8685_v32  ;;  %v365_v36 = vld [vmem:[%s11881_s2 + $0x18] sm:$0xff] }
  0xe6   : > { %v8809_v59 = vsel %vm577_vm2, %v6951_v48, %v11889_v47  ;;  %6228 = vmatpush1.bf16.msra.mxu0 %v6227_v44  ;;  %v588_v0 = vsel %vm577_vm2, %v6947_v14, %v6951_v48 }
  0xe7   : > { %12154 = vst [vmem:[#allocation8_spill] sm:$0xff] %v8809_v59  ;;  %v6960_v58 = vpop.permute.xlu0 %6959  ;;  %v6333_v4 = vpack.c.bf16 %v588_v0, %v581_v62  ;;  %v304_v2 = vrot.slane %v303_v55, 1  ;;  %v6987_v62 = vunpack.i.h.bf16 %v8685_v32  ;;  %v8382_v0 = vmov 1   ;;  %v8851_v32 = vld [vmem:[%s8473_s26 + $0x60] sm:$0xff] }
  0xe8   : > { %7269 = vrot.lane.b32.xlu0 %v8791_v12, %s8379_s12  ;;  %v6961_v23 = vunpack.i.l.bf16 %v6960_v58  ;;  %v6962_v37 = vunpack.i.h.bf16 %v6960_v58 }
  0xe9   : > { %6334 = vmatprep.subr.bf16.mxu1 %v6333_v4  ;;  %v305_v14 = vadd.f32 %v304_v2, %v303_v55  ;;  %v6967_v55 = vunpack.i.h.bf16 %v8673_v30  ;;  %v8839_v4 = vpack.i.bf16 %v1590_v41, %v1589_v39  ;;  %v8848_v30 = vld [vmem:[%s8473_s26 + $0x58] sm:$0xff] }
  0xea   : > { %6336 = vmatpush1.bf16.msra.mxu1 %v6335_v7  ;;  %v685_v52 = vsel %vm12033_vm3, %v6961_v23, %v6962_v37  ;;  %v686_v58 = vsel %vm12033_vm3, %v6962_v37, %v6966_v28 }
  0xeb   : > { %v8823_v18 = vpop.permute.xlu0 %6969  ;;  %v306_v19 = vmax.f32 %v305_v14, 0.0 }
  0xec   : > { %7279 = vrot.lane.b32.xlu0 %v8819_v15, %s8380_s13  ;;  %v11886_v2 = vunpack.i.h.bf16 %v8823_v18  ;;  %v6971_v7 = vunpack.i.l.bf16 %v8823_v18 }
  0xed   : > { %310 = vperm.xlu1 %7333, %v306_v19  }
  0xee   : > { %v8858_v41 = vsel %vm12033_vm3, %v6971_v7, %v11886_v2  ;;  %v1598_v2 = vld [vmem:[%s8473_s26 + $0x80] sm:$0xff] }
  0xef   : > { %v6980_v44 = vpop.permute.xlu0 %6979  ;;  %12156 = vst [vmem:[#allocation10_spill] sm:$0xff] %v8858_v41 }
  0xf0   : > { %v6982_v48 = vunpack.i.h.bf16 %v6980_v44  ;;  %v6981_v51 = vunpack.i.l.bf16 %v6980_v44  ;;  %7289 = vrot.lane.b32.xlu0 %v8757_v57, %s8380_s13  ;;  %v8844_v44 = vpop.permute.xlu1 %7124 }
  0xf1   : > { %7334 = vset.pattern.permute.xlu1 %v8382_v0 }
  0xf2   : > { %316 = vperm.xlu1 %7334, %v306_v19   ;;  %v693_v14 = vsel %vm12033_vm3, %v6982_v48, %v6986_v45  ;;  %v692_v23 = vsel %vm12033_vm3, %v6981_v51, %v6982_v48  ;;  %v687_v48 = vsel %vm12033_vm3, %v6966_v28, %v6967_v55  ;;  %v694_v51 = vsel %vm12033_vm3, %v6986_v45, %v6987_v62  ;;  %v1597_v45 = vld [vmem:[%s8473_s26 + $0x78] sm:$0xff] }
  0xf3   : > { %v8853_v0 = vpop.permute.xlu0 %6989  ;;  %v6229_v37 = vpack.c.bf16 %v693_v14, %v686_v58  ;;  %v6231_v39 = vpack.c.bf16 %v692_v23, %v685_v52  ;;  %v8868_v52 = vpack.i.bf16 %v8851_v32, %v8848_v30  ;;  %v688_v14 = vsel %vm12033_vm3, %v6967_v55, %v6971_v7 }
  0xf4   : > { %v11888_v19 = vunpack.i.h.bf16 %v8853_v0  ;;  %v6991_v11 = vunpack.i.l.bf16 %v8853_v0  ;;  %7299 = vrot.lane.b32.xlu0 %v8771_v8, %s8380_s13  ;;  %v6339_v42 = vpack.c.bf16 %v694_v51, %v687_v48  ;;  %v8886_v55 = vpop.permute.xlu1 %7134  ;;  %v7006_v48 = vunpack.i.l.bf16 %v8697_v34 }
  0xf5   : > { %6230 = vmatprep.subr.bf16.mxu0 %v6229_v37  ;;  %12158 = vst [vmem:[#allocation12_spill] sm:$0xff] %v8886_v55  ;;  %v7026_v51 = vunpack.i.l.bf16 %v8711_v3 }
  0xf6   : > { %v8873_v58 = vsel %vm12033_vm3, %v6991_v11, %v11888_v19  ;;  %v695_v23 = vsel %vm12033_vm3, %v6987_v62, %v6991_v11  ;;  %7336 = vrot.lane.b32.xlu1 %v8839_v4, %s11982_s14  ;;  %6232 = vmatpush1.bf16.msra.mxu0 %v6231_v39  ;;  %v8890_v11 = vpack.i.bf16 %v1598_v2, %v1597_v45 }
  0xf7   : > { %12157 = vst [vmem:[#allocation11_spill] sm:$0xff] %v8873_v58  ;;  %v7000_v28 = vpop.permute.xlu0 %6999  ;;  %v6337_v37 = vpack.c.bf16 %v695_v23, %v688_v14  ;;  %8356 = vset.pattern.permute.xlu1 %v8375_v46 }
  0xf8   : > { %7309 = vrot.lane.b32.xlu0 %v8791_v12, %s8380_s13  ;;  %v7001_v7 = vunpack.i.l.bf16 %v7000_v28  ;;  %v7002_v46 = vunpack.i.h.bf16 %v7000_v28  ;;  %v8896_v39 = vpop.permute.xlu1 %7144  ;;  %v7007_v28 = vunpack.i.h.bf16 %v8697_v34  ;;  %s8398_s13 = smov 45  }
  0xf9   : > { %6338 = vmatprep.subr.bf16.mxu1 %v6337_v37  ;;  %v7027_v37 = vunpack.i.h.bf16 %v8711_v3 }
  0xfa   : > { %6340 = vmatpush1.bf16.msra.mxu1 %v6339_v42  ;;  %7346 = vrot.lane.b32.xlu1 %v8868_v52, %s11982_s14  ;;  %v792_v23 = vsel %vm791_vm4, %v7001_v7, %v7002_v46  ;;  %v793_v45 = vsel %vm791_vm4, %v7002_v46, %v7006_v48 }
  0xfb   : > { %v8892_v62 = vpop.permute.xlu0 %7009 }
  0xfc   : > { %12159 = vst [vmem:[#allocation13_spill] sm:$0xff] %v8892_v62  ;;  %7319 = vrot.lane.b32.xlu0 %v8819_v15, %s11982_s14  ;;  %v11892_v24 = vunpack.i.h.bf16 %v8892_v62  ;;  %v7011_v19 = vunpack.i.l.bf16 %v8892_v62  ;;  %v2346_v62 = vld [vmem:[%s8473_s26 + $0x88] sm:$0xff] }
  0xfe   : > { %7356 = vrot.lane.b32.xlu1 %v8890_v11, %s11982_s14  ;;  %v8919_v3 = vsel %vm791_vm4, %v7011_v19, %v11892_v24 }
  0xff   : > { %v7020_v42 = vpop.permute.xlu0 %7019  ;;  %12160 = vst [vmem:[#allocation14_spill] sm:$0xff] %v8919_v3 }
 0x100   : > { %v7022_v2 = vunpack.i.h.bf16 %v7020_v42  ;;  %v7021_v14 = vunpack.i.l.bf16 %v7020_v42  ;;  %7329 = vrot.lane.b32.xlu0 %v8757_v57, %s11982_s14 }
 0x102   : > { %v800_v47 = vsel %vm791_vm4, %v7022_v2, %v7026_v51  ;;  %v799_v5 = vsel %vm791_vm4, %v7021_v14, %v7022_v2  ;;  %7366 = vrot.lane.b32.xlu1 %v8715_v38, %s12095_s19  ;;  %v8925_v2 = vpop.permute.xlu1 %7154  ;;  %v794_v14 = vsel %vm791_vm4, %v7006_v48, %v7007_v28 }
 0x103   : > { %v8914_v42 = vpop.permute.xlu0 %7029  ;;  %v6233_v7 = vpack.c.bf16 %v800_v47, %v793_v45  ;;  %v6235_v34 = vpack.c.bf16 %v799_v5, %v792_v23  ;;  %12161 = vst [vmem:[#allocation15_spill] sm:$0xff] %v8925_v2  ;;  %v801_v47 = vsel %vm791_vm4, %v7026_v51, %v7027_v37  ;;  %v795_v23 = vsel %vm791_vm4, %v7007_v28, %v7011_v19 }
 0x104   : > { %v11894_v46 = vunpack.i.h.bf16 %v8914_v42  ;;  %v7031_v13 = vunpack.i.l.bf16 %v8914_v42  ;;  %7341 = vrot.lane.b32.xlu0 %v8771_v8, %s11982_s14 }
 0x105   : > { %6234 = vmatprep.subr.bf16.mxu0 %v6233_v7  ;;  %v6343_v7 = vpack.c.bf16 %v801_v47, %v794_v14 }
 0x106   : > { %v8932_v5 = vsel %vm791_vm4, %v7031_v13, %v11894_v46  ;;  %v802_v45 = vsel %vm791_vm4, %v7027_v37, %v7031_v13  ;;  %6236 = vmatpush1.bf16.msra.mxu0 %v6235_v34  ;;  %7376 = vrot.lane.b32.xlu1 %v8839_v4, %s12095_s19  ;;  %v8942_v51 = vpop.permute.xlu1 %7164  ;;  %v7046_v37 = vunpack.i.l.bf16 %v8725_v20 }
 0x107   : > { %12162 = vst [vmem:[#allocation16_spill] sm:$0xff] %v8932_v5  ;;  %v7040_v24 = vpop.permute.xlu0 %7039  ;;  %v6341_v2 = vpack.c.bf16 %v802_v45, %v795_v23 }
 0x108   : > { %7351 = vrot.lane.b32.xlu0 %v8791_v12, %s11982_s14  ;;  %v7041_v19 = vunpack.i.l.bf16 %v7040_v24  ;;  %v7042_v28 = vunpack.i.h.bf16 %v7040_v24  ;;  %v7047_v24 = vunpack.i.h.bf16 %v8725_v20  ;;  %s8413_s14 = smov 90  }
 0x109   : > { %6342 = vmatprep.subr.bf16.mxu1 %v6341_v2  ;;  %v7066_v2 = vunpack.i.l.bf16 %v8733_v40 }
 0x10a   : > { %6344 = vmatpush1.bf16.msra.mxu1 %v6343_v7  ;;  %7386 = vrot.lane.b32.xlu1 %v8868_v52, %s12095_s19  ;;  %v8954_v23 = vpop.permute.xlu1 %7174  ;;  %v899_v45 = vsel %vm898_vm5, %v7041_v19, %v7042_v28  ;;  %v7067_v7 = vunpack.i.h.bf16 %v8733_v40  ;;  %v900_v48 = vsel %vm898_vm5, %v7042_v28, %v7046_v37 }
 0x10b   : > { %v8946_v13 = vpop.permute.xlu0 %7049  ;;  %12164 = vst [vmem:[#allocation18_spill] sm:$0xff] %v8954_v23 }
 0x10c   : > { %12163 = vst [vmem:[#allocation17_spill] sm:$0xff] %v8946_v13  ;;  %7361 = vrot.lane.b32.xlu0 %v8819_v15, %s12095_s19  ;;  %v11899_v46 = vunpack.i.h.bf16 %v8946_v13  ;;  %v7051_v3 = vunpack.i.l.bf16 %v8946_v13 }
 0x10e   : > { %7396 = vrot.lane.b32.xlu1 %v8890_v11, %s12095_s19  ;;  %v8973_v40 = vsel %vm898_vm5, %v7051_v3, %v11899_v46 }
 0x10f   : > { %v7060_v34 = vpop.permute.xlu0 %7059  ;;  %12166 = vst [vmem:[#allocation20_spill] sm:$0xff] %v8973_v40 }
 0x110   : > { %v7062_v14 = vunpack.i.h.bf16 %v7060_v34  ;;  %v7061_v47 = vunpack.i.l.bf16 %v7060_v34  ;;  %7371 = vrot.lane.b32.xlu0 %v8757_v57, %s12095_s19 }
 0x112   : > { %v907_v5 = vsel %vm898_vm5, %v7062_v14, %v7066_v2  ;;  %v906_v34 = vsel %vm898_vm5, %v7061_v47, %v7062_v14  ;;  %7406 = vrot.lane.b32.xlu1 %v8715_v38, %s8384_s20  ;;  %v901_v14 = vsel %vm898_vm5, %v7046_v37, %v7047_v24  ;;  %v908_v47 = vsel %vm898_vm5, %v7066_v2, %v7067_v7 }
 0x113   : > { %v8968_v19 = vpop.permute.xlu0 %7069  ;;  %v6237_v23 = vpack.c.bf16 %v907_v5, %v900_v48  ;;  %v6239_v20 = vpack.c.bf16 %v906_v34, %v899_v45  ;;  %v902_v48 = vsel %vm898_vm5, %v7047_v24, %v7051_v3  ;;  %v8988_v34 = vpop.permute.xlu1 %7184  ;;  %v6347_v2 = vpack.c.bf16 %v908_v47, %v901_v14 }
 0x114   : > { %12165 = vst [vmem:[#allocation19_spill] sm:$0xff] %v8968_v19  ;;  %v11900_v28 = vunpack.i.h.bf16 %v8968_v19  ;;  %v7071_v55 = vunpack.i.l.bf16 %v8968_v19  ;;  %7381 = vrot.lane.b32.xlu0 %v8771_v8, %s12095_s19  ;;  %v7106_v14 = vunpack.i.l.bf16 %v8813_v1 }
 0x115   : > { %6238 = vmatprep.subr.bf16.mxu0 %v6237_v23 }
 0x116   : > { %v8984_v5 = vsel %vm898_vm5, %v7071_v55, %v11900_v28  ;;  %v909_v45 = vsel %vm898_vm5, %v7067_v7, %v7071_v55  ;;  %6240 = vmatpush1.bf16.msra.mxu0 %v6239_v20  ;;  %7416 = vrot.lane.b32.xlu1 %v8839_v4, %s8384_s20  ;;  %v7086_v20 = vunpack.i.l.bf16 %v8749_v53 }
 0x117   : > { %12167 = vst [vmem:[#allocation21_spill] sm:$0xff] %v8984_v5  ;;  %v7080_v23 = vpop.permute.xlu0 %7079  ;;  %v6345_v46 = vpack.c.bf16 %v909_v45, %v902_v48  ;;  %v9000_v24 = vpop.permute.xlu1 %7194 }
 0x118   : > { %7391 = vrot.lane.b32.xlu0 %v8791_v12, %s12095_s19  ;;  %v7081_v3 = vunpack.i.l.bf16 %v7080_v23  ;;  %12169 = vst [vmem:[#allocation23_spill] sm:$0xff] %v9000_v24  ;;  %v7082_v7 = vunpack.i.h.bf16 %v7080_v23  ;;  %v7107_v23 = vunpack.i.h.bf16 %v8813_v1 }
 0x119   : > { %6346 = vmatprep.subr.bf16.mxu1 %v6345_v46 }
 0x11a   : > { %6348 = vmatpush1.bf16.msra.mxu1 %v6347_v2  ;;  %7426 = vrot.lane.b32.xlu1 %v8868_v52, %s8384_s20  ;;  %v1006_v45 = vsel %vm1005_vm6, %v7081_v3, %v7082_v7  ;;  %v7087_v2 = vunpack.i.h.bf16 %v8749_v53  ;;  %v1007_v37 = vsel %vm1005_vm6, %v7082_v7, %v7086_v20 }
 0x11b   : > { %v8998_v55 = vpop.permute.xlu0 %7089  ;;  %v9016_v40 = vpop.permute.xlu1 %7204 }
 0x11c   : > { %12168 = vst [vmem:[#allocation22_spill] sm:$0xff] %v8998_v55  ;;  %7401 = vrot.lane.b32.xlu0 %v8819_v15, %s8384_s20  ;;  %v7091_v28 = vunpack.i.l.bf16 %v8998_v55 }
 0x11e   : > { %7436 = vrot.lane.b32.xlu1 %v8890_v11, %s8384_s20  ;;  %v11905_v11 = vunpack.i.h.bf16 %v8998_v55 }
 0x11f   : > { %v7100_v46 = vpop.permute.xlu0 %7099 }
 0x120   : > { %v7102_v47 = vunpack.i.h.bf16 %v7100_v46  ;;  %v7101_v48 = vunpack.i.l.bf16 %v7100_v46  ;;  %7411 = vrot.lane.b32.xlu0 %v8757_v57, %s8384_s20  ;;  %v9027_v7 = vsel %vm1005_vm6, %v7091_v28, %v11905_v11 }
 0x121   : > { %12171 = vst [vmem:[#allocation25_spill] sm:$0xff] %v9027_v7 }
 0x122   : > { %v1014_v5 = vsel %vm1005_vm6, %v7102_v47, %v7106_v14  ;;  %v1013_v46 = vsel %vm1005_vm6, %v7101_v48, %v7102_v47  ;;  %7446 = vrot.lane.b32.xlu1 %v8715_v38, %s8385_s23  ;;  %v1008_v47 = vsel %vm1005_vm6, %v7086_v20, %v7087_v2  ;;  %v1015_v38 = vsel %vm1005_vm6, %v7106_v14, %v7107_v23 }
 0x123   : > { %v9022_v3 = vpop.permute.xlu0 %7109  ;;  %v6241_v53 = vpack.c.bf16 %v1014_v5, %v1007_v37  ;;  %v6243_v1 = vpack.c.bf16 %v1013_v46, %v1006_v45  ;;  %v7465_v5 = vpack.i.bf16 %v8851_v32, %v8761_v60  ;;  %v1009_v48 = vsel %vm1005_vm6, %v7087_v2, %v7091_v28  ;;  %v9048_v60 = vpop.permute.xlu1 %7214 }
 0x124   : > { %12170 = vst [vmem:[#allocation24_spill] sm:$0xff] %v9022_v3  ;;  %v11906_v24 = vunpack.i.h.bf16 %v9022_v3  ;;  %v7111_v9 = vunpack.i.l.bf16 %v9022_v3  ;;  %7421 = vrot.lane.b32.xlu0 %v8771_v8, %s8384_s20  ;;  %12173 = vst [vmem:[#allocation27_spill] sm:$0xff] %v9048_v60  ;;  %v6351_v32 = vpack.c.bf16 %v1015_v38, %v1008_v47  ;;  %v7206_v60 = vunpack.i.l.bf16 %v9016_v40 }
 0x125   : > { %6242 = vmatprep.subr.bf16.mxu0 %v6241_v53  ;;  %v7126_v53 = vunpack.i.l.bf16 %v8844_v44 }
 0x126   : > { %v9040_v37 = vsel %vm1005_vm6, %v7111_v9, %v11906_v24  ;;  %v1016_v45 = vsel %vm1005_vm6, %v7107_v23, %v7111_v9  ;;  %6244 = vmatpush1.bf16.msra.mxu0 %v6243_v1  ;;  %7456 = vrot.lane.b32.xlu1 %v8839_v4, %s8385_s23  ;;  %v7460_v4 = vpack.i.bf16 %v8848_v30, %v8764_v61  ;;  %v2012_v23 = vld [vmem:[%s8473_s26 + $0x10] sm:$0xff]  ;;  %v7146_v1 = vunpack.i.l.bf16 %v8896_v39 }
 0x127   : > { %12172 = vst [vmem:[#allocation26_spill] sm:$0xff] %v9040_v37  ;;  %v7120_v8 = vpop.permute.xlu0 %7119  ;;  %v6349_v20 = vpack.c.bf16 %v1016_v45, %v1009_v48  ;;  %v9060_v46 = vpop.permute.xlu1 %7224  ;;  %v7470_v61 = vpack.i.bf16 %v2012_v23, %v8804_v27  ;;  %v2018_v48 = vld [vmem:[%s8473_s26 + $0x48] sm:$0xff]  ;;  %v7127_v45 = vunpack.i.h.bf16 %v8844_v44 }
 0x128   : > { %7431 = vrot.lane.b32.xlu0 %v8791_v12, %s8384_s20  ;;  %v7121_v28 = vunpack.i.l.bf16 %v7120_v8  ;;  %v7122_v2 = vunpack.i.h.bf16 %v7120_v8  ;;  %v2117_v12 = vld [vmem:[%s8473_s26] sm:$0xff]  ;;  %v7147_v8 = vunpack.i.h.bf16 %v8896_v39 }
 0x129   : > { %6350 = vmatprep.subr.bf16.mxu1 %v6349_v20 }
 0x12a   : > { %6352 = vmatpush1.bf16.msra.mxu1 %v6351_v32  ;;  %7466 = vrot.lane.b32.xlu1 %v7465_v5, %s8385_s23  ;;  %v1113_v5 = vsel %vm12001_vm7, %v7121_v28, %v7122_v2  ;;  %v1114_v20 = vsel %vm12001_vm7, %v7122_v2, %v7126_v53  ;;  %v7495_v32 = vpack.i.bf16 %v2018_v48, %v2117_v12 }
 0x12b   : > { %v9053_v9 = vpop.permute.xlu0 %7129  ;;  %v9086_v2 = vpop.permute.xlu1 %7234 }
 0x12c   : > { %12174 = vst [vmem:[#allocation28_spill] sm:$0xff] %v9053_v9  ;;  %7441 = vrot.lane.b32.xlu0 %v8819_v15, %s8385_s23  ;;  %v11907_v14 = vunpack.i.h.bf16 %v9053_v9  ;;  %v7131_v11 = vunpack.i.l.bf16 %v9053_v9  ;;  %12177 = vst [vmem:[#allocation31_spill] sm:$0xff] %v9086_v2 }
 0x12e   : > { %7476 = vrot.lane.b32.xlu1 %v7460_v4, %s8386_s24  ;;  %v9084_v39 = vsel %vm12001_vm7, %v7131_v11, %v11907_v14  ;;  %v9106_v14 = vld [vmem:[%s8473_s26 + $0x50] sm:$0xff] }
 0x12f   : > { %v7140_v47 = vpop.permute.xlu0 %7139  ;;  %12176 = vst [vmem:[#allocation30_spill] sm:$0xff] %v9084_v39 }
 0x130   : > { %v7142_v38 = vunpack.i.h.bf16 %v7140_v47  ;;  %v7141_v15 = vunpack.i.l.bf16 %v7140_v47  ;;  %7451 = vrot.lane.b32.xlu0 %v8757_v57, %s8385_s23 }
 0x132   : > { %v1121_v47 = vsel %vm12001_vm7, %v7142_v38, %v7146_v1  ;;  %v1120_v28 = vsel %vm12001_vm7, %v7141_v15, %v7142_v38  ;;  %7486 = vrot.lane.b32.xlu1 %v7470_v61, %s8387_s25  ;;  %v1115_v38 = vsel %vm12001_vm7, %v7126_v53, %v7127_v45  ;;  %v1122_v15 = vsel %vm12001_vm7, %v7146_v1, %v7147_v8 }
 0x133   : > { %v9079_v57 = vpop.permute.xlu0 %7149  ;;  %v6245_v27 = vpack.c.bf16 %v1121_v47, %v1114_v20  ;;  %v6247_v44 = vpack.c.bf16 %v1120_v28, %v1113_v5  ;;  %v1116_v20 = vsel %vm12001_vm7, %v7127_v45, %v7131_v11  ;;  %v6355_v53 = vpack.c.bf16 %v1122_v15, %v1115_v38  ;;  %v9111_v11 = vpop.permute.xlu1 %7244 }
 0x134   : > { %12175 = vst [vmem:[#allocation29_spill] sm:$0xff] %v9079_v57  ;;  %v11908_v12 = vunpack.i.h.bf16 %v9079_v57  ;;  %v7151_v24 = vunpack.i.l.bf16 %v9079_v57  ;;  %7461 = vrot.lane.b32.xlu0 %v7460_v4, %s8385_s23  ;;  %v7480_v1 = vpack.i.bf16 %v2018_v48, %v8801_v56  ;;  %v7490_v56 = vpack.i.bf16 %v8848_v30, %v9106_v14 }
 0x135   : > { %6246 = vmatprep.subr.bf16.mxu0 %v6245_v27 }
 0x136   : > { %v9096_v5 = vsel %vm12001_vm7, %v7151_v24, %v11908_v12  ;;  %v1123_v47 = vsel %vm12001_vm7, %v7147_v8, %v7151_v24  ;;  %6248 = vmatpush1.bf16.msra.mxu0 %v6247_v44  ;;  %7496 = vrot.lane.b32.xlu1 %v7495_v32, %s8387_s25  ;;  %v9109_v12 = vld [vmem:[%s8473_s26 + $0x18] sm:$0xff]  ;;  %v7166_v8 = vunpack.i.l.bf16 %v8942_v51  ;;  %v7186_v44 = vunpack.i.l.bf16 %v8988_v34 }
 0x137   : > { %12178 = vst [vmem:[#allocation32_spill] sm:$0xff] %v9096_v5  ;;  %v7160_v4 = vpop.permute.xlu0 %7159  ;;  %v6353_v28 = vpack.c.bf16 %v1123_v47, %v1116_v20  ;;  %v9127_v38 = vpop.permute.xlu1 %7254  ;;  %v7187_v47 = vunpack.i.h.bf16 %v8988_v34  ;;  %vm12003_vm7 = vcmask 359424  }
 0x138   : > { %7471 = vrot.lane.b32.xlu0 %v7470_v61, %s8386_s24  ;;  %v7161_v45 = vunpack.i.l.bf16 %v7160_v4  ;;  %v9121_v61 = vpack.i.bf16 %v9109_v12, %v2012_v23  ;;  %v7162_v48 = vunpack.i.h.bf16 %v7160_v4  ;;  %12180 = vst [vmem:[#allocation34_spill] sm:$0xff] %v9127_v38  ;;  %v7167_v23 = vunpack.i.h.bf16 %v8942_v51 }
 0x139   : > { %6354 = vmatprep.subr.bf16.mxu1 %v6353_v28 }
 0x13a   : > { %6356 = vmatpush1.bf16.msra.mxu1 %v6355_v53  ;;  %7506 = vrot.lane.b32.xlu1 %v8868_v52, %s8388_s28  ;;  %v1220_v30 = vsel %vm11997_vm8, %v7161_v45, %v7162_v48  ;;  %v1221_v4 = vsel %vm11997_vm8, %v7162_v48, %v7166_v8  ;;  %v1222_v48 = vsel %vm11997_vm8, %v7166_v8, %v7167_v23 }
 0x13b   : > { %v9115_v24 = vpop.permute.xlu0 %7169 }
 0x13c   : > { %12179 = vst [vmem:[#allocation33_spill] sm:$0xff] %v9115_v24  ;;  %7481 = vrot.lane.b32.xlu0 %v7480_v1, %s8386_s24  ;;  %v11910_v28 = vunpack.i.h.bf16 %v9115_v24  ;;  %v7171_v53 = vunpack.i.l.bf16 %v9115_v24 }
 0x13e   : > { %7516 = vrot.lane.b32.xlu1 %v9121_v61, %s8389_s7  ;;  %v9143_v51 = vsel %vm11997_vm8, %v7171_v53, %v11910_v28 }
 0x13f   : > { %v7180_v32 = vpop.permute.xlu0 %7179  ;;  %12182 = vst [vmem:[#allocation36_spill] sm:$0xff] %v9143_v51 }
 0x140   : > { %v7182_v15 = vunpack.i.h.bf16 %v7180_v32  ;;  %v7181_v20 = vunpack.i.l.bf16 %v7180_v32  ;;  %7491 = vrot.lane.b32.xlu0 %v7490_v56, %s8387_s25 }
 0x142   : > { %v1228_v1 = vsel %vm11997_vm8, %v7182_v15, %v7186_v44  ;;  %v1227_v27 = vsel %vm11997_vm8, %v7181_v20, %v7182_v15  ;;  %v1229_v15 = vsel %vm11997_vm8, %v7186_v44, %v7187_v47  ;;  %v9151_v20 = vpop.permute.xlu1 %7264 }
 0x143   : > { %v9138_v38 = vpop.permute.xlu0 %7189  ;;  %v6249_v32 = vpack.c.bf16 %v1228_v1, %v1221_v4  ;;  %v6251_v45 = vpack.c.bf16 %v1227_v27, %v1220_v30  ;;  %v1223_v30 = vsel %vm11997_vm8, %v7167_v23, %v7171_v53  ;;  %v6359_v8 = vpack.c.bf16 %v1229_v15, %v1222_v48 }
 0x144   : > { %12181 = vst [vmem:[#allocation35_spill] sm:$0xff] %v9138_v38  ;;  %v11913_v34 = vunpack.i.h.bf16 %v9138_v38  ;;  %v7191_v56 = vunpack.i.l.bf16 %v9138_v38  ;;  %7501 = vrot.lane.b32.xlu0 %v9121_v61, %s8388_s28  ;;  %v7207_v48 = vunpack.i.h.bf16 %v9016_v40 }
 0x145   : > { %6250 = vmatprep.subr.bf16.mxu0 %v6249_v32 }
 0x146   : > { %v9156_v27 = vsel %vm11997_vm8, %v7191_v56, %v11913_v34  ;;  %v1230_v4 = vsel %vm11997_vm8, %v7187_v47, %v7191_v56  ;;  %6252 = vmatpush1.bf16.msra.mxu0 %v6251_v45  ;;  %v9164_v39 = vpop.permute.xlu1 %7274  ;;  %v7226_v47 = vunpack.i.l.bf16 %v9060_v46  ;;  %vm12002_vm8 = vcmask 375808  }
 0x147   : > { %12183 = vst [vmem:[#allocation37_spill] sm:$0xff] %v9156_v27  ;;  %v7200_v1 = vpop.permute.xlu0 %7199  ;;  %v6357_v28 = vpack.c.bf16 %v1230_v4, %v1223_v30  ;;  %12185 = vst [vmem:[#allocation39_spill] sm:$0xff] %v9164_v39  ;;  %v1329_v27 = vsel %vm11980_vm9, %v7206_v60, %v7207_v48 }
 0x148   : > { %v7201_v5 = vunpack.i.l.bf16 %v7200_v1  ;;  %v7202_v34 = vunpack.i.h.bf16 %v7200_v1 }
 0x149   : > { %6358 = vmatprep.subr.bf16.mxu1 %v6357_v28  ;;  %v7227_v28 = vunpack.i.h.bf16 %v9060_v46 }
 0x14a   : > { %6360 = vmatpush1.bf16.msra.mxu1 %v6359_v8  ;;  %v1327_v56 = vsel %vm11980_vm9, %v7201_v5, %v7202_v34  ;;  %v1328_v15 = vsel %vm11980_vm9, %v7202_v34, %v7206_v60  ;;  %v9172_v30 = vpop.permute.xlu1 %7284 }
 0x14b   : > { %v9162_v44 = vpop.permute.xlu0 %7209  ;;  %v1336_v39 = vsel %vm11980_vm9, %v7226_v47, %v7227_v28 }
 0x14c   : > { %12184 = vst [vmem:[#allocation38_spill] sm:$0xff] %v9162_v44  ;;  %v11918_v4 = vunpack.i.h.bf16 %v9162_v44  ;;  %v7211_v1 = vunpack.i.l.bf16 %v9162_v44  ;;  %v6363_v60 = vpack.c.bf16 %v1336_v39, %v1329_v27  ;;  %v7247_v39 = vunpack.i.h.bf16 %v9111_v11 }
 0x14d   : > { %v7267_v27 = vunpack.i.h.bf16 %v9151_v20 }
 0x14e   : > { %v9183_v40 = vsel %vm11980_vm9, %v7211_v1, %v11918_v4 }
 0x14f   : > { %v7220_v23 = vpop.permute.xlu0 %7219  ;;  %12187 = vst [vmem:[#allocation41_spill] sm:$0xff] %v9183_v40 }
 0x150   : > { %v7222_v53 = vunpack.i.h.bf16 %v7220_v23  ;;  %v7221_v45 = vunpack.i.l.bf16 %v7220_v23 }
 0x152   : > { %v1335_v8 = vsel %vm11980_vm9, %v7222_v53, %v7226_v47  ;;  %v1334_v32 = vsel %vm11980_vm9, %v7221_v45, %v7222_v53 }
 0x153   : > { %v9178_v51 = vpop.permute.xlu0 %7229  ;;  %v6253_v23 = vpack.c.bf16 %v1335_v8, %v1328_v15  ;;  %v6255_v5 = vpack.c.bf16 %v1334_v32, %v1327_v56  ;;  %v1330_v32 = vsel %vm11980_vm9, %v7207_v48, %v7211_v1  ;;  %v7246_v48 = vunpack.i.l.bf16 %v9111_v11 }
 0x154   : > { %12186 = vst [vmem:[#allocation40_spill] sm:$0xff] %v9178_v51  ;;  %v11919_v46 = vunpack.i.h.bf16 %v9178_v51  ;;  %v7231_v34 = vunpack.i.l.bf16 %v9178_v51  ;;  %v7266_v1 = vunpack.i.l.bf16 %v9151_v20 }
 0x155   : > { %6254 = vmatprep.subr.bf16.mxu0 %v6253_v23  ;;  %v9198_v23 = vpop.permute.xlu1 %7294 }
 0x156   : > { %v9192_v53 = vsel %vm11980_vm9, %v7231_v34, %v11919_v46  ;;  %v1337_v45 = vsel %vm11980_vm9, %v7227_v28, %v7231_v34  ;;  %6256 = vmatpush1.bf16.msra.mxu0 %v6255_v5  ;;  %12189 = vst [vmem:[#allocation43_spill] sm:$0xff] %v9198_v23  ;;  %vm2181_vm9 = vcmask 48128  }
 0x157   : > { %12188 = vst [vmem:[#allocation42_spill] sm:$0xff] %v9192_v53  ;;  %v7240_v56 = vpop.permute.xlu0 %7239  ;;  %v6361_v15 = vpack.c.bf16 %v1337_v45, %v1330_v32 }
 0x158   : > { %v7241_v4 = vunpack.i.l.bf16 %v7240_v56  ;;  %v7242_v46 = vunpack.i.h.bf16 %v7240_v56 }
 0x159   : > { %6362 = vmatprep.subr.bf16.mxu1 %v6361_v15  ;;  %v9202_v44 = vpop.permute.xlu1 %7304 }
 0x15a   : > { %6364 = vmatpush1.bf16.msra.mxu1 %v6363_v60  ;;  %v1434_v32 = vsel %vm11971_vm10, %v7241_v4, %v7242_v46  ;;  %v1435_v45 = vsel %vm11971_vm10, %v7242_v46, %v7246_v48  ;;  %v1436_v46 = vsel %vm11971_vm10, %v7246_v48, %v7247_v39 }
 0x15b   : > { %v9200_v47 = vpop.permute.xlu0 %7249 }
 0x15c   : > { %12190 = vst [vmem:[#allocation44_spill] sm:$0xff] %v9200_v47  ;;  %v11924_v56 = vunpack.i.h.bf16 %v9200_v47  ;;  %v7251_v15 = vunpack.i.l.bf16 %v9200_v47 }
 0x15d   : > { %v9216_v23 = vpop.permute.xlu1 %7314 }
 0x15e   : > { %12192 = vst [vmem:[#allocation46_spill] sm:$0xff] %v9216_v23  ;;  %v9221_v11 = vsel %vm11971_vm10, %v7251_v15, %v11924_v56 }
 0x15f   : > { %v7260_v28 = vpop.permute.xlu0 %7259  ;;  %12193 = vst [vmem:[#allocation47_spill] sm:$0xff] %v9221_v11 }
 0x160   : > { %v7262_v5 = vunpack.i.h.bf16 %v7260_v28  ;;  %v7261_v34 = vunpack.i.l.bf16 %v7260_v28 }
 0x162   : > { %v1442_v60 = vsel %vm11971_vm10, %v7262_v5, %v7266_v1  ;;  %v1441_v8 = vsel %vm11971_vm10, %v7261_v34, %v7262_v5  ;;  %v1443_v5 = vsel %vm11971_vm10, %v7266_v1, %v7267_v27  ;;  %v1437_v34 = vsel %vm11971_vm10, %v7247_v39, %v7251_v15  ;;  %v307_v15 = vld [vmem:[%s11880_s1 + $0x10] sm:$0x1] }
 0x163   : > { %v9214_v40 = vpop.permute.xlu0 %7269  ;;  %v6257_v53 = vpack.c.bf16 %v1442_v60, %v1435_v45  ;;  %v6259_v28 = vpack.c.bf16 %v1441_v8, %v1434_v32  ;;  %v6367_v48 = vpack.c.bf16 %v1443_v5, %v1436_v46  ;;  %v7287_v39 = vunpack.i.h.bf16 %v9172_v30 }
 0x164   : > { %12191 = vst [vmem:[#allocation45_spill] sm:$0xff] %v9214_v40  ;;  %v11926_v20 = vunpack.i.h.bf16 %v9214_v40  ;;  %v7271_v4 = vunpack.i.l.bf16 %v9214_v40  ;;  %v7306_v46 = vunpack.i.l.bf16 %v9202_v44 }
 0x165   : > { %6258 = vmatprep.subr.bf16.mxu0 %v6257_v53  ;;  %v9236_v53 = vpop.permute.xlu1 %7324 }
 0x166   : > { %v9230_v8 = vsel %vm11971_vm10, %v7271_v4, %v11926_v20  ;;  %v1444_v32 = vsel %vm11971_vm10, %v7267_v27, %v7271_v4  ;;  %6260 = vmatpush1.bf16.msra.mxu0 %v6259_v28  ;;  %v7286_v27 = vunpack.i.l.bf16 %v9172_v30  ;;  %v314_v4 = vld [vmem:[%s11880_s1 + $0x11] sm:$0x1]  ;;  %vm356_vm10 = vcmask 654336  }
 0x167   : > { %12194 = vst [vmem:[#allocation48_spill] sm:$0xff] %v9230_v8  ;;  %v7280_v45 = vpop.permute.xlu0 %7279  ;;  %v6365_v60 = vpack.c.bf16 %v1444_v32, %v1437_v34 }
 0x168   : > { %v7281_v47 = vunpack.i.l.bf16 %v7280_v45  ;;  %v7282_v23 = vunpack.i.h.bf16 %v7280_v45  ;;  %v7307_v45 = vunpack.i.h.bf16 %v9202_v44 }
 0x169   : > { %6366 = vmatprep.subr.bf16.mxu1 %v6365_v60 }
 0x16a   : > { %6368 = vmatpush1.bf16.msra.mxu1 %v6367_v48  ;;  %v1541_v32 = vsel %vm11970_vm11, %v7281_v47, %v7282_v23  ;;  %v1542_v56 = vsel %vm11970_vm11, %v7282_v23, %v7286_v27 }
 0x16b   : > { %v9238_v1 = vpop.permute.xlu0 %7289 }
 0x16c   : > { %12195 = vst [vmem:[#allocation49_spill] sm:$0xff] %v9238_v1  ;;  %v311_v20 = vpop.permute.xlu1 %310  ;;  %v11935_v30 = vunpack.i.h.bf16 %v9238_v1  ;;  %v7291_v60 = vunpack.i.l.bf16 %v9238_v1 }
 0x16d   : > { %v313_v11 = vmul.f32 %v311_v20, %v307_v15 }
 0x16e   : > { %v9261_v44 = vsel %vm11970_vm11, %v7291_v60, %v11935_v30  ;;  %v7327_v30 = vunpack.i.h.bf16 %v9236_v53 }
 0x16f   : > { %v7300_v28 = vpop.permute.xlu0 %7299  ;;  %12197 = vst [vmem:[#allocation51_spill] sm:$0xff] %v9261_v44 }
 0x170   : > { %v7302_v5 = vunpack.i.h.bf16 %v7300_v28  ;;  %v7301_v34 = vunpack.i.l.bf16 %v7300_v28 }
 0x171   : > { %v317_v48 = vpop.permute.xlu1 %316 }
 0x172   : > { %v319_v8 = vmul.f32 %v317_v48, %v314_v4  ;;  %v1549_v40 = vsel %vm11970_vm11, %v7302_v5, %v7306_v46  ;;  %v1548_v51 = vsel %vm11970_vm11, %v7301_v34, %v7302_v5 }
 0x173   : > { %v9256_v24 = vpop.permute.xlu0 %7309  ;;  %v6261_v28 = vpack.c.bf16 %v1549_v40, %v1542_v56  ;;  %v6263_v7 = vpack.c.bf16 %v1548_v51, %v1541_v32  ;;  %v1543_v51 = vsel %vm11970_vm11, %v7286_v27, %v7287_v39  ;;  %v1550_v40 = vsel %vm11970_vm11, %v7306_v46, %v7307_v45 }
 0x174   : > { %12196 = vst [vmem:[#allocation50_spill] sm:$0xff] %v9256_v24  ;;  %v320_v47 = vadd.f32 %v319_v8, %v313_v11  ;;  %v11936_v37 = vunpack.i.h.bf16 %v9256_v24  ;;  %v7311_v23 = vunpack.i.l.bf16 %v9256_v24  ;;  %v1544_v11 = vsel %vm11970_vm11, %v7287_v39, %v7291_v60 }
 0x175   : > { %v9265_v20 = vpop.permute.xlu1 %7336  ;;  %6262 = vmatprep.subr.bf16.mxu0 %v6261_v28  ;;  %v6371_v48 = vpack.c.bf16 %v1550_v40, %v1543_v51 }
 0x176   : > { %12198 = vst [vmem:[#allocation52_spill] sm:$0xff] %v9265_v20  ;;  %v6171_v15 = vmul.f32 -1.442695, %v320_v47  ;;  %v9270_v4 = vsel %vm11970_vm11, %v7311_v23, %v11936_v37  ;;  %6264 = vmatpush1.bf16.msra.mxu0 %v6263_v7  ;;  %v1551_v8 = vsel %vm11970_vm11, %v7307_v45, %v7311_v23  ;;  %v7326_v7 = vunpack.i.l.bf16 %v9236_v53 }
 0x177   : > { %12199 = vst [vmem:[#allocation53_spill] sm:$0xff] %v9270_v4  ;;  %v7320_v56 = vpop.permute.xlu0 %7319  ;;  %v6369_v34 = vpack.c.bf16 %v1551_v8, %v1544_v11  ;;  %vm354_vm11 = vcmask 523264  }
 0x178   : > { %8357 = vpow2.f32 %v6171_v15  ;;  %v7321_v27 = vunpack.i.l.bf16 %v7320_v56  ;;  %v7322_v47 = vunpack.i.h.bf16 %v7320_v56 }
 0x179   : > { %v7347_v32 = vpop.permute.xlu1 %7346  ;;  %6370 = vmatprep.subr.bf16.mxu1 %v6369_v34 }
 0x17a   : > { %6372 = vmatpush1.bf16.msra.mxu1 %v6371_v48  ;;  %v7348_v45 = vunpack.i.l.bf16 %v7347_v32  ;;  %v1648_v15 = vsel %vm11969_vm12, %v7321_v27, %v7322_v47  ;;  %v7349_v11 = vunpack.i.h.bf16 %v7347_v32  ;;  %v1649_v51 = vsel %vm11969_vm12, %v7322_v47, %v7326_v7 }
 0x17b   : > { %v9278_v28 = vpop.permute.xlu0 %7329 }
 0x17c   : > { %12200 = vst [vmem:[#allocation54_spill] sm:$0xff] %v9278_v28  ;;  %v11939_v34 = vunpack.i.h.bf16 %v9278_v28  ;;  %v7331_v56 = vunpack.i.l.bf16 %v9278_v28 }
 0x17d   : > { %v9280_v46 = vpop.permute.xlu1 %7356 }
 0x17e   : > { %12201 = vst [vmem:[#allocation55_spill] sm:$0xff] %v9280_v46  ;;  %v9297_v47 = vsel %vm11969_vm12, %v7331_v56, %v11939_v34  ;;  %v366_v46 = vlaneseq }
 0x17f   : > { %v7342_v39 = vpop.permute.xlu0 %7341  ;;  %12203 = vst [vmem:[#allocation57_spill] sm:$0xff] %v9297_v47 }
 0x180   : > { %v7344_v60 = vunpack.i.h.bf16 %v7342_v39  ;;  %v7343_v23 = vunpack.i.l.bf16 %v7342_v39  ;;  %v9574_v2 = vshrl.u32 %v366_v46, 7 }
 0x181   : > { %v9285_v40 = vpop.permute.xlu1 %7366 }
 0x182   : > { %v8358_v8 = vpop.eup %8357  ;;  %v1656_v48 = vsel %vm11969_vm12, %v7344_v60, %v7348_v45  ;;  %v1655_v5 = vsel %vm11969_vm12, %v7343_v23, %v7344_v60  ;;  %v1657_v60 = vsel %vm11969_vm12, %v7348_v45, %v7349_v11  ;;  %12224 = vst [vmem:[#allocation75_spill] sm:$0xff] %v9574_v2  ;;  %v9583_v57 = vsub.s32 0, %v9574_v2 }
 0x183   : > { %v324_v37 = vadd.f32 1.0, %v8358_v8  ;;  %v9292_v39 = vpop.permute.xlu0 %7351  ;;  %v6265_v27 = vpack.c.bf16 %v1656_v48, %v1649_v51  ;;  %v6267_v32 = vpack.c.bf16 %v1655_v5, %v1648_v15  ;;  %v1651_v5 = vsel %vm11969_vm12, %v7327_v30, %v7331_v56  ;;  %v2224_v56 = vld [vmem:[%s8473_s26 + $0x8] sm:$0xff] }
 0x184   : > { %12202 = vst [vmem:[#allocation56_spill] sm:$0xff] %v9292_v39  ;;  %v11940_v44 = vunpack.i.h.bf16 %v9292_v39  ;;  %v7353_v4 = vunpack.i.l.bf16 %v9292_v39  ;;  %v1650_v8 = vsel %vm11969_vm12, %v7326_v7, %v7327_v30  ;;  %v9323_v7 = vpack.i.bf16 %v9106_v14, %v2224_v56  ;;  %12225 = vst [vmem:[#allocation76_spill] sm:$0xff] %v9583_v57 }
 0x185   : > { %8359 = vrcp.f32 %v324_v37  ;;  %6266 = vmatprep.subr.bf16.mxu0 %v6265_v27  ;;  %v9302_v23 = vpop.permute.xlu1 %7376  ;;  %v6375_v48 = vpack.c.bf16 %v1657_v60, %v1650_v8 }
 0x186   : > { %12204 = vst [vmem:[#allocation58_spill] sm:$0xff] %v9302_v23  ;;  %v9307_v53 = vsel %vm11969_vm12, %v7353_v4, %v11940_v44  ;;  %v1658_v15 = vsel %vm11969_vm12, %v7349_v11, %v7353_v4  ;;  %6268 = vmatpush1.bf16.msra.mxu0 %v6267_v32  ;;  %v7368_v44 = vunpack.i.l.bf16 %v9285_v40  ;;  %v7369_v32 = vunpack.i.h.bf16 %v9285_v40 }
 0x187   : > { %12205 = vst [vmem:[#allocation59_spill] sm:$0xff] %v9307_v53  ;;  %v6373_v51 = vpack.c.bf16 %v1658_v15, %v1651_v5  ;;  %v7362_v37 = vpop.permute.xlu0 %7361  ;;  %vm352_vm12 = vcmask 392192  }
 0x188   : > { %v7364_v34 = vunpack.i.h.bf16 %v7362_v37  ;;  %v7363_v23 = vunpack.i.l.bf16 %v7362_v37  ;;  %v1757_v53 = vsel %vm11967_vm13, %v7368_v44, %v7369_v32 }
 0x189   : > { %6374 = vmatprep.subr.bf16.mxu1 %v6373_v51  ;;  %v7387_v27 = vpop.permute.xlu1 %7386 }
 0x18a   : > { %6376 = vmatpush1.bf16.msra.mxu1 %v6375_v48  ;;  %v7388_v11 = vunpack.i.l.bf16 %v7387_v27  ;;  %v7389_v5 = vunpack.i.h.bf16 %v7387_v27  ;;  %v1756_v15 = vsel %vm11967_vm13, %v7364_v34, %v7368_v44  ;;  %v1755_v48 = vsel %vm11967_vm13, %v7363_v23, %v7364_v34 }
 0x18b   : > { %v9315_v39 = vpop.permute.xlu0 %7371 }
 0x18c   : > { %12206 = vst [vmem:[#allocation60_spill] sm:$0xff] %v9315_v39  ;;  %v7373_v51 = vunpack.i.l.bf16 %v9315_v39  ;;  %v11948_v40 = vunpack.i.h.bf16 %v9315_v39 }
 0x18d   : > { %v9318_v4 = vpop.permute.xlu1 %7396 }
 0x18e   : > { %12207 = vst [vmem:[#allocation61_spill] sm:$0xff] %v9318_v4  ;;  %v1764_v4 = vsel %vm11967_vm13, %v7388_v11, %v7389_v5  ;;  %v9347_v34 = vsel %vm11967_vm13, %v7373_v51, %v11948_v40  ;;  %v1758_v44 = vsel %vm11967_vm13, %v7369_v32, %v7373_v51 }
 0x18f   : > { %v9320_v30 = vpop.eup %8359  ;;  %v7382_v60 = vpop.permute.xlu0 %7381  ;;  %12209 = vst [vmem:[#allocation63_spill] sm:$0xff] %v9347_v34 }
 0x190   : > { %331 = vrot.lane.b32.xlu1 %v9320_v30, %s8390_s15  ;;  %328 = vrot.lane.b32.xlu0 %v9320_v30, %s8384_s20  ;;  %v7384_v8 = vunpack.i.h.bf16 %v7382_v60  ;;  %v7383_v37 = vunpack.i.l.bf16 %v7382_v60  ;;  %s8394_s20 = smov 54   ;;  %s8399_s15 = smov 44  }
 0x191   : > { %v9332_v14 = vpop.permute.xlu1 %7406 }
 0x192   : > { %v1763_v27 = vsel %vm11967_vm13, %v7384_v8, %v7388_v11  ;;  %v1762_v56 = vsel %vm11967_vm13, %v7383_v37, %v7384_v8  ;;  %v6379_v37 = vpack.c.bf16 %v1764_v4, %v1757_v53  ;;  %v7408_v51 = vunpack.i.l.bf16 %v9332_v14 }
 0x193   : > { %v9337_v45 = vpop.permute.xlu0 %7391  ;;  %v6269_v47 = vpack.c.bf16 %v1763_v27, %v1756_v15  ;;  %v6271_v28 = vpack.c.bf16 %v1762_v56, %v1755_v48 }
 0x194   : > { %12208 = vst [vmem:[#allocation62_spill] sm:$0xff] %v9337_v45  ;;  %334 = vrot.lane.b32.xlu1 %v9320_v30, %s8391_s16  ;;  %7511 = vrot.lane.b32.xlu0 %v9323_v7, %s8388_s28  ;;  %v11947_v23 = vunpack.i.h.bf16 %v9337_v45  ;;  %v7393_v60 = vunpack.i.l.bf16 %v9337_v45  ;;  %s8400_s16 = smov 36  }
 0x195   : > { %6270 = vmatprep.subr.bf16.mxu0 %v6269_v47  ;;  %v9352_v11 = vpop.permute.xlu1 %7416 }
 0x196   : > { %12210 = vst [vmem:[#allocation64_spill] sm:$0xff] %v9352_v11  ;;  %v9357_v15 = vsel %vm11967_vm13, %v7393_v60, %v11947_v23  ;;  %v1765_v8 = vsel %vm11967_vm13, %v7389_v5, %v7393_v60  ;;  %6272 = vmatpush1.bf16.msra.mxu0 %v6271_v28  ;;  %v7409_v60 = vunpack.i.h.bf16 %v9332_v14  ;;  %vm350_vm13 = vcmask 261120  }
 0x197   : > { %12211 = vst [vmem:[#allocation65_spill] sm:$0xff] %v9357_v15  ;;  %v7402_v48 = vpop.permute.xlu0 %7401  ;;  %v6377_v27 = vpack.c.bf16 %v1765_v8, %v1758_v44 }
 0x198   : > { %337 = vrot.lane.b32.xlu1 %v9320_v30, %s8392_s17  ;;  %7521 = vrot.lane.b32.xlu0 %v8868_v52, %s8389_s7  ;;  %v7404_v32 = vunpack.i.h.bf16 %v7402_v48  ;;  %v7403_v28 = vunpack.i.l.bf16 %v7402_v48  ;;  %v1863_v39 = vsel %vm11975_vm1, %v7408_v51, %v7409_v60  ;;  %s8401_s17 = smov 35  }
 0x199   : > { %6378 = vmatprep.subr.bf16.mxu1 %v6377_v27  ;;  %v7427_v47 = vpop.permute.xlu1 %7426 }
 0x19a   : > { %6380 = vmatpush1.bf16.msra.mxu1 %v6379_v37  ;;  %v7428_v4 = vunpack.i.l.bf16 %v7427_v47  ;;  %v7429_v8 = vunpack.i.h.bf16 %v7427_v47  ;;  %v1862_v37 = vsel %vm11975_vm1, %v7404_v32, %v7408_v51  ;;  %v1861_v48 = vsel %vm11975_vm1, %v7403_v28, %v7404_v32  ;;  %v2447_v28 = vld [vmem:[%s8473_s26 + $0x58] sm:$0xff] }
 0x19b   : > { %v9366_v5 = vpop.permute.xlu0 %7411 }
 0x19c   : > { %12212 = vst [vmem:[#allocation66_spill] sm:$0xff] %v9366_v5  ;;  %340 = vrot.lane.b32.xlu1 %v9320_v30, %s8393_s18  ;;  %7531 = vrot.lane.b32.xlu0 %v9121_v61, %s8394_s20  ;;  %v7413_v27 = vunpack.i.l.bf16 %v9366_v5  ;;  %v11954_v14 = vunpack.i.h.bf16 %v9366_v5  ;;  %s8402_s18 = smov 34  }
 0x19d   : > { %v9371_v53 = vpop.permute.xlu1 %7436 }
 0x19e   : > { %12213 = vst [vmem:[#allocation67_spill] sm:$0xff] %v9371_v53  ;;  %v1870_v53 = vsel %vm11975_vm1, %v7428_v4, %v7429_v8  ;;  %v9395_v32 = vsel %vm11975_vm1, %v7413_v27, %v11954_v14  ;;  %v1864_v51 = vsel %vm11975_vm1, %v7409_v60, %v7413_v27 }
 0x19f   : > { %v7422_v44 = vpop.permute.xlu0 %7421  ;;  %12215 = vst [vmem:[#allocation69_spill] sm:$0xff] %v9395_v32 }
 0x1a0   : > { %343 = vrot.lane.b32.xlu1 %v9320_v30, %s8395_s8  ;;  %7541 = vrot.lane.b32.xlu0 %v9323_v7, %s8394_s20  ;;  %v7424_v56 = vunpack.i.h.bf16 %v7422_v44  ;;  %v7423_v23 = vunpack.i.l.bf16 %v7422_v44  ;;  %s8411_s8 = smov 99  }
 0x1a1   : > { %v9380_v40 = vpop.permute.xlu1 %7446 }
 0x1a2   : > { %v1869_v47 = vsel %vm11975_vm1, %v7424_v56, %v7428_v4  ;;  %v1868_v34 = vsel %vm11975_vm1, %v7423_v23, %v7424_v56  ;;  %v12218_v32 = vunpack.i.h.bf16 %v9380_v40 }
 0x1a3   : > { %v9385_v15 = vpop.permute.xlu0 %7431  ;;  %v6273_v45 = vpack.c.bf16 %v1869_v47, %v1862_v37  ;;  %v6275_v44 = vpack.c.bf16 %v1868_v34, %v1861_v48  ;;  %v9402_v34 = vld [vmem:[%s8473_s26 + $0x60] sm:$0xff]  ;;  %v6383_v48 = vpack.c.bf16 %v1870_v53, %v1863_v39  ;;  %v7448_v39 = vunpack.i.l.bf16 %v9380_v40 }
 0x1a4   : > { %12214 = vst [vmem:[#allocation68_spill] sm:$0xff] %v9385_v15  ;;  %346 = vrot.lane.b32.xlu1 %v9320_v30, %s8396_s9  ;;  %7551 = vrot.lane.b32.xlu0 %v8868_v52, %s8397_s10  ;;  %v11955_v23 = vunpack.i.h.bf16 %v9385_v15  ;;  %v7433_v56 = vunpack.i.l.bf16 %v9385_v15  ;;  %s8412_s9 = smov 91  }
 0x1a5   : > { %6274 = vmatprep.subr.bf16.mxu0 %v6273_v45  ;;  %v9404_v4 = vpop.permute.xlu1 %7456  ;;  %v9419_v45 = vpack.i.bf16 %v9402_v34, %v2447_v28 }
 0x1a6   : > { %12216 = vst [vmem:[#allocation70_spill] sm:$0xff] %v9404_v4  ;;  %v9409_v52 = vsel %vm11975_vm1, %v7433_v56, %v11955_v23  ;;  %v1871_v37 = vsel %vm11975_vm1, %v7429_v8, %v7433_v56  ;;  %6276 = vmatpush1.bf16.msra.mxu0 %v6275_v44 }
 0x1a7   : > { %12217 = vst [vmem:[#allocation71_spill] sm:$0xff] %v9409_v52  ;;  %v6381_v47 = vpack.c.bf16 %v1871_v37, %v1864_v51  ;;  %v7442_v14 = vpop.permute.xlu0 %7441  ;;  %v9446_v52 = vsel %vm1967_vm14, %v7448_v39, %v12218_v32 }
 0x1a8   : > { %7526 = vrot.lane.b32.xlu1 %v9323_v7, %s8389_s7  ;;  %7561 = vrot.lane.b32.xlu0 %v9121_v61, %s8398_s13  ;;  %v7444_v53 = vunpack.i.h.bf16 %v7442_v14  ;;  %v7443_v8 = vunpack.i.l.bf16 %v7442_v14 }
 0x1a9   : > { %6382 = vmatprep.subr.bf16.mxu1 %v6381_v47  ;;  %v9424_v44 = vpop.permute.xlu1 %7466 }
 0x1aa   : > { %6384 = vmatpush1.bf16.msra.mxu1 %v6383_v48  ;;  %v7468_v51 = vunpack.i.l.bf16 %v9424_v44  ;;  %v1969_v14 = vsel %vm1967_vm14, %v7444_v53, %v7448_v39  ;;  %v1968_v47 = vsel %vm1967_vm14, %v7443_v8, %v7444_v53 }
 0x1ab   : > { %v9422_v27 = vpop.permute.xlu0 %7451 }
 0x1ac   : > { %7536 = vrot.lane.b32.xlu1 %v9419_v45, %s8394_s20  ;;  %7571 = vrot.lane.b32.xlu0 %v9323_v7, %s8398_s13 }
 0x1ad   : > { %v9434_v48 = vpop.permute.xlu1 %7476 }
 0x1ae   : > { %v7478_v28 = vunpack.i.l.bf16 %v9434_v48  ;;  %v12220_v39 = vunpack.i.h.bf16 %v9434_v48 }
 0x1af   : > { %v7462_v37 = vpop.permute.xlu0 %7461 }
 0x1b0   : > { %7546 = vrot.lane.b32.xlu1 %v9121_v61, %s8397_s10  ;;  %7581 = vrot.lane.b32.xlu0 %v9419_v45, %s8399_s15  ;;  %v7464_v60 = vunpack.i.h.bf16 %v7462_v37  ;;  %v7463_v23 = vunpack.i.l.bf16 %v7462_v37  ;;  %v12219_v37 = vunpack.i.h.bf16 %v9424_v44 }
 0x1b2   : > { %v1976_v53 = vsel %vm1967_vm14, %v7463_v23, %v7464_v60  ;;  %v1975_v8 = vsel %vm1967_vm14, %v7468_v51, %v7463_v23  ;;  %v9455_v56 = vsel %vm1967_vm14, %v7464_v60, %v12219_v37  ;;  %v2083_v51 = vsel %vm2074_vm15, %v7478_v28, %v12220_v39  ;;  %v2230_v39 = vld [vmem:[%s8473_s26 + $0x38] sm:$0xff] }
 0x1b3   : > { %v6277_v4 = vpack.c.bf16 %v1976_v53, %v1969_v14  ;;  %v9450_v15 = vpop.permute.xlu0 %7471  ;;  %v6279_v5 = vpack.c.bf16 %v1975_v8, %v1968_v47 }
 0x1b4   : > { %7556 = vrot.lane.b32.xlu1 %v9323_v7, %s8397_s10  ;;  %7591 = vrot.lane.b32.xlu0 %v9121_v61, %s8400_s16  ;;  %v11961_v32 = vunpack.i.h.bf16 %v9450_v15  ;;  %v7473_v23 = vunpack.i.l.bf16 %v9450_v15 }
 0x1b5   : > { %6278 = vmatprep.subr.bf16.mxu0 %v6277_v4 }
 0x1b6   : > { %6280 = vmatpush1.bf16.msra.mxu0 %v6279_v5  ;;  %v2076_v60 = vsel %vm2074_vm15, %v7473_v23, %v11961_v32 }
 0x1b7   : > { %v7482_v47 = vpop.permute.xlu0 %7481  ;;  %v6281_v53 = vpack.c.bf16 %v2083_v51, %v2076_v60  ;;  %v2228_v51 = vld [vmem:[%s8473_s26 + $0x28] sm:$0xff] }
 0x1b8   : > { %7566 = vrot.lane.b32.xlu1 %v9419_v45, %s8398_s13  ;;  %7601 = vrot.lane.b32.xlu0 %v9323_v7, %s8400_s16  ;;  %v7484_v8 = vunpack.i.h.bf16 %v7482_v47  ;;  %v7483_v37 = vunpack.i.l.bf16 %v7482_v47  ;;  %v1915_v47 = vld [vmem:[%s8473_s26 + $0x68] sm:$0xff] }
 0x1b9   : > { %6282 = vmatprep.subr.bf16.mxu0 %v6281_v53  ;;  %v1916_v53 = vld [vmem:[%s8473_s26 + $0x70] sm:$0xff] }
 0x1ba   : > { %v9476_v4 = vsel %vm2074_vm15, %v7484_v8, %v7478_v28  ;;  %v9479_v5 = vsel %vm2074_vm15, %v7483_v37, %v7473_v23  ;;  %v2014_v28 = vld [vmem:[%s8473_s26 + $0x20] sm:$0xff] }
 0x1bb   : > { %v7640_v23 = vpack.i.bf16 %v2014_v28, %v9109_v12  ;;  %v7660_v60 = vpack.i.bf16 %v2228_v51, %v2014_v28  ;;  %v7635_v12 = vpack.i.bf16 %v1916_v53, %v1915_v47 }
 0x1bc   : > { %7576 = vrot.lane.b32.xlu1 %v9121_v61, %s8399_s15  ;;  %7611 = vrot.lane.b32.xlu0 %v9419_v45, %s8401_s17 }
 0x1c0   : > { %7586 = vrot.lane.b32.xlu1 %v9323_v7, %s8399_s15  ;;  %7621 = vrot.lane.b32.xlu0 %v9121_v61, %s8402_s18 }
 0x1c4   : > { %7596 = vrot.lane.b32.xlu1 %v9419_v45, %s8400_s16  ;;  %7631 = vrot.lane.b32.xlu0 %v9323_v7, %s8402_s18 }
 0x1c8   : > { %7606 = vrot.lane.b32.xlu1 %v9121_v61, %s8401_s17  ;;  %7641 = vrot.lane.b32.xlu0 %v7640_v23, %s8386_s24  ;;  %v7645_v61 = vpack.i.bf16 %v1915_v47, %v9402_v34  ;;  %v1917_v34 = vld [vmem:[%s8473_s26 + $0x78] sm:$0xff]  ;;  %v9541_v47 = vpop.permute.xlu0 %7491 }
 0x1c9   : > { %v7760_v28 = vpack.i.bf16 %v1917_v34, %v1916_v53  ;;  %v7493_v2 = vunpack.i.l.bf16 %v9541_v47  ;;  %v12228_v55 = vunpack.i.h.bf16 %v9541_v47 }
 0x1cb   : > { %v2190_v41 = vsel %vm2181_vm9, %v7493_v2, %v12228_v55 }
 0x1cc   : > { %7616 = vrot.lane.b32.xlu1 %v9323_v7, %s8401_s17  ;;  %7651 = vrot.lane.b32.xlu0 %v7640_v23, %s8387_s25  ;;  %v9524_v7 = vpop.permute.xlu1 %7486  ;;  %v9548_v14 = vpop.permute.xlu0 %7501 }
 0x1cd   : > { %12222 = vst [vmem:[#allocation73_spill] sm:$0xff] %v9548_v14  ;;  %v7503_v58 = vunpack.i.l.bf16 %v9548_v14 }
 0x1d0   : > { %7626 = vrot.lane.b32.xlu1 %v9419_v45, %s8402_s18  ;;  %7661 = vrot.lane.b32.xlu0 %v7660_v60, %s8388_s28  ;;  %v1918_v45 = vld [vmem:[%s8473_s26 + $0x80] sm:$0xff]  ;;  %v9532_v37 = vpop.permute.xlu1 %7496 }
 0x1d1   : > { %v9530_v8 = vpack.i.bf16 %v1918_v45, %v1917_v34 }
 0x1d4   : > { %7636 = vrot.lane.b32.xlu1 %v7635_v12, %s8385_s23  ;;  %7671 = vrot.lane.b32.xlu0 %v7660_v60, %s8389_s7  ;;  %v9537_v23 = vpop.permute.xlu1 %7506 }
 0x1d5   : > { %12221 = vst [vmem:[#allocation72_spill] sm:$0xff] %v9537_v23 }
 0x1d8   : > { %7646 = vrot.lane.b32.xlu1 %v7645_v61, %s8386_s24  ;;  %7681 = vrot.lane.b32.xlu0 %v7660_v60, %s8394_s20 }
 0x1dc   : > { %7656 = vrot.lane.b32.xlu1 %v7645_v61, %s8387_s25  ;;  %7691 = vrot.lane.b32.xlu0 %v7660_v60, %s8397_s10  ;;  %v2016_v61 = vld [vmem:[%s8473_s26 + $0x30] sm:$0xff] }
 0x1dd   : > { %v7755_v53 = vpack.i.bf16 %v2016_v61, %v2228_v51 }
 0x1e0   : > { %7666 = vrot.lane.b32.xlu1 %v7635_v12, %s8388_s28  ;;  %7701 = vrot.lane.b32.xlu0 %v7660_v60, %s8398_s13 }
 0x1e4   : > { %7676 = vrot.lane.b32.xlu1 %v7635_v12, %s8389_s7  ;;  %7711 = vrot.lane.b32.xlu0 %v7660_v60, %s8399_s15 }
 0x1e8   : > { %7686 = vrot.lane.b32.xlu1 %v7635_v12, %s8394_s20  ;;  %7721 = vrot.lane.b32.xlu0 %v7660_v60, %s8400_s16 }
 0x1ec   : > { %7696 = vrot.lane.b32.xlu1 %v7635_v12, %s8397_s10  ;;  %7731 = vrot.lane.b32.xlu0 %v7660_v60, %s8401_s17 }
 0x1f0   : > { %7706 = vrot.lane.b32.xlu1 %v7635_v12, %s8398_s13  ;;  %7741 = vrot.lane.b32.xlu0 %v7660_v60, %s8402_s18  ;;  %v9545_v60 = vpop.permute.xlu1 %7516 }
 0x1f4   : > { %7716 = vrot.lane.b32.xlu1 %v7635_v12, %s8399_s15  ;;  %7751 = vrot.lane.b32.xlu0 %v9530_v8, %s8385_s23  ;;  %s8414_s23 = smov 89  }
 0x1f8   : > { %7726 = vrot.lane.b32.xlu1 %v7635_v12, %s8400_s16  ;;  %7761 = vrot.lane.b32.xlu0 %v7760_v28, %s8386_s24 }
 0x1fc   : > { %7736 = vrot.lane.b32.xlu1 %v7635_v12, %s8401_s17  ;;  %7771 = vrot.lane.b32.xlu0 %v7760_v28, %s8387_s25 }
 0x200   : > { %7746 = vrot.lane.b32.xlu1 %v7635_v12, %s8402_s18  ;;  %7781 = vrot.lane.b32.xlu0 %v9530_v8, %s8388_s28  ;;  %v9562_v12 = vpack.i.bf16 %v2230_v39, %v2016_v61 }
 0x202   : > { %v332_v34 = vpop.permute.xlu1 %331  ;;  %v329_v32 = vpop.permute.xlu0 %328 }
 0x204   : > { %7756 = vrot.lane.b32.xlu1 %v7755_v53, %s8386_s24  ;;  %7791 = vrot.lane.b32.xlu0 %v9530_v8, %s8389_s7 }
 0x206   : > { %v335_v28 = vpop.permute.xlu1 %334  ;;  %v9557_v11 = vpop.permute.xlu0 %7511 }
 0x207   : > { %v7513_v21 = vunpack.i.l.bf16 %v9557_v11 }
 0x208   : > { %7766 = vrot.lane.b32.xlu1 %v7755_v53, %s8387_s25  ;;  %7801 = vrot.lane.b32.xlu0 %v9530_v8, %s8394_s20  ;;  %v349_v53 = vsel %vm11975_vm1, %v9320_v30, %v329_v32  ;;  %vm358_vm1 = vcmask 785408  }
 0x209   : > { %v351_v61 = vsel %vm350_vm13, %v349_v53, %v332_v34  ;;  %vm360_vm13 = vcmask 916480   ;;  %v7840_v34 = vpack.i.bf16 %v1918_v45, %v2230_v39  ;;  %v7488_v53 = vunpack.i.l.bf16 %v9524_v7  ;;  %v363_v39 = vld [vmem:[%s11881_s2 + $0x8] sm:$0xff] }
 0x20a   : > { %v338_v1 = vpop.permute.xlu1 %337  ;;  %v9564_v51 = vpop.permute.xlu0 %7521  ;;  %v353_v30 = vsel %vm352_vm12, %v351_v61, %v335_v28 }
 0x20b   : > { %12223 = vst [vmem:[#allocation74_spill] sm:$0xff] %v9564_v51  ;;  %v355_v32 = vsel %vm354_vm11, %v353_v30, %v338_v1  ;;  %vm2288_vm11 = vcmask 457728   ;;  %v362_v1 = vld [vmem:[%s11881_s2] sm:$0xff]  ;;  %v7498_v30 = vunpack.i.l.bf16 %v9532_v37  ;;  %v7523_v43 = vunpack.i.l.bf16 %v9564_v51 }
 0x20c   : > { %7776 = vrot.lane.b32.xlu1 %v9562_v12, %s8388_s28  ;;  %7811 = vrot.lane.b32.xlu0 %v9530_v8, %s8397_s10 }
 0x20d   : > { %v2182_v55 = vsel %vm2181_vm9, %v7498_v30, %v7488_v53  ;;  %v2338_v30 = vld [vmem:[%s8473_s26 + $0x40] sm:$0xff] }
 0x20e   : > { %v341_v24 = vpop.permute.xlu1 %340  ;;  %v9570_v20 = vpop.permute.xlu0 %7531  ;;  %v9667_v59 = vpack.i.bf16 %v2346_v62, %v2338_v30  ;;  %v12233_v62 = vunpack.i.h.bf16 %v9564_v51 }
 0x20f   : > { %v357_v3 = vsel %vm356_vm10, %v355_v32, %v341_v24  ;;  %v7508_v24 = vunpack.i.l.bf16 %v9537_v23  ;;  %v373_v32 = vrot.slane %v351_v61, %v9583_v57  ;;  %vm2395_vm10 = vcmask 449536  }
 0x210   : > { %7786 = vrot.lane.b32.xlu1 %v9562_v12, %s8389_s7  ;;  %7821 = vrot.lane.b32.xlu0 %v9530_v8, %s8398_s13 }
 0x211   : > { %v9641_v26 = vmul.f32 %v373_v32, %v365_v36 }
 0x212   : > { %v344_v38 = vpop.permute.xlu1 %343  ;;  %v9580_v9 = vpop.permute.xlu0 %7541 }
 0x213   : > { %v359_v28 = vsel %vm358_vm1, %v357_v3, %v344_v38  ;;  %v7499_v38 = vunpack.i.h.bf16 %v9532_v37  ;;  %12230 = vst [vmem:[#allocation78_spill] sm:$0xff] %v9641_v26  ;;  %vm12036_vm1 = vcmask 441344  }
 0x214   : > { %7796 = vrot.lane.b32.xlu1 %v9562_v12, %s8394_s20  ;;  %7831 = vrot.lane.b32.xlu0 %v9562_v12, %s8399_s15 }
 0x216   : > { %v347_v13 = vpop.permute.xlu1 %346  ;;  %v9594_v46 = vpop.permute.xlu0 %7551 }
 0x217   : > { %12226 = vst [vmem:[#allocation77_spill] sm:$0xff] %v9594_v46  ;;  %v361_v45 = vsel %vm360_vm13, %v359_v28, %v347_v13  ;;  %v12227_v13 = vunpack.i.h.bf16 %v9524_v7  ;;  %v7553_v51 = vunpack.i.l.bf16 %v9594_v46  ;;  %vm12043_vm13 = vcmask 367616  }
 0x218   : > { %v9606_v3 = vrot.slane %v361_v45, %v9583_v57  ;;  %7806 = vrot.lane.b32.xlu1 %v9562_v12, %s8397_s10  ;;  %7841 = vrot.lane.b32.xlu0 %v7840_v34, %s8387_s25  ;;  %v12229_v45 = vunpack.i.h.bf16 %v9537_v23  ;;  %v11998_v23 = vunpack.i.h.bf16 %v9570_v20  ;;  %s12074_s25 = smov 10  }
 0x219   : > { %v2183_v28 = vsel %vm2181_vm9, %v7488_v53, %v12227_v13 }
 0x21a   : > { %v9625_v37 = vmul.f32 %v9606_v3, %v362_v1  ;;  %v9628_v61 = vmul.f32 %v9606_v3, %v363_v39  ;;  %v7527_v13 = vpop.permute.xlu1 %7526  ;;  %v9630_v57 = vpop.permute.xlu0 %7561  ;;  %v2297_v19 = vsel %vm2288_vm11, %v7508_v24, %v12229_v45  ;;  %v2189_v1 = vsel %vm2181_vm9, %v7499_v38, %v7493_v2 }
 0x21b   : > { %v7514_v39 = vunpack.i.h.bf16 %v9557_v11  ;;  %v6285_v53 = vpack.c.bf16 %v2190_v41, %v2183_v28  ;;  %v12231_v38 = vunpack.i.h.bf16 %v9548_v14  ;;  %v12232_v41 = vpack.c.bf16 %v9476_v4, %v9479_v5 }
 0x21c   : > { %7816 = vrot.lane.b32.xlu1 %v9562_v12, %s8398_s13  ;;  %7851 = vrot.lane.b32.xlu0 %v9530_v8, %s8400_s16  ;;  %v7518_v28 = vunpack.i.l.bf16 %v9545_v60  ;;  %v6287_v45 = vpack.c.bf16 %v2189_v1, %v2182_v55  ;;  %v7533_v4 = vunpack.i.l.bf16 %v9570_v20  ;;  %v7529_v11 = vunpack.i.h.bf16 %v7527_v13 }
 0x21d   : > { %3638 = vmatprep.mubr.f32.mxu0 %v9628_v61  ;;  %3780 = vmatprep.mubr.f32.mxu1 %v9628_v61  ;;  %v2290_v32 = vsel %vm2288_vm11, %v7503_v58, %v12231_v38  ;;  %v2296_v38 = vsel %vm2288_vm11, %v7514_v39, %v7508_v24  ;;  %v7528_v14 = vunpack.i.l.bf16 %v7527_v13  ;;  %v2404_v24 = vsel %vm2395_vm10, %v7523_v43, %v12233_v62 }
 0x21e   : > { %3639 = vmatmul.mubr.f32.vlgmr.msra.gmra.mrb[0].mxu0 %v9625_v37  ;;  %v9652_v2 = vpop.permute.xlu1 %7536  ;;  %v9654_v36 = vpop.permute.xlu0 %7571  ;;  %v6289_v5 = vpack.c.bf16 %v2297_v19, %v2290_v32  ;;  %v7543_v19 = vunpack.i.l.bf16 %v9580_v9  ;;  %v2504_v30 = vsel %vm12036_vm1, %v7533_v4, %v11998_v23  ;;  %v7544_v32 = vunpack.i.h.bf16 %v9580_v9 }
 0x21f   : > { %6284 = vmatpush1.bf16.msra.mxu0 %v12232_v41  ;;  %6172 = vmatprep.mubr.msk.f32.mxu0 %vm352_vm12, %v9641_v26  ;;  %v2289_v41 = vsel %vm2288_vm11, %v7513_v21, %v7503_v58  ;;  %v7538_v1 = vunpack.i.l.bf16 %v9652_v2  ;;  %v12234_v21 = vunpack.i.h.bf16 %v9545_v60  ;;  %v2403_v62 = vsel %vm2395_vm10, %v7529_v11, %v7523_v43 }
 0x220   : > { %6286 = vmatprep.subr.bf16.mxu0 %v6285_v53  ;;  %7826 = vrot.lane.b32.xlu1 %v7840_v34, %s8386_s24  ;;  %v6291_v13 = vpack.c.bf16 %v2296_v38, %v2289_v41  ;;  %v2503_v43 = vsel %vm12036_vm1, %v7543_v19, %v7533_v4  ;;  %v7563_v11 = vunpack.i.l.bf16 %v9630_v57  ;;  %s8415_s24 = smov 11  }
 0x221   : > { %7861 = vrot.lane.b32.xlu0 %v9562_v12, %s8401_s17  ;;  %v2397_v58 = vsel %vm2395_vm10, %v7518_v28, %v12234_v21 }
 0x222   : > { %v9675_v53 = vpop.permute.xlu1 %7546  ;;  %v9677_v34 = vpop.permute.xlu0 %7581  ;;  %v6293_v39 = vpack.c.bf16 %v2404_v24, %v2397_v58  ;;  %v12236_v24 = vunpack.i.h.bf16 %v9652_v2  ;;  %v2510_v58 = vsel %vm12036_vm1, %v7544_v32, %v7538_v1  ;;  %v7574_v32 = vunpack.i.h.bf16 %v9654_v36 }
 0x223   : > { %6288 = vmatpush1.bf16.msra.mxu0 %v6287_v45  ;;  %v11999_v38 = vunpack.i.h.bf16 %v9675_v53  ;;  %v7548_v41 = vunpack.i.l.bf16 %v9675_v53 }
 0x224   : > { %6290 = vmatprep.subr.bf16.mxu0 %v6289_v5  ;;  %7836 = vrot.lane.b32.xlu1 %v9530_v8, %s8399_s15  ;;  %v2396_v5 = vsel %vm2395_vm10, %v7528_v14, %v7518_v28  ;;  %v2511_v9 = vsel %vm12036_vm1, %v7538_v1, %v12236_v24 }
 0x225   : > { %7871 = vrot.lane.b32.xlu0 %v9667_v59, %s8389_s7  ;;  %v6295_v28 = vpack.c.bf16 %v2403_v62, %v2396_v5  ;;  %v6297_v45 = vpack.c.bf16 %v2511_v9, %v2504_v30  ;;  %v2611_v14 = vsel %vm12002_vm8, %v7548_v41, %v11999_v38  ;;  %v12237_v5 = vunpack.i.h.bf16 %v9594_v46  ;;  %s8418_s7 = smov 119  }
 0x226   : > { %v7557_v21 = vpop.permute.xlu1 %7556  ;;  %v9699_v55 = vpop.permute.xlu0 %7591  ;;  %v7573_v30 = vunpack.i.l.bf16 %v9654_v36  ;;  %v6299_v62 = vpack.c.bf16 %v2510_v58, %v2503_v43  ;;  %v7583_v36 = vunpack.i.l.bf16 %v9677_v34 }
 0x227   : > { %12235 = vst [vmem:[#allocation79_spill] sm:$0xff] %v9699_v55  ;;  %6292 = vmatpush1.bf16.msra.mxu0 %v6291_v13  ;;  %v7559_v13 = vunpack.i.h.bf16 %v7557_v21  ;;  %v7558_v24 = vunpack.i.l.bf16 %v7557_v21  ;;  %v2618_v1 = vsel %vm12002_vm8, %v7553_v51, %v12237_v5  ;;  %v12238_v21 = vunpack.i.h.bf16 %v9630_v57 }
 0x228   : > { %6294 = vmatprep.subr.bf16.mxu0 %v6293_v39  ;;  %7846 = vrot.lane.b32.xlu1 %v9562_v12, %s8400_s16  ;;  %v6301_v46 = vpack.c.bf16 %v2618_v1, %v2611_v14  ;;  %v12004_v14 = vunpack.i.h.bf16 %v9699_v55 }
 0x229   : > { %7881 = vrot.lane.b32.xlu0 %v9530_v8, %s8402_s18  ;;  %v2718_v9 = vsel %vm12043_vm13, %v7563_v11, %v12238_v21  ;;  %v2610_v5 = vsel %vm12002_vm8, %v7558_v24, %v7548_v41 }
 0x22a   : > { %v9715_v23 = vpop.permute.xlu1 %7566  ;;  %v9717_v39 = vpop.permute.xlu0 %7601 }
 0x22b   : > { %6296 = vmatpush1.bf16.msra.mxu0 %v6295_v28  ;;  %v7568_v19 = vunpack.i.l.bf16 %v9715_v23  ;;  %v12240_v21 = vunpack.i.h.bf16 %v9715_v23 }
 0x22c   : > { %6298 = vmatprep.subr.bf16.mxu0 %v6297_v45  ;;  %7856 = vrot.lane.b32.xlu1 %v9667_v59, %s8388_s28  ;;  %v2617_v45 = vsel %vm12002_vm8, %v7559_v13, %v7553_v51  ;;  %v2717_v51 = vsel %vm12043_vm13, %v7573_v30, %v7563_v11  ;;  %vm12006_vm8 = vcmask 293888   ;;  %v7593_v13 = vunpack.i.l.bf16 %v9699_v55  ;;  %s12070_s28 = smov 9  }
 0x22d   : > { %7891 = vrot.lane.b32.xlu0 %v9667_v59, %s8397_s10  ;;  %v2725_v28 = vsel %vm12043_vm13, %v7568_v19, %v12240_v21  ;;  %v6303_v41 = vpack.c.bf16 %v2617_v45, %v2610_v5  ;;  %v2724_v24 = vsel %vm12043_vm13, %v7574_v32, %v7568_v19  ;;  %v12242_v30 = vunpack.i.h.bf16 %v9677_v34  ;;  %s8405_s10 = smov 110  }
 0x22e   : > { %v9739_v38 = vpop.permute.xlu1 %7576  ;;  %v9741_v4 = vpop.permute.xlu0 %7611  ;;  %v7603_v45 = vunpack.i.l.bf16 %v9717_v39  ;;  %v7604_v19 = vunpack.i.h.bf16 %v9717_v39  ;;  %v3565_v39 = vld [vmem:[%s11883_s4] sm:$0xff] }
 0x22f   : > { %12239 = vst [vmem:[#allocation80_spill] sm:$0xff] %v9741_v4  ;;  %6300 = vmatpush1.bf16.msra.mxu0 %v6299_v62  ;;  %v12009_v43 = vunpack.i.h.bf16 %v9739_v38  ;;  %v7578_v58 = vunpack.i.l.bf16 %v9739_v38  ;;  %v2832_v5 = vsel %vm12003_vm7, %v7583_v36, %v12242_v30 }
 0x230   : > { %6302 = vmatprep.subr.bf16.mxu0 %v6301_v46  ;;  %7866 = vrot.lane.b32.xlu1 %v9530_v8, %s8401_s17  ;;  %v6305_v46 = vpack.c.bf16 %v2725_v28, %v2718_v9  ;;  %v6307_v28 = vpack.c.bf16 %v2724_v24, %v2717_v51 }
 0x231   : > { %7901 = vrot.lane.b32.xlu0 %v9667_v59, %s8399_s15  ;;  %v2825_v11 = vsel %vm12003_vm7, %v7578_v58, %v12009_v43  ;;  %s8407_s15 = smov 109  }
 0x232   : > { %v7587_v1 = vpop.permute.xlu1 %7586  ;;  %v9757_v62 = vpop.permute.xlu0 %7621 }
 0x233   : > { %12241 = vst [vmem:[#allocation81_spill] sm:$0xff] %v9757_v62  ;;  %6304 = vmatpush1.bf16.msra.mxu0 %v6303_v41  ;;  %v7589_v8 = vunpack.i.h.bf16 %v7587_v1  ;;  %v7588_v21 = vunpack.i.l.bf16 %v7587_v1  ;;  %v12005_v41 = vunpack.i.h.bf16 %v9741_v4 }
 0x234   : > { %6306 = vmatprep.subr.bf16.mxu0 %v6305_v46  ;;  %7876 = vrot.lane.b32.xlu1 %v9562_v12, %s8402_s18  ;;  %v6309_v46 = vpack.c.bf16 %v2832_v5, %v2825_v11  ;;  %v2932_v12 = vsel %vm12006_vm8, %v7593_v13, %v12004_v14 }
 0x235   : > { %v2824_v32 = vsel %vm12003_vm7, %v7588_v21, %v7578_v58  ;;  %v2831_v9 = vsel %vm12003_vm7, %v7589_v8, %v7583_v36  ;;  %7911 = vrot.lane.b32.xlu0 %v9667_v59, %s8401_s17  ;;  %v7613_v36 = vunpack.i.l.bf16 %v9741_v4  ;;  %v2931_v8 = vsel %vm12006_vm8, %v7603_v45, %v7593_v13  ;;  %s8409_s17 = smov 101  }
 0x236   : > { %v9774_v1 = vpop.permute.xlu1 %7596  ;;  %v9776_v30 = vpop.permute.xlu0 %7631  ;;  %v6311_v24 = vpack.c.bf16 %v2831_v9, %v2824_v32  ;;  %vm3037_vm7 = vcmask 285696  }
 0x237   : > { %12243 = vst [vmem:[#allocation82_spill] sm:$0xff] %v9774_v1  ;;  %6308 = vmatpush1.bf16.msra.mxu0 %v6307_v28  ;;  %v12008_v58 = vunpack.i.h.bf16 %v9774_v1  ;;  %v7598_v51 = vunpack.i.l.bf16 %v9774_v1  ;;  %v389_v1 = vld [vmem:[%s8473_s26 + $0x68] sm:$0xff] }
 0x238   : > { %6310 = vmatprep.subr.bf16.mxu0 %v6309_v46  ;;  %7886 = vrot.lane.b32.xlu1 %v9667_v59, %s8394_s20  ;;  %s8420_s20 = smov 38  }
 0x239   : > { %v2938_v21 = vsel %vm12006_vm8, %v7604_v19, %v7598_v51  ;;  %v2939_v11 = vsel %vm12006_vm8, %v7598_v51, %v12008_v58  ;;  %3568 = vperm.xlu0 %7920, %v3565_v39   ;;  %v3046_v19 = vsel %vm3037_vm7, %v7613_v36, %v12005_v41  ;;  %v6916_v41 = vunpack.i.l.bf16 %v8617_v63 }
 0x23a   : > { %v9794_v5 = vpop.permute.xlu1 %7606  ;;  %v9796_v28 = vpop.permute.xlu0 %7641  ;;  %v6313_v14 = vpack.c.bf16 %v2939_v11, %v2932_v12  ;;  %v6315_v32 = vpack.c.bf16 %v2938_v21, %v2931_v8  ;;  %v7633_v8 = vunpack.i.l.bf16 %v9776_v30  ;;  %v6897_v11 = vunpack.i.h.bf16 %v8603_v49 }
 0x23b   : > { %12244 = vst [vmem:[#allocation83_spill] sm:$0xff] %v9794_v5  ;;  %6312 = vmatpush1.bf16.msra.mxu0 %v6311_v24  ;;  %v12007_v13 = vunpack.i.h.bf16 %v9794_v5  ;;  %v7608_v45 = vunpack.i.l.bf16 %v9794_v5  ;;  %v7623_v24 = vunpack.i.l.bf16 %v9757_v62  ;;  %vm3144_vm8 = vcmask 277504  }
 0x23c   : > { %6314 = vmatprep.subr.bf16.mxu0 %v6313_v14  ;;  %7896 = vrot.lane.b32.xlu1 %v9667_v59, %s8398_s13  ;;  %s8406_s13 = smov 111  }
 0x23d   : > { %v3039_v9 = vsel %vm3037_vm7, %v7608_v45, %v12007_v13 }
 0x23e   : > { %v7617_v12 = vpop.permute.xlu1 %7616  ;;  %v9809_v39 = vpop.permute.xlu0 %7651  ;;  %v6317_v51 = vpack.c.bf16 %v3046_v19, %v3039_v9  ;;  %v7634_v19 = vunpack.i.h.bf16 %v9776_v30  ;;  %v12246_v30 = vunpack.i.h.bf16 %v9757_v62 }
 0x23f   : > { %6316 = vmatpush1.bf16.msra.mxu0 %v6315_v32  ;;  %v7619_v21 = vunpack.i.h.bf16 %v7617_v12  ;;  %v7618_v14 = vunpack.i.l.bf16 %v7617_v12  ;;  %v6896_v32 = vunpack.i.l.bf16 %v8603_v49  ;;  %v6917_v12 = vunpack.i.h.bf16 %v8617_v63  ;;  %v390_v49 = vld [vmem:[%s8473_s26 + $0x70] sm:$0xff] }
 0x240   : > { %6318 = vmatprep.subr.bf16.mxu0 %v6317_v51  ;;  %7906 = vrot.lane.b32.xlu1 %v9667_v59, %s8400_s16  ;;  %v3145_v51 = vsel %vm3144_vm8, %v7633_v8, %v7623_v24  ;;  %s12072_s16 = smov 1  }
 0x241   : > { %v3038_v9 = vsel %vm3037_vm7, %v7618_v14, %v7608_v45  ;;  %v3045_v13 = vsel %vm3037_vm7, %v7619_v21, %v7613_v36  ;;  %v3146_v45 = vsel %vm3144_vm8, %v7623_v24, %v12246_v30  ;;  %v383_v36 = vld [vmem:[%s8473_s26 + $0x28] sm:$0xff]  ;;  %v9835_v63 = vsel %vm12032_vm0, %v6896_v32, %v6897_v11 }
 0x242   : > { %v9822_v58 = vpop.permute.xlu1 %7626  ;;  %v9824_v43 = vpop.permute.xlu0 %7661  ;;  %v6319_v46 = vpack.c.bf16 %v3045_v13, %v3038_v9  ;;  %v12247_v13 = vunpack.i.h.bf16 %v8626_v6  ;;  %v6937_v21 = vunpack.i.h.bf16 %v8655_v25  ;;  %v6936_v11 = vunpack.i.l.bf16 %v8655_v25 }
 0x243   : > { %12245 = vst [vmem:[#allocation84_spill] sm:$0xff] %v9824_v43  ;;  %v12015_v4 = vunpack.i.h.bf16 %v9822_v58  ;;  %v7628_v5 = vunpack.i.l.bf16 %v9822_v58  ;;  %v6433_v62 = vpack.c.bf16 %v390_v49, %v383_v36  ;;  %v9856_v55 = vsel %vm12032_vm0, %v6916_v41, %v6917_v12 }
 0x244   : > { %6320 = vmatpush1.bf16.msra.mxu0 %v6319_v46  ;;  %v483_v8 = vsel %vm12032_vm0, %v12247_v13, %v6916_v41  ;;  %7916 = vrot.lane.b32.xlu1 %v9667_v59, %s8402_s18  ;;  %v382_v59 = vld [vmem:[%s8473_s26 + $0x20] sm:$0xff]  ;;  %v7643_v41 = vunpack.i.l.bf16 %v9796_v28  ;;  %v12250_v12 = vunpack.i.l.bf16 %v9422_v27  ;;  %v12251_v49 = vunpack.i.h.bf16 %v9380_v40  ;;  %s8410_s18 = smov 100  }
 0x245   : > { %v3152_v24 = vsel %vm3144_vm8, %v7634_v19, %v7628_v5  ;;  %v3153_v9 = vsel %vm3144_vm8, %v7628_v5, %v12015_v4  ;;  %v364_v19 = vld [vmem:[%s11881_s2 + $0x10] sm:$0xff]  ;;  %v12022_v5 = vunpack.i.h.bf16 %v9796_v28  ;;  %v12249_v4 = vunpack.i.h.bf16 %v8607_v50 }
 0x246   : > { %v9849_v46 = vpop.permute.xlu1 %7636  ;;  %v9851_v6 = vpop.permute.xlu0 %7671  ;;  %v6321_v30 = vpack.c.bf16 %v3153_v9, %v3146_v45  ;;  %v6323_v13 = vpack.c.bf16 %v3152_v24, %v3145_v51  ;;  %v6957_v51 = vunpack.i.h.bf16 %v8667_v29  ;;  %v6956_v45 = vunpack.i.l.bf16 %v8667_v29 }
 0x247   : > { %12248 = vst [vmem:[#allocation85_spill] sm:$0xff] %v9851_v6  ;;  %v12024_v25 = vunpack.i.l.bf16 %v9849_v46  ;;  %v476_v14 = vsel %vm12032_vm0, %v12249_v4, %v6896_v32  ;;  %v1971_v24 = vsel %vm1967_vm14, %v12251_v49, %v12250_v12  ;;  %v12252_v50 = vunpack.i.h.bf16 %v9424_v44 }
 0x248   : > { %6322 = vmatprep.subr.bf16.mxu0 %v6321_v30  ;;  %v6437_v36 = vpack.c.bf16 %v483_v8, %v476_v14  ;;  %v6435_v32 = vpack.c.bf16 %v389_v1, %v382_v59  ;;  %v9880_v29 = vsel %vm577_vm2, %v6936_v11, %v6937_v21  ;;  %v9883_v8 = vmul.f32 %v9606_v3, %v364_v19 }
 0x249   : > { %6324 = vmatpush1.bf16.msra.mxu0 %v6323_v13  ;;  %v1978_v4 = vsel %vm1967_vm14, %v12252_v50, %v12024_v25  ;;  %v12019_v44 = vunpack.i.h.bf16 %v9809_v39  ;;  %v2078_v3 = vsel %vm2074_vm15, %v7643_v41, %v12022_v5  ;;  %v9898_v21 = vsel %vm577_vm2, %v6956_v45, %v6957_v51 }
 0x24a   : > { %v9885_v14 = vpop.permute.xlu1 %7646  ;;  %v9887_v9 = vpop.permute.xlu0 %7681  ;;  %v6385_v40 = vpack.c.bf16 %v1978_v4, %v1971_v24  ;;  %6434 = vmatprep.subr.bf16.mxu0 %v6433_v62  ;;  %v6977_v59 = vunpack.i.h.bf16 %v8679_v31  ;;  %v6976_v62 = vunpack.i.l.bf16 %v8679_v31  ;;  %v12254_v19 = vunpack.i.h.bf16 %v8785_v17 }
 0x24b   : > { %12253 = vst [vmem:[#allocation86_spill] sm:$0xff] %v9887_v9  ;;  %v12021_v13 = vunpack.i.h.bf16 %v9885_v14  ;;  %v7648_v1 = vunpack.i.l.bf16 %v9885_v14  ;;  %v12255_v49 = vunpack.i.h.bf16 %v9450_v15  ;;  %v7653_v50 = vunpack.i.l.bf16 %v9809_v39 }
 0x24c   : > { %3710 = vmatmul.mubr.f32.vlgmr.msra.gmra.mrb[0].mxu0 %v9883_v8  ;;  %6386 = vmatprep.subr.bf16.mxu1 %v6385_v40  ;;  %v590_v12 = vsel %vm577_vm2, %v12254_v19, %v6956_v45  ;;  %v12256_v51 = vunpack.i.h.bf16 %v9434_v48  ;;  %v12257_v31 = vpack.c.bf16 %v9455_v56, %v9446_v52  ;;  %v6996_v45 = vunpack.i.l.bf16 %v8691_v33 }
 0x24d   : > { %v2077_v24 = vsel %vm2074_vm15, %v12255_v49, %v7643_v41  ;;  %6436 = vmatpush1.bf16.msra.mxu0 %v6435_v32  ;;  %v2085_v17 = vsel %vm2074_vm15, %v7648_v1, %v12021_v13  ;;  %3922 = vmatprep.mubr.f32.mxu0 %v9628_v61  ;;  %v12260_v19 = vunpack.i.h.bf16 %v8751_v54  ;;  %v12016_v56 = vunpack.i.h.bf16 %v9824_v43 }
 0x24e   : > { %v2084_v4 = vsel %vm2074_vm15, %v12256_v51, %v7648_v1  ;;  %6388 = vmatpush1.bf16.msra.mxu1 %v12257_v31  ;;  %v9921_v15 = vpop.permute.xlu1 %7656  ;;  %v9923_v41 = vpop.permute.xlu0 %7691  ;;  %6438 = vmatprep.subr.bf16.mxu0 %v6437_v36  ;;  %v6389_v48 = vpack.c.bf16 %v2085_v17, %v2078_v3  ;;  %v2185_v49 = vsel %vm2181_vm9, %v7653_v50, %v12019_v44  ;;  %v12261_v54 = vunpack.i.h.bf16 %v8853_v0 }
 0x24f   : > { %12258 = vst [vmem:[#allocation87_spill] sm:$0xff] %v9921_v15  ;;  %12259 = vst [vmem:[#allocation88_spill] sm:$0xff] %v9923_v41  ;;  %v6391_v40 = vpack.c.bf16 %v2084_v4, %v2077_v24  ;;  %v583_v52 = vsel %vm577_vm2, %v12260_v19, %v6936_v11  ;;  %v12018_v32 = vunpack.i.h.bf16 %v9921_v15  ;;  %v7658_v1 = vunpack.i.l.bf16 %v9921_v15 }
 0x250   : > { %v9935_v51 = vsel %vm12033_vm3, %v6976_v62, %v6977_v59  ;;  %6390 = vmatprep.subr.bf16.mxu1 %v6389_v48  ;;  %v6441_v36 = vpack.c.bf16 %v590_v12, %v583_v52  ;;  %v697_v11 = vsel %vm12033_vm3, %v12261_v54, %v6996_v45  ;;  %v12262_v3 = vunpack.i.h.bf16 %v9524_v7 }
 0x251   : > { %3781 = vmatmul.mubr.f32.vlgmr.msra.gmra.mrb[0].mxu1 %v9625_v37  ;;  %v7663_v4 = vunpack.i.l.bf16 %v9824_v43  ;;  %v12263_v31 = vunpack.i.h.bf16 %v9541_v47  ;;  %v2192_v0 = vsel %vm2181_vm9, %v7658_v1, %v12018_v32  ;;  %v12028_v59 = vunpack.i.l.bf16 %v8719_v10  ;;  %v12418_v43 = vld [vmem:[#allocation47_spill] sm:$0xff] }
 0x252   : > { %v2184_v24 = vsel %vm2181_vm9, %v12262_v3, %v7653_v50  ;;  %6392 = vmatpush1.bf16.msra.mxu1 %v6391_v40  ;;  %6173 = vmatprep.mubr.msk.f32.mxu1 %vm352_vm12, %v9641_v26  ;;  %v12264_v7 = vpack.c.bf16 %v8637_v16, %v8647_v22  ;;  %v9957_v12 = vpop.permute.xlu1 %7666  ;;  %v9959_v50 = vpop.permute.xlu0 %7701  ;;  %v6393_v47 = vpack.c.bf16 %v2192_v0, %v2185_v49  ;;  %v12267_v40 = vunpack.i.h.bf16 %v8823_v18  ;;  %v12271_v0 = vld [vmem:[#allocation72_spill] sm:$0xff] }
 0x253   : > { %v2191_v17 = vsel %vm2181_vm9, %v12263_v31, %v7658_v1  ;;  %12265 = vst [vmem:[#allocation89_spill] sm:$0xff] %v9957_v12  ;;  %12266 = vst [vmem:[#allocation90_spill] sm:$0xff] %v9959_v50  ;;  %v12020_v52 = vunpack.i.h.bf16 %v9851_v6  ;;  %v12017_v1 = vunpack.i.h.bf16 %v9957_v12  ;;  %v7668_v54 = vunpack.i.l.bf16 %v9957_v12 }
 0x254   : > { %6440 = vmatpush1.bf16.msra.mxu0 %v12264_v7  ;;  %v6395_v48 = vpack.c.bf16 %v2191_v17, %v2184_v24  ;;  %v690_v19 = vsel %vm12033_vm3, %v12267_v40, %v6976_v62  ;;  %v2292_v16 = vsel %vm2288_vm11, %v7663_v4, %v12016_v56  ;;  %v6997_v22 = vunpack.i.h.bf16 %v8691_v33  ;;  %6394 = vmatprep.subr.bf16.mxu1 %v6393_v47  ;;  %v12269_v24 = vld [vmem:[#allocation73_spill] sm:$0xff] }
 0x255   : > { %6442 = vmatprep.subr.bf16.mxu0 %v6441_v36  ;;  %v12031_v49 = vunpack.i.l.bf16 %v8703_v35  ;;  %v6445_v3 = vpack.c.bf16 %v697_v11, %v690_v19  ;;  %v12268_v18 = vunpack.i.h.bf16 %v8914_v42  ;;  %v12270_v31 = vunpack.i.h.bf16 %v12269_v24  ;;  %v12273_v47 = vld [vmem:[#allocation5_spill] sm:$0xff]  ;;  %v12274_v42 = vld [vmem:[#allocation8_spill] sm:$0xff]  ;;  %v12275_v19 = vld [vmem:[#allocation7_spill] sm:$0xff] }
 0x256   : > { %v7673_v17 = vunpack.i.l.bf16 %v9851_v6  ;;  %v12272_v7 = vunpack.i.h.bf16 %v12271_v0  ;;  %6396 = vmatpush1.bf16.msra.mxu1 %v6395_v48  ;;  %v2299_v11 = vsel %vm2288_vm11, %v7668_v54, %v12017_v1  ;;  %v12025_v40 = vunpack.i.l.bf16 %v12273_v47  ;;  %v9991_v24 = vpop.permute.xlu1 %7676  ;;  %v12279_v0 = vld [vmem:[#allocation13_spill] sm:$0xff] }
 0x257   : > { %v804_v62 = vsel %vm791_vm4, %v12268_v18, %v12028_v59  ;;  %v2291_v36 = vsel %vm2288_vm11, %v12270_v31, %v7663_v4  ;;  %v12276_v18 = vpack.c.bf16 %v12274_v42, %v12275_v19  ;;  %12277 = vst [vmem:[#allocation73_spill] sm:$0xff] %v9991_v24  ;;  %v9993_v4 = vpop.permute.xlu0 %7711  ;;  %v6397_v31 = vpack.c.bf16 %v2299_v11, %v2292_v16  ;;  %v12282_v19 = vld [vmem:[#allocation19_spill] sm:$0xff]  ;;  %v12303_v59 = vld [vmem:[#allocation14_spill] sm:$0xff] }
 0x258   : > { %v2298_v33 = vsel %vm2288_vm11, %v12272_v7, %v7668_v54  ;;  %12278 = vst [vmem:[#allocation72_spill] sm:$0xff] %v9993_v4  ;;  %v12280_v48 = vunpack.i.h.bf16 %v12279_v0  ;;  %v12026_v54 = vunpack.i.h.bf16 %v9887_v9  ;;  %v12023_v1 = vunpack.i.h.bf16 %v9991_v24 }
 0x259   : > { %6444 = vmatpush1.bf16.msra.mxu0 %v12276_v18  ;;  %v6399_v56 = vpack.c.bf16 %v2298_v33, %v2291_v36  ;;  %v7678_v32 = vunpack.i.l.bf16 %v9991_v24  ;;  %v2399_v42 = vsel %vm2395_vm10, %v7673_v17, %v12020_v52  ;;  %v10007_v16 = vsel %vm12033_vm3, %v6996_v45, %v6997_v22  ;;  %v12281_v36 = vld [vmem:[#allocation4_spill] sm:$0xff]  ;;  %6398 = vmatprep.subr.bf16.mxu1 %v6397_v31  ;;  %v12285_v52 = vld [vmem:[#allocation74_spill] sm:$0xff] }
 0x25a   : > { %v797_v7 = vsel %vm791_vm4, %v12280_v48, %v12031_v49  ;;  %6446 = vmatprep.subr.bf16.mxu0 %v6445_v3  ;;  %v12027_v33 = vunpack.i.l.bf16 %v12281_v36  ;;  %v12283_v18 = vunpack.i.h.bf16 %v12282_v19  ;;  %v12284_v48 = vunpack.i.h.bf16 %v9545_v60  ;;  %v12289_v19 = vld [vmem:[#allocation10_spill] sm:$0xff]  ;;  %v10029_v60 = vpop.permute.xlu1 %7686 }
 0x25b   : > { %v6449_v11 = vpack.c.bf16 %v804_v62, %v797_v7  ;;  %v7683_v44 = vunpack.i.l.bf16 %v9887_v9  ;;  %v12286_v13 = vunpack.i.h.bf16 %v12285_v52  ;;  %6400 = vmatpush1.bf16.msra.mxu1 %v6399_v56  ;;  %v2406_v22 = vsel %vm2395_vm10, %v7678_v32, %v12023_v1  ;;  %v12287_v62 = vld [vmem:[#allocation9_spill] sm:$0xff]  ;;  %v12288_v7 = vld [vmem:[#allocation11_spill] sm:$0xff]  ;;  %12291 = vst [vmem:[#allocation5_spill] sm:$0xff] %v10029_v60 }
 0x25c   : > { %v911_v0 = vsel %vm898_vm5, %v12283_v18, %v12025_v40  ;;  %v2398_v3 = vsel %vm2395_vm10, %v12284_v48, %v7673_v17  ;;  %v12029_v31 = vunpack.i.l.bf16 %v12287_v62  ;;  %v12290_v18 = vpack.c.bf16 %v12288_v7, %v12289_v19  ;;  %v10031_v17 = vpop.permute.xlu0 %7721  ;;  %v12295_v19 = vld [vmem:[#allocation6_spill] sm:$0xff] }
 0x25d   : > { %v2405_v45 = vsel %vm2395_vm10, %v12286_v13, %v7678_v32  ;;  %12292 = vst [vmem:[#allocation8_spill] sm:$0xff] %v10031_v17  ;;  %v6401_v48 = vpack.c.bf16 %v2406_v22, %v2399_v42  ;;  %v12293_v13 = vld [vmem:[#allocation17_spill] sm:$0xff]  ;;  %v12035_v32 = vunpack.i.h.bf16 %v9923_v41  ;;  %v12030_v1 = vunpack.i.h.bf16 %v10029_v60 }
 0x25e   : > { %6448 = vmatpush1.bf16.msra.mxu0 %v12290_v18  ;;  %v6403_v5 = vpack.c.bf16 %v2405_v45, %v2398_v3  ;;  %v12294_v56 = vunpack.i.h.bf16 %v12293_v13  ;;  %v7688_v25 = vunpack.i.l.bf16 %v10029_v60  ;;  %v2506_v7 = vsel %vm12036_vm1, %v7683_v44, %v12026_v54  ;;  %v12296_v3 = vld [vmem:[#allocation12_spill] sm:$0xff] }
 0x25f   : > { %6450 = vmatprep.subr.bf16.mxu0 %v6449_v11  ;;  %v12034_v42 = vunpack.i.l.bf16 %v12295_v19  ;;  %6402 = vmatprep.subr.bf16.mxu1 %v6401_v48  ;;  %v12297_v18 = vld [vmem:[#allocation24_spill] sm:$0xff]  ;;  %v12299_v30 = vunpack.i.h.bf16 %v9570_v20  ;;  %v7693_v40 = vunpack.i.l.bf16 %v9923_v41  ;;  %v12300_v54 = vunpack.i.h.bf16 %v9652_v2  ;;  %v12301_v48 = vld [vmem:[#allocation15_spill] sm:$0xff]  ;;  %v10065_v20 = vpop.permute.xlu1 %7696  ;;  %v12307_v2 = vld [vmem:[#allocation22_spill] sm:$0xff] }
 0x260   : > { %v904_v52 = vsel %vm898_vm5, %v12294_v56, %v12027_v33  ;;  %v12298_v13 = vunpack.i.h.bf16 %v12297_v18  ;;  %6404 = vmatpush1.bf16.msra.mxu1 %v6403_v5  ;;  %v12302_v18 = vld [vmem:[#allocation16_spill] sm:$0xff]  ;;  %12305 = vst [vmem:[#allocation7_spill] sm:$0xff] %v10065_v20  ;;  %v12308_v5 = vunpack.i.h.bf16 %v12307_v2  ;;  %v7698_v49 = vunpack.i.l.bf16 %v10065_v20 }
 0x261   : > { %v6453_v22 = vpack.c.bf16 %v911_v0, %v904_v52  ;;  %v2505_v11 = vsel %vm12036_vm1, %v12299_v30, %v7683_v44  ;;  %v2512_v33 = vsel %vm12036_vm1, %v12300_v54, %v7688_v25  ;;  %v2513_v0 = vsel %vm12036_vm1, %v7688_v25, %v12030_v1  ;;  %v10067_v30 = vpop.permute.xlu0 %7731  ;;  %v12316_v25 = vld [vmem:[#allocation77_spill] sm:$0xff]  ;;  %v12394_v60 = vld [vmem:[#allocation80_spill] sm:$0xff] }
 0x262   : > { %v1018_v56 = vsel %vm1005_vm6, %v12298_v13, %v12029_v31  ;;  %v12037_v52 = vunpack.i.l.bf16 %v12301_v48  ;;  %v12304_v13 = vpack.c.bf16 %v12302_v18, %v12303_v59  ;;  %12306 = vst [vmem:[#allocation13_spill] sm:$0xff] %v10067_v30  ;;  %v6405_v44 = vpack.c.bf16 %v2513_v0, %v2506_v7  ;;  %v12310_v18 = vld [vmem:[#allocation18_spill] sm:$0xff]  ;;  %v12311_v0 = vld [vmem:[#allocation29_spill] sm:$0xff]  ;;  %v12436_v48 = vld [vmem:[#allocation51_spill] sm:$0xff] }
 0x263   : > { %v6407_v31 = vpack.c.bf16 %v2512_v33, %v2505_v11  ;;  %v1011_v54 = vsel %vm1005_vm6, %v12308_v5, %v12034_v42  ;;  %v12039_v1 = vunpack.i.h.bf16 %v10065_v20  ;;  %vm12309_vm2 = vcmask 375808  }
 0x264   : > { %6452 = vmatpush1.bf16.msra.mxu0 %v12304_v13  ;;  %v2613_v59 = vsel %vm12309_vm2, %v7693_v40, %v12035_v32  ;;  %v7177_v7 = vunpack.i.h.bf16 %v12310_v18  ;;  %v7176_v33 = vunpack.i.l.bf16 %v12310_v18  ;;  %6406 = vmatprep.subr.bf16.mxu1 %v6405_v44  ;;  %v6457_v11 = vpack.c.bf16 %v1018_v56, %v1011_v54  ;;  %vm12315_vm3 = vmmov %vm12309_vm2  ;;  %v12319_v44 = vld [vmem:[#allocation23_spill] sm:$0xff]  ;;  %v12320_v18 = vld [vmem:[#allocation21_spill] sm:$0xff] }
 0x265   : > { %6454 = vmatprep.subr.bf16.mxu0 %v6453_v22  ;;  %v12312_v13 = vunpack.i.h.bf16 %v12311_v0  ;;  %vm12313_vm0 = vcmask 875520   ;;  %v12314_v5 = vunpack.i.h.bf16 %v9675_v53  ;;  %v7703_v42 = vunpack.i.l.bf16 %v9959_v50  ;;  %6408 = vmatpush1.bf16.msra.mxu1 %v6407_v31  ;;  %vm12318_vm1 = vmmov %vm12309_vm2  ;;  %v12321_v0 = vld [vmem:[#allocation20_spill] sm:$0xff]  ;;  %v10101_v53 = vpop.permute.xlu1 %7706 }
 0x266   : > { %v12317_v32 = vunpack.i.h.bf16 %v12316_v25  ;;  %v2620_v56 = vsel %vm12318_vm1, %v7698_v49, %v12039_v1  ;;  %v7196_v54 = vunpack.i.l.bf16 %v12319_v44  ;;  %12323 = vst [vmem:[#allocation4_spill] sm:$0xff] %v10101_v53  ;;  %v12325_v25 = vunpack.i.l.bf16 %v12296_v3 }
 0x267   : > { %v1125_v2 = vsel %vm12313_vm0, %v12312_v13, %v12037_v52  ;;  %v2612_v22 = vsel %vm12315_vm3, %v12314_v5, %v7693_v40  ;;  %v12322_v13 = vpack.c.bf16 %v12320_v18, %v12321_v0  ;;  %v10103_v40 = vpop.permute.xlu0 %7741  ;;  %v6409_v5 = vpack.c.bf16 %v2620_v56, %v2613_v59 }
 0x268   : > { %v2619_v45 = vsel %vm12309_vm2, %v12317_v32, %v7698_v49  ;;  %12324 = vst [vmem:[#allocation19_spill] sm:$0xff] %v10103_v40  ;;  %v12326_v32 = vld [vmem:[#allocation28_spill] sm:$0xff]  ;;  %v12042_v1 = vunpack.i.h.bf16 %v10101_v53  ;;  %v7708_v20 = vunpack.i.l.bf16 %v10101_v53  ;;  %v12328_v18 = vunpack.i.h.bf16 %v9959_v50 }
 0x269   : > { %6456 = vmatpush1.bf16.msra.mxu0 %v12322_v13  ;;  %v6411_v52 = vpack.c.bf16 %v2619_v45, %v2612_v22  ;;  %v12327_v31 = vunpack.i.h.bf16 %v12326_v32  ;;  %v7197_v59 = vunpack.i.h.bf16 %v12319_v44  ;;  %6410 = vmatprep.subr.bf16.mxu1 %v6409_v5  ;;  %v12329_v22 = vld [vmem:[#allocation35_spill] sm:$0xff]  ;;  %vm12331_vm3 = vcmask 867328   ;;  %v12336_v5 = vld [vmem:[#allocation26_spill] sm:$0xff] }
 0x26a   : > { %6458 = vmatprep.subr.bf16.mxu0 %v6457_v11  ;;  %v2720_v0 = vsel %vm12043_vm13, %v7703_v42, %v12328_v18  ;;  %v12330_v56 = vunpack.i.h.bf16 %v12329_v22  ;;  %vm12332_vm1 = vmmov %vm12331_vm3  ;;  %v12333_v32 = vunpack.i.h.bf16 %v9630_v57  ;;  %v7713_v11 = vunpack.i.l.bf16 %v9993_v4  ;;  %v10137_v57 = vpop.permute.xlu1 %7716 }
 0x26b   : > { %v1118_v41 = vsel %vm12313_vm0, %v12327_v31, %v12325_v25  ;;  %v10121_v25 = vsel %vm12332_vm1, %v7176_v33, %v7177_v7  ;;  %v12334_v49 = vunpack.i.h.bf16 %v9715_v23  ;;  %6412 = vmatpush1.bf16.msra.mxu1 %v6411_v52  ;;  %v12337_v7 = vld [vmem:[#allocation25_spill] sm:$0xff]  ;;  %12339 = vst [vmem:[#allocation74_spill] sm:$0xff] %v10137_v57  ;;  %vm12342_vm2 = vmmov %vm12332_vm1  ;;  %vm12344_vm0 = vcmask 359424  }
 0x26c   : > { %v6461_v45 = vpack.c.bf16 %v1125_v2, %v1118_v41  ;;  %v1232_v13 = vsel %vm12331_vm3, %v12330_v56, %v7196_v54  ;;  %v2719_v31 = vsel %vm12043_vm13, %v12333_v32, %v7703_v42  ;;  %v2727_v41 = vsel %vm12043_vm13, %v7708_v20, %v12042_v1  ;;  %v12335_v2 = vld [vmem:[#allocation31_spill] sm:$0xff]  ;;  %v10139_v42 = vpop.permute.xlu0 %7751  ;;  %v12340_v23 = vld [vmem:[#allocation33_spill] sm:$0xff] }
 0x26d   : > { %v2726_v18 = vsel %vm12043_vm13, %v12334_v49, %v7708_v20  ;;  %v12338_v22 = vpack.c.bf16 %v12336_v5, %v12337_v7  ;;  %v6413_v56 = vpack.c.bf16 %v2727_v41, %v2720_v0  ;;  %v12341_v50 = vunpack.i.h.bf16 %v12340_v23  ;;  %vm12353_vm13 = vmmov %vm12344_vm0 }
 0x26e   : > { %v6415_v32 = vpack.c.bf16 %v2726_v18, %v2719_v31  ;;  %v12044_v20 = vunpack.i.h.bf16 %v10137_v57  ;;  %v7718_v1 = vunpack.i.l.bf16 %v10137_v57  ;;  %v12343_v5 = vunpack.i.h.bf16 %v9993_v4  ;;  %v12347_v18 = vld [vmem:[#allocation40_spill] sm:$0xff]  ;;  %v12371_v4 = vld [vmem:[#allocation82_spill] sm:$0xff] }
 0x26f   : > { %6460 = vmatpush1.bf16.msra.mxu0 %v12338_v22  ;;  %v1225_v52 = vsel %vm12342_vm2, %v12341_v50, %v7176_v33  ;;  %v12345_v22 = vld [vmem:[#allocation27_spill] sm:$0xff]  ;;  %6414 = vmatprep.subr.bf16.mxu1 %v6413_v56  ;;  %v12346_v31 = vunpack.i.l.bf16 %v12335_v2  ;;  %v12348_v41 = vunpack.i.h.bf16 %v12347_v18  ;;  %vm12349_vm3 = vcmask 228352   ;;  %vm12351_vm2 = vmmov %vm12344_vm0  ;;  %v12355_v18 = vld [vmem:[#allocation32_spill] sm:$0xff] }
 0x270   : > { %6462 = vmatprep.subr.bf16.mxu0 %v6461_v45  ;;  %v2827_v7 = vsel %vm12344_vm0, %v7713_v11, %v12343_v5  ;;  %v12045_v44 = vunpack.i.l.bf16 %v12345_v22  ;;  %v6465_v0 = vpack.c.bf16 %v1232_v13, %v1225_v52  ;;  %v10157_v33 = vsel %vm12332_vm1, %v7196_v54, %v7197_v59  ;;  %6416 = vmatpush1.bf16.msra.mxu1 %v6415_v32  ;;  %v12354_v52 = vld [vmem:[#allocation39_spill] sm:$0xff]  ;;  %v12356_v54 = vld [vmem:[#allocation30_spill] sm:$0xff]  ;;  %v12378_v57 = vld [vmem:[#allocation36_spill] sm:$0xff] }
 0x271   : > { %v1339_v50 = vsel %vm12349_vm3, %v12348_v41, %v12346_v31  ;;  %v12350_v23 = vunpack.i.h.bf16 %v9739_v38  ;;  %v7723_v49 = vunpack.i.l.bf16 %v10031_v17  ;;  %v12352_v5 = vunpack.i.h.bf16 %v9677_v34  ;;  %v10173_v38 = vpop.permute.xlu1 %7726  ;;  %v12359_v34 = vld [vmem:[#allocation38_spill] sm:$0xff] }
 0x272   : > { %v2834_v13 = vsel %vm12353_vm13, %v7718_v1, %v12044_v20  ;;  %v12357_v59 = vpack.c.bf16 %v12355_v18, %v12356_v54  ;;  %12358 = vst [vmem:[#allocation9_spill] sm:$0xff] %v10173_v38  ;;  %v12360_v32 = vunpack.i.h.bf16 %v12359_v34  ;;  %v7728_v31 = vunpack.i.l.bf16 %v10173_v38  ;;  %v12365_v34 = vld [vmem:[#allocation45_spill] sm:$0xff] }
 0x273   : > { %v2826_v45 = vsel %vm12351_vm2, %v12350_v23, %v7713_v11  ;;  %v2833_v56 = vsel %vm12344_vm0, %v12352_v5, %v7718_v1  ;;  %v10175_v11 = vpop.permute.xlu0 %7761  ;;  %v6417_v41 = vpack.c.bf16 %v2834_v13, %v2827_v7  ;;  %v12361_v18 = vunpack.i.h.bf16 %v10031_v17  ;;  %v12368_v1 = vld [vmem:[#allocation79_spill] sm:$0xff] }
 0x274   : > { %6464 = vmatpush1.bf16.msra.mxu0 %v12357_v59  ;;  %v6419_v23 = vpack.c.bf16 %v2833_v56, %v2826_v45  ;;  %v1332_v5 = vsel %vm12349_vm3, %v12360_v32, %v12045_v44  ;;  %vm12362_vm13 = vcmask 293888   ;;  %v12363_v45 = vld [vmem:[#allocation34_spill] sm:$0xff]  ;;  %v12364_v59 = vunpack.i.l.bf16 %v12354_v52 }
 0x275   : > { %6466 = vmatprep.subr.bf16.mxu0 %v6465_v0  ;;  %v2934_v54 = vsel %vm12362_vm13, %v7723_v49, %v12361_v18  ;;  %6418 = vmatprep.subr.bf16.mxu1 %v6417_v41  ;;  %v6469_v13 = vpack.c.bf16 %v1339_v50, %v1332_v5  ;;  %v12366_v32 = vunpack.i.h.bf16 %v12365_v34  ;;  %vm12367_vm1 = vcmask 220160   ;;  %vm12370_vm2 = vmmov %vm12362_vm13  ;;  %v12376_v5 = vld [vmem:[#allocation46_spill] sm:$0xff]  ;;  %v12377_v34 = vld [vmem:[#allocation37_spill] sm:$0xff] }
 0x276   : > { %v12369_v20 = vunpack.i.h.bf16 %v12368_v1  ;;  %v7733_v17 = vunpack.i.l.bf16 %v10067_v30  ;;  %v12372_v18 = vunpack.i.h.bf16 %v12371_v4  ;;  %vm12373_vm0 = vmmov %vm12370_vm2  ;;  %6420 = vmatpush1.bf16.msra.mxu1 %v6419_v23  ;;  %v12374_v41 = vunpack.i.h.bf16 %v10173_v38  ;;  %v10209_v1 = vpop.permute.xlu1 %7736 }
 0x277   : > { %v1446_v44 = vsel %vm12367_vm1, %v12366_v32, %v12364_v59  ;;  %vm12375_vm3 = vmmov %vm12373_vm0  ;;  %v12379_v59 = vpack.c.bf16 %v12377_v34, %v12378_v57  ;;  %12380 = vst [vmem:[#allocation11_spill] sm:$0xff] %v10209_v1  ;;  %v12381_v4 = vunpack.i.l.bf16 %v12363_v45  ;;  %v7738_v56 = vunpack.i.l.bf16 %v10209_v1 }
 0x278   : > { %v2933_v0 = vsel %vm12370_vm2, %v12369_v20, %v7723_v49  ;;  %v2940_v7 = vsel %vm12373_vm0, %v12372_v18, %v7728_v31  ;;  %v2941_v50 = vsel %vm12375_vm3, %v7728_v31, %v12374_v41  ;;  %v10211_v49 = vpop.permute.xlu0 %7771  ;;  %v12382_v18 = vld [vmem:[#allocation44_spill] sm:$0xff]  ;;  %vm12384_vm13 = vmmov %vm12367_vm1  ;;  %v12385_v57 = vunpack.i.h.bf16 %v10067_v30  ;;  %v12392_v41 = vld [vmem:[#allocation83_spill] sm:$0xff] }
 0x279   : > { %6468 = vmatpush1.bf16.msra.mxu0 %v12379_v59  ;;  %v6421_v20 = vpack.c.bf16 %v2941_v50, %v2934_v54  ;;  %v6423_v32 = vpack.c.bf16 %v2940_v7, %v2933_v0  ;;  %v12383_v23 = vunpack.i.h.bf16 %v12382_v18  ;;  %v12386_v59 = vld [vmem:[#allocation43_spill] sm:$0xff]  ;;  %v12387_v7 = vld [vmem:[#allocation52_spill] sm:$0xff]  ;;  %v12388_v18 = vunpack.i.l.bf16 %v12376_v5 }
 0x27a   : > { %6470 = vmatprep.subr.bf16.mxu0 %v6469_v13  ;;  %v3041_v34 = vsel %vm3037_vm7, %v7733_v17, %v12385_v57  ;;  %vm12391_vm1 = vcmask 211968   ;;  %v12393_v53 = vunpack.i.h.bf16 %v12392_v41  ;;  %v7743_v30 = vunpack.i.l.bf16 %v10103_v40 }
 0x27b   : > { %v1439_v38 = vsel %vm12384_vm13, %v12383_v23, %v12381_v4  ;;  %6422 = vmatprep.subr.bf16.mxu1 %v6421_v20  ;;  %v12389_v4 = vld [vmem:[#allocation50_spill] sm:$0xff]  ;;  %v12395_v57 = vunpack.i.h.bf16 %v12394_v60  ;;  %v12396_v20 = vunpack.i.h.bf16 %v10209_v1  ;;  %vm12405_vm2 = vmmov %vm12391_vm1  ;;  %vm12410_vm0 = vcmask 146432  }
 0x27c   : > { %v6473_v50 = vpack.c.bf16 %v1446_v44, %v1439_v38  ;;  %v12390_v23 = vunpack.i.h.bf16 %v12389_v4  ;;  %v3040_v13 = vsel %vm3037_vm7, %v12393_v53, %v7733_v17  ;;  %6424 = vmatpush1.bf16.msra.mxu1 %v6423_v32  ;;  %v7237_v38 = vunpack.i.h.bf16 %v12335_v2  ;;  %v12397_v4 = vld [vmem:[#allocation55_spill] sm:$0xff]  ;;  %v10246_v17 = vpop.permute.xlu1 %7746  ;;  %v10248_v53 = vpop.permute.xlu0 %7781  ;;  %v12411_v32 = vld [vmem:[#allocation58_spill] sm:$0xff]  ;;  %vm12423_vm3 = vmmov %vm12410_vm0 }
 0x27d   : > { %v3047_v54 = vsel %vm3037_vm7, %v12395_v57, %v7738_v56  ;;  %v3048_v44 = vsel %vm3037_vm7, %v7738_v56, %v12396_v20  ;;  %12401 = vst [vmem:[#allocation10_spill] sm:$0xff] %v10246_v17  ;;  %v7748_v57 = vunpack.i.l.bf16 %v10246_v17  ;;  %v12402_v56 = vunpack.i.l.bf16 %v12386_v59  ;;  %v12403_v20 = vld [vmem:[#allocation49_spill] sm:$0xff] }
 0x27e   : > { %v1553_v31 = vsel %vm12391_vm1, %v12390_v23, %v12388_v18  ;;  %v12398_v18 = vld [vmem:[#allocation42_spill] sm:$0xff]  ;;  %v12399_v23 = vld [vmem:[#allocation41_spill] sm:$0xff]  ;;  %v6425_v60 = vpack.c.bf16 %v3048_v44, %v3041_v34  ;;  %v6427_v9 = vpack.c.bf16 %v3047_v54, %v3040_v13  ;;  %v12404_v1 = vunpack.i.h.bf16 %v12403_v20 }
 0x27f   : > { %v12400_v41 = vpack.c.bf16 %v12398_v18, %v12399_v23  ;;  %v12406_v18 = vunpack.i.h.bf16 %v10103_v40  ;;  %v7277_v34 = vunpack.i.h.bf16 %v12354_v52  ;;  %v12408_v13 = vld [vmem:[#allocation54_spill] sm:$0xff]  ;;  %v12414_v24 = vunpack.i.h.bf16 %v9822_v58 }
 0x280   : > { %v1546_v0 = vsel %vm12405_vm2, %v12404_v1, %v12402_v56  ;;  %6426 = vmatprep.subr.bf16.mxu1 %v6425_v60  ;;  %v12409_v44 = vunpack.i.h.bf16 %v12408_v13  ;;  %v12412_v56 = vld [vmem:[#allocation81_spill] sm:$0xff]  ;;  %v12415_v60 = vunpack.i.h.bf16 %v10246_v17  ;;  %v12417_v13 = vld [vmem:[#allocation48_spill] sm:$0xff]  ;;  %v12420_v58 = vunpack.i.l.bf16 %v12397_v4  ;;  %v384_v17 = vld [vmem:[%s8473_s26 + $0x30] sm:$0xff] }
 0x281   : > { %6472 = vmatpush1.bf16.msra.mxu0 %v12400_v41  ;;  %v3148_v23 = vsel %vm3144_vm8, %v7743_v30, %v12406_v18  ;;  %v7257_v41 = vunpack.i.h.bf16 %v12363_v45  ;;  %v6477_v54 = vpack.c.bf16 %v1553_v31, %v1546_v0  ;;  %v12413_v40 = vunpack.i.h.bf16 %v12412_v56  ;;  %6428 = vmatpush1.bf16.msra.mxu1 %v6427_v9  ;;  %v12416_v0 = vld [vmem:[#allocation61_spill] sm:$0xff]  ;;  %v10283_v56 = vpop.permute.xlu0 %7791 }
 0x282   : > { %6474 = vmatprep.subr.bf16.mxu0 %v6473_v50  ;;  %v12407_v50 = vunpack.i.l.bf16 %v12387_v7  ;;  %v3154_v6 = vsel %vm3144_vm8, %v12414_v24, %v7748_v57  ;;  %v3155_v31 = vsel %vm3144_vm8, %v7748_v57, %v12415_v60  ;;  %v12421_v24 = vld [vmem:[#allocation56_spill] sm:$0xff]  ;;  %v391_v57 = vld [vmem:[%s8473_s26 + $0x78] sm:$0xff]  ;;  %v7017_v60 = vunpack.i.h.bf16 %v8703_v35  ;;  %s12078_s26 = smov 39  }
 0x283   : > { %v3147_v18 = vsel %vm3144_vm8, %v12413_v40, %v7743_v30  ;;  %v6429_v30 = vpack.c.bf16 %v3155_v31, %v3148_v23  ;;  %v12422_v9 = vunpack.i.h.bf16 %v12421_v24  ;;  %v7037_v12 = vunpack.i.h.bf16 %v8719_v10 }
 0x284   : > { %v1653_v20 = vsel %vm12410_vm0, %v12409_v44, %v12407_v50  ;;  %v12419_v50 = vpack.c.bf16 %v12417_v13, %v12418_v43  ;;  %v10281_v44 = vpop.permute.xlu1 %7756  ;;  %v6431_v40 = vpack.c.bf16 %v3154_v6, %v3147_v18  ;;  %v7057_v43 = vunpack.i.h.bf16 %v12281_v36 }
 0x285   : > { %v1660_v1 = vsel %vm12423_vm3, %v12422_v9, %v12420_v58  ;;  %v7077_v13 = vunpack.i.h.bf16 %v12273_v47  ;;  %6430 = vmatprep.subr.bf16.mxu1 %v6429_v30  ;;  %v6541_v6 = vpack.c.bf16 %v10157_v33, %v10121_v25  ;;  %v12424_v23 = vunpack.i.h.bf16 %v12345_v22 }
 0x286   : > { %6476 = vmatpush1.bf16.msra.mxu0 %v12419_v50  ;;  %v12425_v18 = vunpack.i.l.bf16 %v12345_v22  ;;  %vm12426_vm13 = vcmask 228352   ;;  %v12427_v50 = vunpack.i.l.bf16 %v12335_v2  ;;  %v12429_v24 = vunpack.i.l.bf16 %v12363_v45  ;;  %6432 = vmatpush1.bf16.msra.mxu1 %v6431_v40  ;;  %v12433_v22 = vld [vmem:[#allocation64_spill] sm:$0xff]  ;;  %v12435_v2 = vld [vmem:[#allocation53_spill] sm:$0xff]  ;;  %v12443_v40 = vld [vmem:[#allocation62_spill] sm:$0xff] }
 0x287   : > { %6478 = vmatprep.subr.bf16.mxu0 %v6477_v54  ;;  %vm12428_vm1 = vmmov %vm12426_vm13  ;;  %vm12430_vm2 = vcmask 220160   ;;  %v7297_v54 = vunpack.i.h.bf16 %v12386_v59  ;;  %v6481_v30 = vpack.c.bf16 %v1660_v1, %v1653_v20  ;;  %v6543_v15 = vpack.c.bf16 %v391_v57, %v384_v17  ;;  %6542 = vmatprep.subr.bf16.mxu1 %v6541_v6  ;;  %v12439_v17 = vld [vmem:[#allocation60_spill] sm:$0xff] }
 0x288   : > { %v1333_v31 = vsel %vm12426_vm13, %v12425_v18, %v12424_v23  ;;  %v1340_v58 = vsel %vm12428_vm1, %v12427_v50, %v7237_v38  ;;  %v1440_v9 = vsel %vm12430_vm2, %v12429_v24, %v7257_v41  ;;  %v12431_v25 = vunpack.i.l.bf16 %v12354_v52  ;;  %vm12432_vm0 = vmmov %vm12430_vm2  ;;  %v12434_v23 = vld [vmem:[#allocation67_spill] sm:$0xff]  ;;  %v10318_v45 = vpop.permute.xlu1 %7766  ;;  %v10320_v41 = vpop.permute.xlu0 %7801 }
 0x289   : > { %v7418_v26 = vunpack.i.l.bf16 %v12433_v22  ;;  %v12069_v18 = vunpack.i.l.bf16 %v12434_v23  ;;  %v12437_v38 = vpack.c.bf16 %v12435_v2, %v12436_v48  ;;  %v12438_v20 = vunpack.i.l.bf16 %v12411_v32  ;;  %3852 = vmatmul.mubr.f32.vlgmr.msra.gmra.mrb[0].mxu1 %v9883_v8 }
 0x28a   : > { %v1447_v33 = vsel %vm12432_vm0, %v12431_v25, %v7277_v34  ;;  %v12440_v1 = vunpack.i.h.bf16 %v12439_v17  ;;  %vm12441_vm3 = vcmask 138240   ;;  %v12442_v34 = vunpack.i.l.bf16 %v12416_v0  ;;  %6544 = vmatpush3.bf16.msra.mxu1 %v6543_v15  ;;  %4064 = vmatprep.mubr.f32.mxu1 %v9628_v61  ;;  %v12456_v61 = vld [vmem:[#allocation68_spill] sm:$0xff] }
 0x28b   : > { %6480 = vmatpush1.bf16.msra.mxu0 %v12437_v38  ;;  %v12444_v57 = vunpack.i.h.bf16 %v12443_v40  ;;  %vm12445_vm13 = vmmov %vm12441_vm3  ;;  %v12446_v48 = vunpack.i.l.bf16 %v8703_v35  ;;  %v12447_v25 = vunpack.i.l.bf16 %v8719_v10  ;;  %v6551_v2 = vpack.c.bf16 %v9898_v21, %v9880_v29 }
 0x28c   : > { %v1760_v52 = vsel %vm12441_vm3, %v12440_v1, %v12438_v20  ;;  %6482 = vmatprep.subr.bf16.mxu0 %v6481_v30  ;;  %v6555_v38 = vpack.c.bf16 %v10007_v16, %v9935_v51  ;;  %v12448_v20 = vunpack.i.l.bf16 %v12281_v36  ;;  %v12449_v35 = vunpack.i.l.bf16 %v12273_v47  ;;  %v12450_v47 = vld [vmem:[#allocation59_spill] sm:$0xff]  ;;  %v12451_v1 = vld [vmem:[#allocation57_spill] sm:$0xff]  ;;  %v10367_v40 = vpop.permute.xlu0 %7811 }
 0x28d   : > { %v1767_v50 = vsel %vm12445_vm13, %v12444_v57, %v12442_v34  ;;  %v10335_v24 = vsel %vm791_vm4, %v12446_v48, %v7017_v60  ;;  %v10340_v6 = vsel %vm791_vm4, %v12447_v25, %v7037_v12  ;;  %v7317_v10 = vunpack.i.h.bf16 %v12376_v5  ;;  %v10365_v34 = vpop.permute.xlu1 %7776  ;;  %v12461_v25 = vld [vmem:[#allocation70_spill] sm:$0xff] }
 0x28e   : > { %v10349_v17 = vsel %vm898_vm5, %v12448_v20, %v7057_v43  ;;  %v10354_v60 = vsel %vm898_vm5, %v12449_v35, %v7077_v13  ;;  %v6545_v12 = vpack.c.bf16 %v1340_v58, %v1333_v31  ;;  %v7097_v29 = vunpack.i.h.bf16 %v12295_v19  ;;  %v12453_v31 = vld [vmem:[#allocation66_spill] sm:$0xff] }
 0x28f   : > { %v7117_v21 = vunpack.i.h.bf16 %v12287_v62  ;;  %v6485_v36 = vpack.c.bf16 %v1767_v50, %v1760_v52  ;;  %v6549_v43 = vpack.c.bf16 %v1447_v33, %v1440_v9  ;;  %v12068_v30 = vunpack.i.l.bf16 %v10139_v42 }
 0x290   : > { %v12452_v13 = vpack.c.bf16 %v12450_v47, %v12451_v1  ;;  %6546 = vmatprep.subr.bf16.mxu1 %v6545_v12  ;;  %v12454_v58 = vunpack.i.h.bf16 %v12453_v31  ;;  %vm12455_vm5 = vcmask 130048   ;;  %v12457_v9 = vunpack.i.h.bf16 %v12456_v61 }
 0x291   : > { %vm12458_vm1 = vmmov %vm12455_vm5  ;;  %v12459_v52 = vunpack.i.l.bf16 %v12386_v59  ;;  %vm12460_vm2 = vcmask 211968   ;;  %v7339_v50 = vunpack.i.h.bf16 %v12387_v7  ;;  %v7359_v48 = vunpack.i.h.bf16 %v12397_v4 }
 0x292   : > { %6484 = vmatpush1.bf16.msra.mxu0 %v12452_v13  ;;  %v1866_v15 = vsel %vm12455_vm5, %v12454_v58, %v7418_v26  ;;  %v1873_v33 = vsel %vm12458_vm1, %v12457_v9, %v12069_v18  ;;  %v12066_v20 = vunpack.i.l.bf16 %v12461_v25  ;;  %v7454_v35 = vunpack.i.h.bf16 %v9422_v27  ;;  %vm12463_vm0 = vmmov %vm12460_vm2 }
 0x293   : > { %v1547_v57 = vsel %vm12460_vm2, %v12459_v52, %v7297_v54  ;;  %6486 = vmatprep.subr.bf16.mxu0 %v6485_v36  ;;  %v7639_v12 = vunpack.i.h.bf16 %v9849_v46  ;;  %v12067_v47 = vunpack.i.h.bf16 %v10175_v11  ;;  %v12065_v1 = vunpack.i.h.bf16 %v10281_v44  ;;  %v12467_v52 = vld [vmem:[#allocation65_spill] sm:$0xff]  ;;  %vm12482_vm5 = vmmov %vm12445_vm13 }
 0x294   : > { %v12462_v13 = vunpack.i.l.bf16 %v12376_v5  ;;  %v12464_v54 = vunpack.i.l.bf16 %v12295_v19  ;;  %v12465_v58 = vpack.c.bf16 %v9856_v55, %v9835_v63  ;;  %v6489_v36 = vpack.c.bf16 %v1873_v33, %v1866_v15  ;;  %v10414_v63 = vpop.permute.xlu1 %7786  ;;  %v10416_v15 = vpop.permute.xlu0 %7821  ;;  %vm12484_vm2 = vmmov %vm12458_vm1 }
 0x295   : > { %v12466_v5 = vunpack.i.l.bf16 %v12287_v62  ;;  %v7763_v19 = vunpack.i.l.bf16 %v10175_v11  ;;  %v1980_v62 = vsel %vm1967_vm14, %v7639_v12, %v12068_v30 }
 0x296   : > { %v1554_v59 = vsel %vm12463_vm0, %v12462_v13, %v7317_v10  ;;  %v10395_v31 = vsel %vm1005_vm6, %v12464_v54, %v7097_v29  ;;  %6548 = vmatpush3.bf16.msra.mxu1 %v12465_v58  ;;  %v7758_v29 = vunpack.i.l.bf16 %v10281_v44  ;;  %v12468_v13 = vld [vmem:[#allocation63_spill] sm:$0xff]  ;;  %v12470_v54 = vunpack.i.l.bf16 %v12387_v7 }
 0x297   : > { %v10407_v10 = vsel %vm1005_vm6, %v12466_v5, %v7117_v21  ;;  %v12469_v55 = vpack.c.bf16 %v12467_v52, %v12468_v13  ;;  %6550 = vmatprep.subr.bf16.mxu1 %v6549_v43  ;;  %v1973_v21 = vsel %vm1967_vm14, %v7454_v35, %v12066_v20  ;;  %v6553_v33 = vpack.c.bf16 %v1554_v59, %v1547_v57  ;;  %v12475_v20 = vld [vmem:[#allocation71_spill] sm:$0xff] }
 0x298   : > { %vm12471_vm6 = vcmask 146432   ;;  %v12472_v5 = vunpack.i.l.bf16 %v12397_v4  ;;  %v7774_v43 = vunpack.i.h.bf16 %v10211_v49  ;;  %v7769_v13 = vunpack.i.h.bf16 %v10318_v45  ;;  %v10450_v30 = vpop.permute.xlu1 %7796  ;;  %v10452_v61 = vpop.permute.xlu0 %7831 }
 0x299   : > { %6488 = vmatpush1.bf16.msra.mxu0 %v12469_v55  ;;  %v1654_v58 = vsel %vm12471_vm6, %v12470_v54, %v7339_v50  ;;  %vm12473_vm3 = vmmov %vm12471_vm6  ;;  %v2087_v57 = vsel %vm2074_vm15, %v7763_v19, %v12067_v47  ;;  %v7379_v7 = vunpack.i.h.bf16 %v12411_v32  ;;  %v7399_v50 = vunpack.i.h.bf16 %v12416_v0  ;;  %v12476_v47 = vld [vmem:[#allocation69_spill] sm:$0xff] }
 0x29a   : > { %6490 = vmatprep.subr.bf16.mxu0 %v6489_v36  ;;  %v1661_v52 = vsel %vm12473_vm3, %v12472_v5, %v7359_v48  ;;  %v2080_v36 = vsel %vm2074_vm15, %v7758_v29, %v12065_v1  ;;  %v12474_v4 = vunpack.i.l.bf16 %v9849_v46  ;;  %6552 = vmatpush3.bf16.msra.mxu1 %v6551_v2  ;;  %v6493_v59 = vpack.c.bf16 %v1980_v62, %v1973_v21 }
 0x29b   : > { %v7419_v55 = vunpack.i.h.bf16 %v12433_v22  ;;  %v7439_v54 = vunpack.i.h.bf16 %v12434_v23  ;;  %v7773_v5 = vunpack.i.l.bf16 %v10211_v49  ;;  %v7768_v1 = vunpack.i.l.bf16 %v10318_v45  ;;  %6554 = vmatprep.subr.bf16.mxu1 %v6553_v33 }
 0x29c   : > { %v1979_v48 = vsel %vm1967_vm14, %v12474_v4, %v7639_v12  ;;  %v12477_v9 = vpack.c.bf16 %v12475_v20, %v12476_v47  ;;  %v12478_v46 = vunpack.i.l.bf16 %v9422_v27  ;;  %v7784_v12 = vunpack.i.h.bf16 %v10248_v53 }
 0x29d   : > { %v6557_v62 = vpack.c.bf16 %v1661_v52, %v1654_v58  ;;  %v6497_v21 = vpack.c.bf16 %v2087_v57, %v2080_v36  ;;  %v7779_v4 = vunpack.i.h.bf16 %v10365_v34  ;;  %v2187_v20 = vsel %vm2181_vm9, %v7768_v1, %v7769_v13  ;;  %v10478_v57 = vpop.permute.xlu1 %7806 }
 0x29e   : > { %6492 = vmatpush1.bf16.msra.mxu0 %v12477_v9  ;;  %v1972_v2 = vsel %vm1967_vm14, %v12478_v46, %v7454_v35  ;;  %v2194_v47 = vsel %vm2181_vm9, %v7773_v5, %v7774_v43  ;;  %v7783_v27 = vunpack.i.l.bf16 %v10248_v53  ;;  %v12479_v35 = vunpack.i.h.bf16 %v9796_v28  ;;  %6556 = vmatpush3.bf16.msra.mxu1 %v6555_v38  ;;  %v12532_v53 = vld [vmem:[#allocation4_spill] sm:$0xff] }
 0x29f   : > { %6494 = vmatprep.subr.bf16.mxu0 %v6493_v59  ;;  %v6495_v18 = vpack.c.bf16 %v1979_v48, %v1972_v2  ;;  %v12480_v33 = vunpack.i.l.bf16 %v12411_v32  ;;  %v6567_v52 = vpack.c.bf16 %v10407_v10, %v10395_v31  ;;  %v7778_v36 = vunpack.i.l.bf16 %v10365_v34  ;;  %v10480_v48 = vpop.permute.xlu0 %7841  ;;  %6558 = vmatprep.subr.bf16.mxu1 %v6557_v62  ;;  %v12488_v62 = vld [vmem:[#allocation15_spill] sm:$0xff] }
 0x2a0   : > { %v2079_v9 = vsel %vm2074_vm15, %v12479_v35, %v7758_v29  ;;  %v12481_v28 = vunpack.i.l.bf16 %v12416_v0  ;;  %v1867_v16 = vsel %vm12458_vm1, %v7418_v26, %v7419_v55  ;;  %v12483_v32 = vunpack.i.l.bf16 %v12434_v23  ;;  %v12489_v35 = vld [vmem:[#allocation78_spill] sm:$0xff] }
 0x2a1   : > { %v1761_v58 = vsel %vm12445_vm13, %v12480_v33, %v7379_v7  ;;  %v7754_v29 = vunpack.i.h.bf16 %v10139_v42  ;;  %v6501_v59 = vpack.c.bf16 %v2194_v47, %v2187_v20  ;;  %v2301_v0 = vsel %vm2288_vm11, %v7783_v27, %v7784_v12 }
 0x2a2   : > { %6496 = vmatpush1.bf16.msra.mxu0 %v6495_v18  ;;  %v1768_v51 = vsel %vm12482_vm5, %v12481_v28, %v7399_v50  ;;  %v1874_v38 = vsel %vm12484_vm2, %v12483_v32, %v7439_v54  ;;  %v12485_v18 = vunpack.i.h.bf16 %v9885_v14  ;;  %v7794_v22 = vunpack.i.h.bf16 %v10283_v56 }
 0x2a3   : > { %6498 = vmatprep.subr.bf16.mxu0 %v6497_v21  ;;  %v7789_v26 = vunpack.i.h.bf16 %v10414_v63  ;;  %v2294_v23 = vsel %vm2288_vm11, %v7778_v36, %v7779_v4  ;;  %v7137_v55 = vunpack.i.h.bf16 %v12296_v3  ;;  %v7459_v14 = vunpack.i.h.bf16 %v12461_v25 }
 0x2a4   : > { %v2086_v7 = vsel %vm2074_vm15, %v12485_v18, %v7763_v19  ;;  %v12486_v19 = vunpack.i.h.bf16 %v9809_v39  ;;  %v12487_v46 = vpack.c.bf16 %v10340_v6, %v10335_v24  ;;  %v6561_v2 = vpack.c.bf16 %v1768_v51, %v1761_v58  ;;  %v10517_v39 = vpop.permute.xlu1 %7816  ;;  %v10523_v6 = vpop.permute.xlu0 %7851 }
 0x2a5   : > { %v6499_v50 = vpack.c.bf16 %v2086_v7, %v2079_v9  ;;  %3923 = vmatmul.mubr.f32.vlgmr.msra.gmra.mrb[2].mxu0 %v9625_v37  ;;  %v7157_v21 = vunpack.i.h.bf16 %v12488_v62  ;;  %v7793_v20 = vunpack.i.l.bf16 %v10283_v56  ;;  %v7788_v47 = vunpack.i.l.bf16 %v10414_v63  ;;  %v12490_v9 = vld [vmem:[#allocation87_spill] sm:$0xff] }
 0x2a6   : > { %v2186_v54 = vsel %vm2181_vm9, %v12486_v19, %v7768_v1  ;;  %6560 = vmatpush3.bf16.msra.mxu1 %v12487_v46  ;;  %6174 = vmatprep.mubr.msk.f32.mxu0 %vm352_vm12, %v12489_v35  ;;  %v6565_v1 = vpack.c.bf16 %v1874_v38, %v1867_v16  ;;  %v12491_v33 = vunpack.i.h.bf16 %v12490_v9  ;;  %v7804_v24 = vunpack.i.h.bf16 %v10320_v41 }
 0x2a7   : > { %6500 = vmatpush1.bf16.msra.mxu0 %v6499_v50  ;;  %6562 = vmatprep.subr.bf16.mxu1 %v6561_v2  ;;  %v6505_v58 = vpack.c.bf16 %v2301_v0, %v2294_v23  ;;  %v12492_v51 = vunpack.i.l.bf16 %v10139_v42  ;;  %v7799_v18 = vunpack.i.h.bf16 %v10450_v30  ;;  %v2401_v16 = vsel %vm2395_vm10, %v7788_v47, %v7789_v26  ;;  %v12495_v42 = vld [vmem:[#allocation84_spill] sm:$0xff]  ;;  %v12501_v2 = vld [vmem:[#allocation89_spill] sm:$0xff] }
 0x2a8   : > { %v2193_v28 = vsel %vm2181_vm9, %v12491_v33, %v7773_v5  ;;  %6502 = vmatprep.subr.bf16.mxu0 %v6501_v59  ;;  %v2408_v5 = vsel %vm2395_vm10, %v7793_v20, %v7794_v22  ;;  %v12493_v38 = vunpack.i.l.bf16 %v12296_v3  ;;  %vm12494_vm0 = vcmask 875520  }
 0x2a9   : > { %v1981_v32 = vsel %vm1967_vm14, %v12492_v51, %v7754_v29  ;;  %v6503_v7 = vpack.c.bf16 %v2193_v28, %v2186_v54  ;;  %v7803_v0 = vunpack.i.l.bf16 %v10320_v41  ;;  %v12496_v50 = vunpack.i.h.bf16 %v12495_v42  ;;  %vm12500_vm6 = vmmov %vm12494_vm0 }
 0x2aa   : > { %v1119_v59 = vsel %vm12494_vm0, %v12493_v38, %v7137_v55  ;;  %v12497_v23 = vpack.c.bf16 %v10354_v60, %v10349_v17  ;;  %v12498_v19 = vunpack.i.l.bf16 %v12461_v25  ;;  %v12499_v46 = vunpack.i.l.bf16 %v12488_v62 }
 0x2ab   : > { %v2293_v29 = vsel %vm2288_vm11, %v12496_v50, %v7778_v36  ;;  %v12502_v55 = vunpack.i.h.bf16 %v12501_v2  ;;  %v7798_v33 = vunpack.i.l.bf16 %v10450_v30  ;;  %6504 = vmatpush1.bf16.msra.mxu0 %v6503_v7  ;;  %v7827_v36 = vpop.permute.xlu1 %7826  ;;  %v6509_v25 = vpack.c.bf16 %v2408_v5, %v2401_v16  ;;  %v10568_v5 = vpop.permute.xlu0 %7861 }
 0x2ac   : > { %6564 = vmatpush3.bf16.msra.mxu1 %v12497_v23  ;;  %v1974_v54 = vsel %vm1967_vm14, %v12498_v19, %v7459_v14  ;;  %v1126_v3 = vsel %vm12500_vm6, %v12499_v46, %v7157_v21  ;;  %v7829_v17 = vunpack.i.h.bf16 %v7827_v36  ;;  %v7828_v60 = vunpack.i.l.bf16 %v7827_v36  ;;  %6506 = vmatprep.subr.bf16.mxu0 %v6505_v58  ;;  %v12509_v46 = vld [vmem:[#allocation73_spill] sm:$0xff] }
 0x2ad   : > { %v2300_v9 = vsel %vm2288_vm11, %v12502_v55, %v7783_v27  ;;  %6566 = vmatprep.subr.bf16.mxu1 %v6565_v1  ;;  %v6569_v28 = vpack.c.bf16 %v1981_v32, %v1974_v54  ;;  %vm12503_vm14 = vcmask 441344   ;;  %v7814_v62 = vunpack.i.h.bf16 %v10367_v40  ;;  %v12505_v32 = vld [vmem:[#allocation85_spill] sm:$0xff]  ;;  %v12513_v55 = vld [vmem:[#allocation86_spill] sm:$0xff] }
 0x2ae   : > { %v2515_v14 = vsel %vm12503_vm14, %v7803_v0, %v7804_v24  ;;  %v7809_v21 = vunpack.i.h.bf16 %v10478_v57  ;;  %v6507_v51 = vpack.c.bf16 %v2300_v9, %v2293_v29  ;;  %vm12504_vm3 = vmmov %vm12503_vm14  ;;  %v7813_v1 = vunpack.i.l.bf16 %v10367_v40 }
 0x2af   : > { %v2508_v27 = vsel %vm12504_vm3, %v7798_v33, %v7799_v18  ;;  %v12506_v7 = vunpack.i.h.bf16 %v12505_v32  ;;  %v7808_v16 = vunpack.i.l.bf16 %v10478_v57  ;;  %v6571_v38 = vpack.c.bf16 %v1126_v3, %v1119_v59  ;;  %v10581_v54 = vpop.permute.xlu1 %7836  ;;  %vm12515_vm5 = vmmov %vm12504_vm3  ;;  %v7872_v32 = vpop.permute.xlu0 %7871 }
 0x2b0   : > { %6568 = vmatpush3.bf16.msra.mxu1 %v6567_v52  ;;  %v7844_v42 = vunpack.i.h.bf16 %v10480_v48  ;;  %v7843_v50 = vunpack.i.l.bf16 %v10480_v48  ;;  %v12507_v29 = vunpack.i.h.bf16 %v10281_v44  ;;  %v12508_v19 = vunpack.i.h.bf16 %v10175_v11  ;;  %6508 = vmatpush1.bf16.msra.mxu0 %v6507_v51  ;;  %v12516_v51 = vld [vmem:[#allocation5_spill] sm:$0xff]  ;;  %vm12518_vm1 = vmmov %vm12504_vm3 }
 0x2b1   : > { %v2400_v58 = vsel %vm2395_vm10, %v12506_v7, %v7788_v47  ;;  %6570 = vmatprep.subr.bf16.mxu1 %v6569_v28  ;;  %v12510_v31 = vunpack.i.h.bf16 %v12509_v46  ;;  %v7824_v52 = vunpack.i.h.bf16 %v10416_v15  ;;  %6510 = vmatprep.subr.bf16.mxu0 %v6509_v25  ;;  %v6513_v48 = vpack.c.bf16 %v2515_v14, %v2508_v27 }
 0x2b2   : > { %v2081_v23 = vsel %vm2074_vm15, %v12507_v29, %v7828_v60  ;;  %v2088_v47 = vsel %vm2074_vm15, %v12508_v19, %v7829_v17  ;;  %v7819_v44 = vunpack.i.h.bf16 %v10517_v39  ;;  %vm12511_vm13 = vcmask 375808  }
 0x2b3   : > { %v2407_v10 = vsel %vm2395_vm10, %v12510_v31, %v7793_v20  ;;  %v2615_v11 = vsel %vm12511_vm13, %v7808_v16, %v7809_v21  ;;  %vm12512_vm15 = vmmov %vm12511_vm13  ;;  %v7823_v2 = vunpack.i.l.bf16 %v10416_v15  ;;  %v12514_v9 = vunpack.i.h.bf16 %v12513_v55  ;;  %v10605_v25 = vpop.permute.xlu1 %7846 }
 0x2b4   : > { %v6511_v59 = vpack.c.bf16 %v2407_v10, %v2400_v58  ;;  %v2622_v3 = vsel %vm12512_vm15, %v7813_v1, %v7814_v62  ;;  %6572 = vmatpush3.bf16.msra.mxu1 %v6571_v38  ;;  %v6574_v36 = vpack.c.bf16 %v2088_v47, %v2081_v23  ;;  %v2188_v28 = vsel %vm2181_vm9, %v7769_v13, %v7843_v50  ;;  %v12521_v38 = vld [vmem:[#allocation7_spill] sm:$0xff]  ;;  %vm12523_vm0 = vmmov %vm12511_vm13  ;;  %v12524_v50 = vld [vmem:[#allocation88_spill] sm:$0xff] }
 0x2b5   : > { %v2507_v20 = vsel %vm12515_vm5, %v12514_v9, %v7798_v33  ;;  %v2195_v17 = vsel %vm2181_vm9, %v7774_v43, %v7844_v42  ;;  %v7818_v60 = vunpack.i.l.bf16 %v10517_v39  ;;  %v12082_v14 = vmov 0.0|0.0   ;;  %vm12526_vm6 = vmmov %vm12523_vm0  ;;  %v12529_v9 = vld [vmem:[#allocation90_spill] sm:$0xff] }
 0x2b6   : > { %6512 = vmatpush1.bf16.msra.mxu0 %v6511_v59  ;;  %6573 = vmatprep.subr.bf16.mxu1 %v12082_v14  ;;  %v12517_v33 = vunpack.i.h.bf16 %v12516_v51  ;;  %v6517_v45 = vpack.c.bf16 %v2622_v3, %v2615_v11  ;;  %vm12519_vm2 = vcmask 367616   ;;  %v7834_v43 = vunpack.i.h.bf16 %v10452_v61 }
 0x2b7   : > { %6514 = vmatprep.subr.bf16.mxu0 %v6513_v48  ;;  %v2729_v49 = vsel %vm12519_vm2, %v7823_v2, %v7824_v52  ;;  %v7839_v13 = vunpack.i.h.bf16 %v10581_v54  ;;  %4065 = vmatmul.mubr.f32.vlgmr.msra.gmra.mrb[2].mxu1 %v9625_v37  ;;  %vm12520_vm9 = vmmov %vm12519_vm2  ;;  %v12525_v29 = vunpack.i.h.bf16 %v12524_v50  ;;  %v6577_v19 = vpack.c.bf16 %v2195_v17, %v2188_v28  ;;  %v7857_v10 = vpop.permute.xlu1 %7856  ;;  %v10643_v17 = vpop.permute.xlu0 %7881 }
 0x2b8   : > { %v2514_v27 = vsel %vm12518_vm1, %v12517_v33, %v7803_v0  ;;  %v2722_v58 = vsel %vm12520_vm9, %v7818_v60, %v7819_v44  ;;  %v12522_v0 = vunpack.i.h.bf16 %v12521_v38  ;;  %6175 = vmatprep.mubr.msk.f32.mxu1 %vm352_vm12, %v12489_v35  ;;  %6575 = vmatpush1.bf16.msra.mxu1 %v6574_v36  ;;  %v7833_v37 = vunpack.i.l.bf16 %v10452_v61  ;;  %vm12531_vm3 = vmmov %vm12519_vm2 }
 0x2b9   : > { %v6515_v7 = vpack.c.bf16 %v2514_v27, %v2507_v20  ;;  %v2614_v23 = vsel %vm12526_vm6, %v12525_v29, %v7808_v16  ;;  %v7838_v47 = vunpack.i.l.bf16 %v10581_v54  ;;  %v7874_v46 = vunpack.i.h.bf16 %v7872_v32  ;;  %6576 = vmatprep.subr.bf16.mxu1 %v12082_v14  ;;  %v12540_v29 = vld [vmem:[#allocation72_spill] sm:$0xff]  ;;  %vm12549_vm9 = vmmov %vm12523_vm0 }
 0x2ba   : > { %v2621_v42 = vsel %vm12523_vm0, %v12522_v0, %v7813_v1  ;;  %v7873_v31 = vunpack.i.l.bf16 %v7872_v32  ;;  %v7854_v1 = vunpack.i.h.bf16 %v10523_v6  ;;  %v7859_v48 = vunpack.i.h.bf16 %v7857_v10 }
 0x2bb   : > { %6516 = vmatpush1.bf16.msra.mxu0 %v6515_v7  ;;  %v7858_v59 = vunpack.i.l.bf16 %v7857_v10  ;;  %v6521_v16 = vpack.c.bf16 %v2729_v49, %v2722_v58  ;;  %v7849_v35 = vunpack.i.h.bf16 %v10605_v25  ;;  %v6519_v11 = vpack.c.bf16 %v2621_v42, %v2614_v23  ;;  %v7892_v50 = vpop.permute.xlu0 %7891 }
 0x2bc   : > { %6518 = vmatprep.subr.bf16.mxu0 %v6517_v45  ;;  %vm12527_vm12 = vcmask 359424   ;;  %v12530_v20 = vunpack.i.h.bf16 %v12529_v9  ;;  %v7853_v28 = vunpack.i.l.bf16 %v10523_v6  ;;  %v2302_v33 = vsel %vm2288_vm11, %v7784_v12, %v7859_v48  ;;  %6578 = vmatpush1.bf16.msra.mxu1 %v6577_v19  ;;  %v10658_v45 = vpop.permute.xlu1 %7866 }
 0x2bd   : > { %v2829_v3 = vsel %vm12527_vm12, %v7833_v37, %v7834_v43  ;;  %vm12528_vm14 = vmmov %vm12527_vm12  ;;  %v2295_v51 = vsel %vm2288_vm11, %v7779_v4, %v7858_v59  ;;  %v2402_v27 = vsel %vm2395_vm10, %v7789_v26, %v7873_v31  ;;  %v7848_v32 = vunpack.i.l.bf16 %v10605_v25  ;;  %6579 = vmatprep.subr.bf16.mxu1 %v12082_v14 }
 0x2be   : > { %v2836_v55 = vsel %vm12528_vm14, %v7838_v47, %v7839_v13  ;;  %v2721_v36 = vsel %vm12531_vm3, %v12530_v20, %v7818_v60  ;;  %v2409_v60 = vsel %vm2395_vm10, %v7794_v22, %v7874_v46  ;;  %v6580_v34 = vpack.c.bf16 %v2302_v33, %v2295_v51  ;;  %vm12534_vm11 = vmmov %vm12519_vm2  ;;  %v12536_v22 = vld [vmem:[#allocation74_spill] sm:$0xff] }
 0x2bf   : > { %6520 = vmatpush1.bf16.msra.mxu0 %v6519_v11  ;;  %v12533_v4 = vunpack.i.h.bf16 %v12532_v53  ;;  %v7864_v63 = vunpack.i.h.bf16 %v10568_v5  ;;  %v6525_v26 = vpack.c.bf16 %v2836_v55, %v2829_v3  ;;  %vm12535_vm13 = vcmask 293888   ;;  %vm12538_vm10 = vmmov %vm12527_vm12  ;;  %v12543_v3 = vld [vmem:[#allocation8_spill] sm:$0xff] }
 0x2c0   : > { %6522 = vmatprep.subr.bf16.mxu0 %v6521_v16  ;;  %v2943_v56 = vsel %vm12535_vm13, %v7853_v28, %v7854_v1  ;;  %v12537_v49 = vunpack.i.h.bf16 %v12536_v22  ;;  %v7869_v58 = vunpack.i.h.bf16 %v10658_v45  ;;  %vm12539_vm15 = vmmov %vm12535_vm13  ;;  %6581 = vmatpush1.bf16.msra.mxu1 %v6580_v34  ;;  %v6583_v42 = vpack.c.bf16 %v2409_v60, %v2402_v27  ;;  %v12546_v27 = vld [vmem:[#allocation9_spill] sm:$0xff] }
 0x2c1   : > { %v2728_v12 = vsel %vm12534_vm11, %v12533_v4, %v7823_v2  ;;  %v2936_v0 = vsel %vm12539_vm15, %v7848_v32, %v7849_v35  ;;  %v7863_v2 = vunpack.i.l.bf16 %v10568_v5  ;;  %v12541_v23 = vunpack.i.h.bf16 %v12540_v29  ;;  %vm12542_vm5 = vmmov %vm12538_vm10  ;;  %6582 = vmatprep.subr.bf16.mxu1 %v12082_v14  ;;  %v12555_v29 = vld [vmem:[#allocation13_spill] sm:$0xff] }
 0x2c2   : > { %v2835_v7 = vsel %vm12538_vm10, %v12537_v49, %v7838_v47  ;;  %v6523_v38 = vpack.c.bf16 %v2728_v12, %v2721_v36  ;;  %v7868_v46 = vunpack.i.l.bf16 %v10658_v45  ;;  %v10680_v47 = vpop.permute.xlu1 %7876  ;;  %v6529_v10 = vpack.c.bf16 %v2943_v56, %v2936_v0  ;;  %vm12545_vm1 = vmmov %vm12535_vm13  ;;  %v12550_v49 = vld [vmem:[#allocation11_spill] sm:$0xff]  ;;  %v7902_v0 = vpop.permute.xlu0 %7901 }
 0x2c3   : > { %v2828_v19 = vsel %vm12542_vm5, %v12541_v23, %v7833_v37  ;;  %v3043_v48 = vsel %vm3037_vm7, %v7863_v2, %v7864_v63  ;;  %v7884_v59 = vunpack.i.h.bf16 %v10643_v17  ;;  %v7879_v16 = vunpack.i.h.bf16 %v10680_v47  ;;  %vm12548_vm2 = vmmov %vm12545_vm1 }
 0x2c4   : > { %6524 = vmatpush1.bf16.msra.mxu0 %v6523_v38  ;;  %v6527_v31 = vpack.c.bf16 %v2835_v7, %v2828_v19  ;;  %v7893_v11 = vunpack.i.l.bf16 %v7892_v50  ;;  %v3050_v37 = vsel %vm3037_vm7, %v7868_v46, %v7869_v58  ;;  %v12544_v55 = vunpack.i.h.bf16 %v12543_v3  ;;  %6584 = vmatpush1.bf16.msra.mxu1 %v6583_v42  ;;  %vm12554_vm12 = vmmov %vm12549_vm9  ;;  %v12560_v3 = vld [vmem:[#allocation10_spill] sm:$0xff] }
 0x2c5   : > { %6526 = vmatprep.subr.bf16.mxu0 %v6525_v26  ;;  %v7894_v20 = vunpack.i.h.bf16 %v7892_v50  ;;  %v7883_v36 = vunpack.i.l.bf16 %v10643_v17  ;;  %v7878_v51 = vunpack.i.l.bf16 %v10680_v47  ;;  %6585 = vmatprep.subr.bf16.mxu1 %v12082_v14  ;;  %v12547_v60 = vunpack.i.h.bf16 %v12546_v27  ;;  %vm12559_vm14 = vmmov %vm12531_vm3 }
 0x2c6   : > { %v2935_v9 = vsel %vm12545_vm1, %v12544_v55, %v7848_v32  ;;  %v7887_v33 = vpop.permute.xlu1 %7886  ;;  %v6533_v12 = vpack.c.bf16 %v3050_v37, %v3043_v48  ;;  %v2616_v32 = vsel %vm12549_vm9, %v7809_v21, %v7893_v11  ;;  %v12551_v7 = vunpack.i.h.bf16 %v12550_v49  ;;  %vm12562_vm11 = vmmov %vm12542_vm5 }
 0x2c7   : > { %v2942_v34 = vsel %vm12548_vm2, %v12547_v60, %v7853_v28  ;;  %v7889_v53 = vunpack.i.h.bf16 %v7887_v33  ;;  %v7888_v4 = vunpack.i.l.bf16 %v7887_v33  ;;  %v3150_v56 = vsel %vm3144_vm8, %v7878_v51, %v7879_v16  ;;  %vm12563_vm13 = vmmov %vm12542_vm5  ;;  %v7912_v33 = vpop.permute.xlu0 %7911 }
 0x2c8   : > { %6528 = vmatpush1.bf16.msra.mxu0 %v6527_v31  ;;  %v6531_v26 = vpack.c.bf16 %v2942_v34, %v2935_v9  ;;  %v3157_v22 = vsel %vm3144_vm8, %v7883_v36, %v7884_v59  ;;  %v3049_v28 = vsel %vm3037_vm7, %v12551_v7, %v7868_v46  ;;  %vm12552_vm0 = vcmask 441344   ;;  %vm12564_vm10 = vmmov %vm12545_vm1 }
 0x2c9   : > { %6530 = vmatprep.subr.bf16.mxu0 %v6529_v10  ;;  %v2509_v38 = vsel %vm12552_vm0, %v7799_v18, %v7888_v4  ;;  %vm12553_vm6 = vmmov %vm12552_vm0  ;;  %v2623_v21 = vsel %vm12554_vm12, %v7814_v62, %v7894_v20  ;;  %v12556_v23 = vunpack.i.h.bf16 %v12555_v29  ;;  %v6537_v18 = vpack.c.bf16 %v3157_v22, %v3150_v56  ;;  %v12557_v10 = vld [vmem:[#allocation19_spill] sm:$0xff] }
 0x2ca   : > { %v2516_v57 = vsel %vm12553_vm6, %v7804_v24, %v7889_v53  ;;  %v7897_v50 = vpop.permute.xlu1 %7896  ;;  %v6589_v31 = vpack.c.bf16 %v2623_v21, %v2616_v32  ;;  %v7904_v24 = vunpack.i.h.bf16 %v7902_v0  ;;  %v12558_v40 = vunpack.i.h.bf16 %v12557_v10  ;;  %vm12565_vm15 = vmmov %vm12545_vm1  ;;  %v12567_v56 = vld [vmem:[#allocation75_spill] sm:$0xff] }
 0x2cb   : > { %v6586_v42 = vpack.c.bf16 %v2516_v57, %v2509_v38  ;;  %v3042_v19 = vsel %vm3037_vm7, %v12556_v23, %v7863_v2  ;;  %v7899_v30 = vunpack.i.h.bf16 %v7897_v50  ;;  %v7898_v46 = vunpack.i.l.bf16 %v7897_v50 }
 0x2cc   : > { %6532 = vmatpush1.bf16.msra.mxu0 %v6531_v26  ;;  %v6535_v41 = vpack.c.bf16 %v3049_v28, %v3042_v19  ;;  %v3149_v62 = vsel %vm3144_vm8, %v12558_v40, %v7878_v51  ;;  %v7903_v11 = vunpack.i.l.bf16 %v7902_v0  ;;  %v12561_v55 = vunpack.i.h.bf16 %v12560_v3 }
 0x2cd   : > { %6534 = vmatprep.subr.bf16.mxu0 %v6533_v12  ;;  %6587 = vmatpush1.bf16.msra.mxu1 %v6586_v42  ;;  %v2723_v48 = vsel %vm12559_vm14, %v7819_v44, %v7898_v46  ;;  %v2730_v2 = vsel %vm12531_vm3, %v7824_v52, %v7899_v30  ;;  %v2837_v39 = vsel %vm12562_vm11, %v7839_v13, %v7904_v24  ;;  %v7913_v13 = vunpack.i.l.bf16 %v7912_v33 }
 0x2ce   : > { %6588 = vmatprep.subr.bf16.mxu1 %v12082_v14  ;;  %v7907_v37 = vpop.permute.xlu1 %7906  ;;  %v3156_v9 = vsel %vm3144_vm8, %v12561_v55, %v7883_v36  ;;  %v6592_v51 = vpack.c.bf16 %v2730_v2, %v2723_v48  ;;  %v2830_v15 = vsel %vm12563_vm13, %v7834_v43, %v7903_v11  ;;  %v7914_v43 = vunpack.i.h.bf16 %v7912_v33 }
 0x2cf   : > { %v6539_v20 = vpack.c.bf16 %v3156_v9, %v3149_v62  ;;  %v7909_v52 = vunpack.i.h.bf16 %v7907_v37  ;;  %v7908_v44 = vunpack.i.l.bf16 %v7907_v37  ;;  %v6595_v36 = vpack.c.bf16 %v2837_v39, %v2830_v15 }
 0x2d0   : > { %6536 = vmatpush1.bf16.msra.mxu0 %v6535_v41  ;;  %v3051_v34 = vsel %vm3037_vm7, %v7869_v58, %v7914_v43  ;;  %v3044_v25 = vsel %vm3037_vm7, %v7864_v63, %v7913_v13  ;;  %v10768_v63 = vpop.permute.xlu0 %3568  ;;  %v10773_v58 = vld [vmem:[%s11884_s5] sm:$0xff]  ;;  %v12109_v32 = vmov 0.0   ;;  %v4159_v22 = vsub.s32 2, %v12567_v56 }
 0x2d1   : > { %6538 = vmatprep.subr.bf16.mxu0 %v6537_v18  ;;  %6590 = vmatpush1.bf16.msra.mxu1 %v6589_v31  ;;  %v2937_v54 = vsel %vm12564_vm10, %v7849_v35, %v7908_v44  ;;  %v2944_v61 = vsel %vm12565_vm15, %v7854_v1, %v7909_v52  ;;  %v6601_v1 = vpack.c.bf16 %v3051_v34, %v3044_v25  ;;  %v4155_v0 = vsub.s32 1, %v12567_v56 }
 0x2d2   : > { %6591 = vmatprep.subr.bf16.mxu1 %v12082_v14  ;;  %v7917_v27 = vpop.permute.xlu1 %7916  ;;  %v6598_v60 = vpack.c.bf16 %v2944_v61, %v2937_v54  ;;  %v4160_v28 = vrot.slane %v10773_v58, %v4159_v22  ;;  %v4163_v10 = vsub.s32 3, %v12567_v56  ;;  %v4167_v39 = vsub.s32 4, %v12567_v56 }
 0x2d3   : > { %v7919_v6 = vunpack.i.h.bf16 %v7917_v27  ;;  %v7918_v35 = vunpack.i.l.bf16 %v7917_v27  ;;  %v4156_v23 = vrot.slane %v10773_v58, %v4155_v0  ;;  %vm4286_vm7 = vcmask 900096  }
 0x2d4   : > { %6540 = vmatpush1.bf16.msra.mxu0 %v6539_v20  ;;  %v4164_v62 = vrot.slane %v10773_v58, %v4163_v10  ;;  %v4168_v52 = vrot.slane %v10773_v58, %v4167_v39  ;;  %vm4340_vm5 = vcmask 891904   ;;  %vm4502_vm1 = vcmask 809984  }
 0x2d5   : > { %6593 = vmatpush1.bf16.msra.mxu1 %v6592_v51  ;;  %v3151_v53 = vsel %vm3144_vm8, %v7879_v16, %v7918_v35  ;;  %v3158_v45 = vsel %vm3144_vm8, %v7884_v59, %v7919_v6  ;;  %v12566_v59 = vld [vmem:[#allocation76_spill] sm:$0xff]  ;;  %vm4232_vm8 = vcmask 908288   ;;  %vm4394_vm2 = vcmask 826368  }
 0x2d6   : > { %6594 = vmatprep.subr.bf16.mxu1 %v12082_v14  ;;  %v6604_v5 = vpack.c.bf16 %v3158_v45, %v3151_v53  ;;  %v4152_v16 = vrot.slane %v10773_v58, %v12566_v59  ;;  %vm4448_vm9 = vcmask 818176   ;;  %vm12107_vm0 = vcmask 736256  }
 0x2d7   : > { %3994 = vmatmul.mubr.f32.vlgmr.msra.gmra.mrb[2].mxu0 %v9883_v8  ;;  %vm4556_vm6 = vcmask 744448   ;;  %vm12104_vm12 = vcmask 89088   ;;  %vm12106_vm14 = vcmask 728064   ;;  %vm12098_vm3 = vcmask 72704  }
 0x2d8   : > { %vm12099_vm11 = vcmask 80896   ;;  %vm12100_vm13 = vcmask 7168   ;;  %vm12576_vm10 = vcmask 965632   ;;  %vm5808_vm15 = vcmask 719872  }
 0x2d9   : > { %6596 = vmatpush1.bf16.msra.mxu1 %v6595_v36 }
 0x2da   : > { %6597 = vmatprep.subr.bf16.mxu1 %v12082_v14 }
 0x2dd   : > { %6599 = vmatpush1.bf16.msra.mxu1 %v6598_v60 }
 0x2de   : > { %6600 = vmatprep.subr.bf16.mxu1 %v12082_v14 }
 0x2e1   : > { %6602 = vmatpush1.bf16.msra.mxu1 %v6601_v1 }
 0x2e2   : > { %6603 = vmatprep.subr.bf16.mxu1 %v12082_v14 }
 0x2e5   : > { %6605 = vmatpush1.bf16.msra.mxu1 %v6604_v5 }
 0x2e8   : > { %4135 = vmatmul.mubr.f32.vlgmr.msra.gmra.mrb[4].mxu1 %v9883_v8 }
 0x31f   : > { %v3711_v47 = vpop.f32.mrb[0].mxu0 }
 0x320   : > { %v6801_v17 = vadd.f32 %v3711_v47, %v10768_v63  ;;  %v3713_v4 = vpop.f32.mrb[1].mxu0 }
 0x321   : > { %v6802_v21 = vadd.f32 %v3713_v4, %v10768_v63 }
 0x322   : > { %v4140_v12 = vmax.f32 %v6801_v17, 0.0 }
 0x323   : > { %v4141_v29 = vmax.f32 %v6802_v21, 0.0 }
 0x324   : > { %v10778_v26 = vmul.f32 %v4152_v16, %v4140_v12 }
 0x325   : > { %v10797_v19 = vmul.f32 %v4156_v23, %v4141_v29 }
 0x326   : > { %v7926_v8 = vpack.i.bf16 %v10778_v26, %v12109_v32 }
 0x327   : > { %v8011_v46 = vpack.i.bf16 %v10797_v19, %v10778_v26 }
 0x328   : > { %7927 = vrot.lane.b32.xlu0 %v7926_v8, %s8405_s10  ;;  %7922 = vrot.lane.b32.xlu1 %v7926_v8, %s8406_s13 }
 0x32c   : > { %7932 = vrot.lane.b32.xlu0 %v7926_v8, %s8407_s15 }
 0x35c   : > { %v3853_v49 = vpop.f32.mrb[0].mxu1 }
 0x35d   : > { %v6803_v7 = vadd.f32 %v3853_v49, %v10768_v63  ;;  %v3855_v38 = vpop.f32.mrb[1].mxu1 }
 0x35e   : > { %v6804_v24 = vadd.f32 %v3855_v38, %v10768_v63 }
 0x35f   : > { %v4142_v57 = vmax.f32 %v6803_v7, 0.0 }
 0x360   : > { %v4143_v40 = vmax.f32 %v6804_v24, 0.0  ;;  %v4171_v24 = vsub.s32 5, %v12567_v56 }
 0x361   : > { %v10790_v42 = vmul.f32 %v4160_v28, %v4142_v57 }
 0x362   : > { %v10828_v48 = vmul.f32 %v4164_v62, %v4143_v40 }
 0x363   : > { %12568 = vst [vmem:[#allocation17_spill] sm:$0xff] %v10790_v42  ;;  %v7981_v50 = vpack.i.bf16 %v10790_v42, %v12109_v32  ;;  %v10804_v30 = vpack.i.bf16 %v10790_v42, %v10797_v19 }
 0x364   : > { %v8061_v2 = vpack.i.bf16 %v10828_v48, %v10778_v26 }
 0x365   : > { %7982 = vrot.lane.b32.xlu1 %v7981_v50, %s12072_s16  ;;  %7937 = vrot.lane.b32.xlu0 %v7981_v50, %s8409_s17 }
 0x369   : > { %5574 = vrot.lane.b32.xlu1 %v10778_v26, %s12095_s19  ;;  %7942 = vrot.lane.b32.xlu0 %v7981_v50, %s8410_s18 }
 0x36d   : > { %7987 = vrot.lane.b32.xlu1 %v10804_v30, %s8406_s13  ;;  %7947 = vrot.lane.b32.xlu0 %v7981_v50, %s8411_s8 }
 0x371   : > { %7992 = vrot.lane.b32.xlu1 %v10804_v30, %s8405_s10  ;;  %7952 = vrot.lane.b32.xlu0 %v7981_v50, %s8412_s9 }
 0x375   : > { %7997 = vrot.lane.b32.xlu1 %v10804_v30, %s8407_s15  ;;  %7957 = vrot.lane.b32.xlu0 %v7981_v50, %s8413_s14 }
 0x379   : > { %8012 = vrot.lane.b32.xlu1 %v8011_v46, %s8411_s8  ;;  %7962 = vrot.lane.b32.xlu0 %v7981_v50, %s8414_s23 }
 0x37d   : > { %8022 = vrot.lane.b32.xlu1 %v8011_v46, %s8413_s14  ;;  %7967 = vrot.lane.b32.xlu0 %v7981_v50, %s8415_s24 }
 0x381   : > { %8032 = vrot.lane.b32.xlu1 %v8011_v46, %s8415_s24  ;;  %7972 = vrot.lane.b32.xlu0 %v7981_v50, %s12074_s25 }
 0x385   : > { %8042 = vrot.lane.b32.xlu1 %v8011_v46, %s12070_s28  ;;  %7977 = vrot.lane.b32.xlu0 %v7981_v50, %s12070_s28  ;;  %s12081_s28 = smov 37  }
 0x389   : > { %8052 = vrot.lane.b32.xlu1 %v10804_v30, %s12080_s27  ;;  %5578 = vrot.lane.b32.xlu0 %v10790_v42, %s12095_s19 }
 0x38a   : > { %v6214_v18 = vpop.f32.mrb[2].mxu1 }
 0x38b   : > { %v6215_v41 = vpop.f32.mrb[3].mxu1 }
 0x38c   : > { %v6216_v31 = vadd.f32 %v6215_v41, %v6214_v18 }
 0x38d   : > { %8062 = vrot.lane.b32.xlu1 %v8061_v2, %s12080_s27  ;;  %8002 = vrot.lane.b32.xlu0 %v8011_v46, %s8409_s17 }
 0x38e   : > { %v4067_v3 = vadd.f32 %v6216_v31, %v10768_v63 }
 0x391   : > { %8067 = vrot.lane.b32.xlu1 %v8061_v2, %s8418_s7  ;;  %8007 = vrot.lane.b32.xlu0 %v8011_v46, %s8410_s18 }
 0x395   : > { %8072 = vrot.lane.b32.xlu1 %v10804_v30, %s12079_s29  ;;  %8017 = vrot.lane.b32.xlu0 %v8011_v46, %s8412_s9 }
 0x399   : > { %8082 = vrot.lane.b32.xlu1 %v8061_v2, %s12079_s29  ;;  %8027 = vrot.lane.b32.xlu0 %v8011_v46, %s8414_s23 }
 0x39a   : > { %v7928_v36 = vpop.permute.xlu0 %7927  ;;  %v7923_v54 = vpop.permute.xlu1 %7922 }
 0x39b   : > { %v7930_v6 = vunpack.i.h.bf16 %v7928_v36  ;;  %v7929_v35 = vunpack.i.l.bf16 %v7928_v36  ;;  %v7925_v1 = vunpack.i.h.bf16 %v7923_v54  ;;  %v7924_v53 = vunpack.i.l.bf16 %v7923_v54 }
 0x39d   : > { %8087 = vrot.lane.b32.xlu1 %v8061_v2, %s8372_s30  ;;  %8037 = vrot.lane.b32.xlu0 %v8011_v46, %s12074_s25  ;;  %s12569_s25 = smov 18   ;;  %v4287_v4 = vsel %vm4286_vm7, %v7929_v35, %v7930_v6  ;;  %v4233_v12 = vsel %vm4232_vm8, %v7924_v53, %v7925_v1 }
 0x39e   : > { %v10904_v61 = vpop.permute.xlu0 %7932  ;;  %v6608_v0 = vpack.c.bf16 %v4287_v4, %v4233_v12 }
 0x3a1   : > { %8092 = vrot.lane.b32.xlu1 %v10804_v30, %s12078_s26  ;;  %8047 = vrot.lane.b32.xlu0 %v8011_v46, %s12072_s16  ;;  %v4175_v46 = vsub.s32 6, %v12567_v56  ;;  %v7934_v56 = vunpack.i.l.bf16 %v10904_v61 }
 0x3a3   : > { %v4176_v40 = vrot.slane %v10773_v58, %v4175_v46 }
 0x3a5   : > { %8102 = vrot.lane.b32.xlu1 %v8061_v2, %s12078_s26  ;;  %4872 = vrot.lane.b32.xlu0 %v10828_v48, %s12072_s16  ;;  %s12076_s16 = smov 29  }
 0x3a9   : > { %8107 = vrot.lane.b32.xlu1 %v8061_v2, %s8420_s20  ;;  %8057 = vrot.lane.b32.xlu0 %v10804_v30, %s8418_s7 }
 0x3aa   : > { %v3995_v11 = vpop.f32.mrb[2].mxu0 }
 0x3ab   : > { %v10845_v37 = vpop.f32.mrb[3].mxu0  ;;  %v6805_v51 = vadd.f32 %v3995_v11, %v10768_v63 }
 0x3ac   : > { %v6806_v31 = vadd.f32 %v10845_v37, %v10768_v63  ;;  %v7935_v63 = vunpack.i.h.bf16 %v10904_v61 }
 0x3ad   : > { %8112 = vrot.lane.b32.xlu1 %v10804_v30, %s12081_s28  ;;  %8077 = vrot.lane.b32.xlu0 %v10804_v30, %s8372_s30  ;;  %v4144_v15 = vmax.f32 %v6805_v51, 0.0 }
 0x3ae   : > { %v4145_v11 = vmax.f32 %v6806_v31, 0.0 }
 0x3af   : > { %v10881_v44 = vmul.f32 %v4168_v52, %v4144_v15 }
 0x3b1   : > { %8122 = vrot.lane.b32.xlu1 %v8061_v2, %s12081_s28  ;;  %8097 = vrot.lane.b32.xlu0 %v10804_v30, %s8420_s20  ;;  %12570 = vst [vmem:[#allocation6_spill] sm:$0xff] %v10881_v44  ;;  %v10888_v33 = vpack.i.bf16 %v10881_v44, %v10828_v48 }
 0x3b5   : > { %8127 = vrot.lane.b32.xlu1 %v8061_v2, %s12076_s16  ;;  %8117 = vrot.lane.b32.xlu0 %v10804_v30, %s12076_s16  ;;  %s8423_s16 = smov 19  }
 0x3b9   : > { %8132 = vrot.lane.b32.xlu1 %v10804_v30, %s12097_s11  ;;  %8137 = vrot.lane.b32.xlu0 %v10804_v30, %s8379_s12 }
 0x3bb   : > { %v4136_v55 = vpop.f32.mrb[4].mxu1 }
 0x3bc   : > { %v10859_v9 = vadd.f32 %v4136_v55, %v4067_v3  ;;  %v4138_v20 = vpop.f32.mrb[5].mxu1  ;;  %v4172_v3 = vrot.slane %v10773_v58, %v4171_v24  ;;  %v11020_v58 = vsel %vm4340_vm5, %v7934_v56, %v7935_v63 }
 0x3bd   : > { %8142 = vrot.lane.b32.xlu1 %v8061_v2, %s12097_s11  ;;  %8157 = vrot.lane.b32.xlu0 %v10804_v30, %s12569_s25 }
 0x3be   : > { %v4146_v10 = vmax.f32 %v10859_v9, 0.0  ;;  %v11017_v20 = vmul.f32 %v4172_v3, %v4145_v11 }
 0x3c0   : > { %v11009_v37 = vmul.f32 %v4176_v40, %v4146_v10 }
 0x3c1   : > { %8147 = vrot.lane.b32.xlu1 %v8061_v2, %s8379_s12  ;;  %5580 = vrot.lane.b32.xlu0 %v10828_v48, %s12095_s19 }
 0x3c2   : > { %v11031_v52 = vpack.i.bf16 %v11009_v37, %v11017_v20 }
 0x3c5   : > { %8152 = vrot.lane.b32.xlu1 %v10804_v30, %s8423_s16  ;;  %8172 = vrot.lane.b32.xlu0 %v10888_v33, %s8406_s13 }
 0x3c9   : > { %8162 = vrot.lane.b32.xlu1 %v8061_v2, %s8423_s16  ;;  %8177 = vrot.lane.b32.xlu0 %v10888_v33, %s8405_s10 }
 0x3cd   : > { %8167 = vrot.lane.b32.xlu1 %v8061_v2, %s12569_s25  ;;  %4946 = vrot.lane.b32.xlu0 %v12109_v32, %s12080_s27 }
 0x3d1   : > { %5576 = vrot.lane.b32.xlu1 %v10797_v19, %s12095_s19  ;;  %5053 = vrot.lane.b32.xlu0 %v12109_v32, %s12079_s29 }
 0x3d5   : > { %8182 = vrot.lane.b32.xlu1 %v10888_v33, %s8407_s15  ;;  %5159 = vrot.lane.b32.xlu0 %v12109_v32, %s12078_s26 }
 0x3d7   : > { %v10910_v43 = vpop.permute.xlu1 %7982  ;;  %v10912_v13 = vpop.permute.xlu0 %7937 }
 0x3d8   : > { %v12084_v51 = vunpack.i.h.bf16 %v10912_v13 }
 0x3d9   : > { %8187 = vrot.lane.b32.xlu1 %v10888_v33, %s8409_s17  ;;  %5267 = vrot.lane.b32.xlu0 %v12109_v32, %s12081_s28 }
 0x3db   : > { %v10918_v27 = vpop.permute.xlu1 %5574  ;;  %v10920_v60 = vpop.permute.xlu0 %7942 }
 0x3dc   : > { %v12087_v36 = vunpack.i.h.bf16 %v10920_v60  ;;  %v7944_v54 = vunpack.i.l.bf16 %v10920_v60 }
 0x3dd   : > { %8192 = vrot.lane.b32.xlu1 %v10888_v33, %s8410_s18  ;;  %4940 = vrot.lane.b32.xlu0 %v10881_v44, %s12080_s27  ;;  %s12573_s27 = smov 29  }
 0x3df   : > { %v10926_v34 = vpop.permute.xlu1 %7987  ;;  %v10928_v25 = vpop.permute.xlu0 %7947 }
 0x3e0   : > { %v12094_v45 = vunpack.i.h.bf16 %v10926_v34  ;;  %v7989_v5 = vunpack.i.l.bf16 %v10926_v34  ;;  %v12086_v61 = vunpack.i.h.bf16 %v10928_v25 }
 0x3e1   : > { %8197 = vrot.lane.b32.xlu1 %v10888_v33, %s8411_s8  ;;  %4993 = vrot.lane.b32.xlu0 %v10881_v44, %s8418_s7 }
 0x3e2   : > { %v10951_v8 = vsel %vm4232_vm8, %v7989_v5, %v12094_v45  ;;  %v4234_v49 = vsel %vm4232_vm8, %v7925_v1, %v7989_v5  ;;  %v7949_v1 = vunpack.i.l.bf16 %v10928_v25 }
 0x3e3   : > { %v10936_v47 = vpop.permute.xlu1 %7992  ;;  %v10938_v17 = vpop.permute.xlu0 %7952 }
 0x3e4   : > { %v12093_v59 = vunpack.i.h.bf16 %v10936_v47  ;;  %v7994_v16 = vunpack.i.l.bf16 %v10936_v47  ;;  %v12089_v53 = vunpack.i.h.bf16 %v10938_v17  ;;  %v7954_v4 = vunpack.i.l.bf16 %v10938_v17 }
 0x3e5   : > { %8202 = vrot.lane.b32.xlu1 %v10888_v33, %s8412_s9  ;;  %5047 = vrot.lane.b32.xlu0 %v10881_v44, %s12079_s29  ;;  %s12572_s29 = smov 9  }
 0x3e6   : > { %v10956_v22 = vsel %vm4286_vm7, %v7994_v16, %v12093_v59  ;;  %v4288_v7 = vsel %vm4286_vm7, %v7930_v6, %v7994_v16 }
 0x3e7   : > { %v10960_v28 = vpop.permute.xlu1 %7997  ;;  %v10962_v38 = vpop.permute.xlu0 %7957  ;;  %v6606_v57 = vpack.c.bf16 %v4288_v7, %v4234_v49 }
 0x3e8   : > { %v12085_v39 = vunpack.i.h.bf16 %v10960_v28  ;;  %v7999_v15 = vunpack.i.l.bf16 %v10960_v28  ;;  %v12088_v12 = vunpack.i.h.bf16 %v10962_v38  ;;  %v7959_v49 = vunpack.i.l.bf16 %v10962_v38 }
 0x3e9   : > { %8207 = vrot.lane.b32.xlu1 %v10888_v33, %s8413_s14  ;;  %6607 = vmatprep.subr.bf16.mxu1 %v6606_v57 }
 0x3ea   : > { %5100 = vrot.lane.b32.xlu0 %v10881_v44, %s8372_s30  ;;  %6609 = vmatpush1.bf16.msra.mxu1 %v6608_v0  ;;  %v11050_v57 = vsel %vm4340_vm5, %v7999_v15, %v12085_v39 }
 0x3eb   : > { %v10970_v50 = vpop.permute.xlu1 %8012  ;;  %v10972_v29 = vpop.permute.xlu0 %7962 }
 0x3ec   : > { %v8015_v7 = vunpack.i.h.bf16 %v10970_v50  ;;  %v8014_v0 = vunpack.i.l.bf16 %v10970_v50  ;;  %v12092_v24 = vunpack.i.h.bf16 %v10972_v29  ;;  %v4342_v50 = vsel %vm4340_vm5, %v7935_v63, %v7999_v15 }
 0x3ed   : > { %8212 = vrot.lane.b32.xlu1 %v10888_v33, %s8414_s23  ;;  %v7964_v56 = vunpack.i.l.bf16 %v10972_v29 }
 0x3ee   : > { %5153 = vrot.lane.b32.xlu0 %v10881_v44, %s12078_s26  ;;  %s12571_s26 = smov 10  }
 0x3ef   : > { %v10978_v23 = vpop.permute.xlu1 %8022  ;;  %v10980_v30 = vpop.permute.xlu0 %7967 }
 0x3f0   : > { %v8025_v10 = vunpack.i.h.bf16 %v10978_v23  ;;  %v8024_v39 = vunpack.i.l.bf16 %v10978_v23  ;;  %v4503_v23 = vsel %vm4502_vm1, %v7949_v1, %v8014_v0 }
 0x3f1   : > { %8217 = vrot.lane.b32.xlu1 %v10888_v33, %s8415_s24 }
 0x3f2   : > { %5207 = vrot.lane.b32.xlu0 %v10881_v44, %s8420_s20  ;;  %v11100_v1 = vsel %vm12107_vm0, %v8025_v10, %v12088_v12 }
 0x3f3   : > { %v10987_v18 = vpop.permute.xlu1 %8032  ;;  %v10989_v41 = vpop.permute.xlu0 %7972 }
 0x3f5   : > { %8222 = vrot.lane.b32.xlu1 %v10888_v33, %s12571_s26 }
 0x3f6   : > { %5261 = vrot.lane.b32.xlu0 %v10881_v44, %s12081_s28  ;;  %s12574_s28 = smov 1  }
 0x3f7   : > { %v11000_v62 = vpop.permute.xlu1 %8042  ;;  %v11002_v2 = vpop.permute.xlu0 %7977 }
 0x3f9   : > { %8227 = vrot.lane.b32.xlu1 %v10888_v33, %s12572_s29  ;;  %v7939_v33 = vunpack.i.l.bf16 %v10912_v13 }
 0x3fa   : > { %5315 = vrot.lane.b32.xlu0 %v10881_v44, %s12573_s27 }
 0x3fb   : > { %v11013_v55 = vpop.permute.xlu1 %8052  ;;  %v11015_v9 = vpop.permute.xlu0 %5578 }
 0x3fd   : > { %4878 = vrot.lane.b32.xlu1 %v11009_v37, %s12574_s28 }
 0x3fe   : > { %5369 = vrot.lane.b32.xlu0 %v10881_v44, %s12097_s11 }
 0x3ff   : > { %v11037_v6 = vpop.permute.xlu1 %8062  ;;  %v8003_v35 = vpop.permute.xlu0 %8002 }
 0x400   : > { %12575 = vst [vmem:[#allocation12_spill] sm:$0xff] %v11037_v6  ;;  %v8005_v5 = vunpack.i.h.bf16 %v8003_v35  ;;  %v8004_v16 = vunpack.i.l.bf16 %v8003_v35 }
 0x401   : > { %4999 = vrot.lane.b32.xlu1 %v12109_v32, %s8418_s7 }
 0x402   : > { %v4395_v46 = vsel %vm4394_vm2, %v7939_v33, %v8004_v16  ;;  %v11057_v31 = vsel %vm4394_vm2, %v8005_v5, %v12084_v51  ;;  %5422 = vrot.lane.b32.xlu0 %v10881_v44, %s8379_s12  ;;  %v4396_v3 = vsel %vm4394_vm2, %v8004_v16, %v8005_v5  ;;  %v11073_v51 = vsel %vm4502_vm1, %v8015_v7, %v12086_v61 }
 0x403   : > { %v11064_v40 = vpop.permute.xlu1 %8067  ;;  %v8008_v11 = vpop.permute.xlu0 %8007  ;;  %v6612_v33 = vpack.c.bf16 %v4395_v46, %v11020_v58  ;;  %v6610_v63 = vpack.c.bf16 %v4396_v3, %v4342_v50  ;;  %v4504_v16 = vsel %vm4502_vm1, %v8014_v0, %v8015_v7  ;;  %v12090_v46 = vunpack.i.h.bf16 %v10980_v30 }
 0x404   : > { %v8010_v35 = vunpack.i.h.bf16 %v8008_v11  ;;  %v8009_v14 = vunpack.i.l.bf16 %v8008_v11  ;;  %v7969_v61 = vunpack.i.l.bf16 %v10980_v30  ;;  %v4611_v7 = vsel %vm12107_vm0, %v7959_v49, %v8024_v39 }
 0x405   : > { %5106 = vrot.lane.b32.xlu1 %v12109_v32, %s8372_s30  ;;  %6611 = vmatprep.subr.bf16.mxu1 %v6610_v63  ;;  %v8035_v0 = vunpack.i.h.bf16 %v10987_v18  ;;  %v4612_v63 = vsel %vm12107_vm0, %v8024_v39, %v8025_v10  ;;  %v8045_v39 = vunpack.i.h.bf16 %v11000_v62  ;;  %v12102_v11 = vunpack.i.h.bf16 %v11002_v2 }
 0x406   : > { %v4449_v15 = vsel %vm4448_vm9, %v7944_v54, %v8009_v14  ;;  %v11083_v58 = vsel %vm4448_vm9, %v8010_v35, %v12087_v36  ;;  %5475 = vrot.lane.b32.xlu0 %v10881_v44, %s8423_s16  ;;  %v4450_v5 = vsel %vm4448_vm9, %v8009_v14, %v8010_v35  ;;  %6613 = vmatpush1.bf16.msra.mxu1 %v6612_v33 }
 0x407   : > { %v11093_v54 = vpop.permute.xlu1 %8072  ;;  %v8018_v50 = vpop.permute.xlu0 %8017  ;;  %v6614_v3 = vpack.c.bf16 %v4504_v16, %v4450_v5  ;;  %v6616_v36 = vpack.c.bf16 %v4503_v23, %v4449_v15  ;;  %v8034_v15 = vunpack.i.l.bf16 %v10987_v18  ;;  %v12103_v16 = vunpack.i.h.bf16 %v10989_v41 }
 0x408   : > { %v8020_v14 = vunpack.i.h.bf16 %v8018_v50  ;;  %v8019_v35 = vunpack.i.l.bf16 %v8018_v50  ;;  %v12111_v23 = vunpack.i.h.bf16 %v11093_v54 }
 0x409   : > { %5213 = vrot.lane.b32.xlu1 %v12109_v32, %s8420_s20  ;;  %6615 = vmatprep.subr.bf16.mxu1 %v6614_v3  ;;  %v4720_v59 = vsel %vm12104_vm12, %v8034_v15, %v8035_v0 }
 0x40a   : > { %v4557_v33 = vsel %vm4556_vm6, %v7954_v4, %v8019_v35  ;;  %v11111_v49 = vsel %vm4556_vm6, %v8020_v14, %v12089_v53  ;;  %5529 = vrot.lane.b32.xlu0 %v10881_v44, %s12569_s25  ;;  %v4558_v5 = vsel %vm4556_vm6, %v8019_v35, %v8020_v14  ;;  %6617 = vmatpush1.bf16.msra.mxu1 %v6616_v36  ;;  %v7974_v35 = vunpack.i.l.bf16 %v10989_v41 }
 0x40b   : > { %v11120_v18 = vpop.permute.xlu1 %8082  ;;  %v8028_v4 = vpop.permute.xlu0 %8027  ;;  %v6618_v10 = vpack.c.bf16 %v4612_v63, %v4558_v5  ;;  %v6620_v50 = vpack.c.bf16 %v4611_v7, %v4557_v33  ;;  %v11126_v14 = vsel %vm12104_vm12, %v8035_v0, %v12090_v46  ;;  %v8044_v36 = vunpack.i.l.bf16 %v11000_v62 }
 0x40c   : > { %v12091_v3 = vunpack.i.h.bf16 %v11120_v18  ;;  %v8030_v12 = vunpack.i.h.bf16 %v8028_v4  ;;  %v8029_v53 = vunpack.i.l.bf16 %v8028_v4  ;;  %v4719_v5 = vsel %vm12104_vm12, %v7969_v61, %v8034_v15 }
 0x40d   : > { %5321 = vrot.lane.b32.xlu1 %v12109_v32, %s12573_s27  ;;  %6619 = vmatprep.subr.bf16.mxu1 %v6618_v10  ;;  %v7979_v62 = vunpack.i.l.bf16 %v11002_v2  ;;  %v11160_v61 = vsel %vm12098_vm3, %v8045_v39, %v12102_v11  ;;  %v8074_v11 = vunpack.i.l.bf16 %v11093_v54 }
 0x40e   : > { %v11139_v7 = vsel %vm12576_vm10, %v12111_v23, %v12091_v3  ;;  %v4665_v63 = vsel %vm12106_vm14, %v7964_v56, %v8029_v53  ;;  %v11145_v33 = vsel %vm12106_vm14, %v8030_v12, %v12092_v24  ;;  %5375 = vrot.lane.b32.xlu0 %v12109_v32, %s12097_s11  ;;  %v4666_v56 = vsel %vm12106_vm14, %v8029_v53, %v8030_v12  ;;  %s12593_s11 = smov 127  }
 0x40f   : > { %12577 = vst [vmem:[#allocation24_spill] sm:$0xff] %v11139_v7  ;;  %v11153_v10 = vpop.permute.xlu1 %8087  ;;  %v8038_v46 = vpop.permute.xlu0 %8037  ;;  %v6624_v3 = vpack.c.bf16 %v4719_v5, %v4665_v63  ;;  %6621 = vmatpush1.bf16.msra.mxu1 %v6620_v50  ;;  %12578 = vst [vmem:[#allocation16_spill] sm:$0xff] %v11160_v61  ;;  %v6622_v4 = vpack.c.bf16 %v4720_v59, %v4666_v56  ;;  %v4827_v0 = vsel %vm12098_vm3, %v7979_v62, %v8044_v36  ;;  %v11184_v63 = vld [vmem:[%s11882_s3 + $0x8] sm:$0xff]  ;;  %vm5161_vm10 = vcmask 318464  }
 0x410   : > { %v8040_v21 = vunpack.i.h.bf16 %v8038_v46  ;;  %v8039_v24 = vunpack.i.l.bf16 %v8038_v46  ;;  %v4828_v46 = vsel %vm12098_vm3, %v8044_v36, %v8045_v39  ;;  %6176 = vmatprep.mubr.msk.f32.mxu1 %vm5808_vm15, %v11184_v63  ;;  %6177 = vmatprep.mubr.msk.f32.mxu0 %vm5808_vm15, %v11184_v63  ;;  %vm12124_vm3 = vcmask 973824  }
 0x411   : > { %5582 = vrot.lane.b32.xlu1 %v10881_v44, %s12095_s19  ;;  %6623 = vmatprep.subr.bf16.mxu1 %v6622_v4  ;;  %vm12145_vm14 = vcmask 302080   ;;  %s12603_s19 = smov 39  }
 0x412   : > { %v4773_v45 = vsel %vm12099_vm11, %v7974_v35, %v8039_v24  ;;  %v11168_v53 = vsel %vm12099_vm11, %v8040_v21, %v12103_v16  ;;  %8242 = vrot.lane.b32.xlu0 %v11031_v52, %s8407_s15  ;;  %v4774_v12 = vsel %vm12099_vm11, %v8039_v24, %v8040_v21  ;;  %v7984_v21 = vunpack.i.l.bf16 %v10910_v43 }
 0x413   : > { %12579 = vst [vmem:[#allocation14_spill] sm:$0xff] %v11168_v53  ;;  %v11177_v59 = vpop.permute.xlu1 %8092  ;;  %v11179_v50 = vpop.permute.xlu0 %8047  ;;  %v6626_v35 = vpack.c.bf16 %v4828_v46, %v4774_v12  ;;  %v6628_v24 = vpack.c.bf16 %v4827_v0, %v4773_v45  ;;  %6625 = vmatpush1.bf16.msra.mxu1 %v6624_v3  ;;  %v8055_v0 = vunpack.i.h.bf16 %v11013_v55  ;;  %vm5215_vm11 = vcmask 310272  }
 0x414   : > { %v12101_v39 = vunpack.i.h.bf16 %v11179_v50  ;;  %v8049_v36 = vunpack.i.l.bf16 %v11179_v50  ;;  %v12108_v56 = vunpack.i.h.bf16 %v11177_v59  ;;  %v8084_v16 = vunpack.i.l.bf16 %v11120_v18 }
 0x415   : > { %8232 = vrot.lane.b32.xlu1 %v11031_v52, %s8406_s13  ;;  %6627 = vmatprep.subr.bf16.mxu1 %v6626_v35  ;;  %v8054_v35 = vunpack.i.l.bf16 %v11013_v55  ;;  %v8094_v53 = vunpack.i.l.bf16 %v11177_v59 }
 0x416   : > { %v4881_v5 = vsel %vm12100_vm13, %v7984_v21, %v8049_v36  ;;  %8252 = vrot.lane.b32.xlu0 %v11031_v52, %s8410_s18  ;;  %v4882_v45 = vsel %vm12100_vm13, %v8049_v36, %v12101_v39  ;;  %v8064_v21 = vunpack.i.l.bf16 %v11037_v6  ;;  %vm12580_vm13 = vcmask 1039360  }
 0x417   : > { %v11199_v3 = vpop.permute.xlu1 %8102  ;;  %v11201_v62 = vpop.permute.xlu0 %4872  ;;  %v6630_v4 = vpack.c.bf16 %v10797_v19, %v4882_v45  ;;  %v6632_v12 = vpack.c.bf16 %v10778_v26, %v4881_v5  ;;  %6629 = vmatpush1.bf16.msra.mxu1 %v6628_v24  ;;  %v12112_v19 = vunpack.i.h.bf16 %v11037_v6  ;;  %v12114_v5 = vunpack.i.h.bf16 %v11064_v40  ;;  %vm12581_vm12 = vmmov %vm12580_vm13 }
 0x418   : > { %v12105_v46 = vunpack.i.h.bf16 %v11199_v3  ;;  %v8069_v45 = vunpack.i.l.bf16 %v11064_v40  ;;  %v4948_v39 = vsel %vm12580_vm13, %v8064_v21, %v8054_v35  ;;  %vm12582_vm0 = vmmov %vm12581_vm12  ;;  %v8089_v6 = vunpack.i.l.bf16 %v11153_v10 }
 0x419   : > { %8237 = vrot.lane.b32.xlu1 %v11031_v52, %s8405_s10  ;;  %6631 = vmatprep.subr.bf16.mxu1 %v6630_v4  ;;  %v11239_v55 = vsel %vm12582_vm0, %v8055_v0, %v12112_v19  ;;  %v12118_v19 = vunpack.i.h.bf16 %v11153_v10  ;;  %vm12585_vm0 = vcmask 965632   ;;  %v8104_v61 = vunpack.i.l.bf16 %v11199_v3  ;;  %s12605_s10 = smov 37  }
 0x41a   : > { %v11220_v26 = vsel %vm5161_vm10, %v12108_v56, %v12105_v46  ;;  %8262 = vrot.lane.b32.xlu0 %v11031_v52, %s8412_s9  ;;  %v4949_v46 = vsel %vm12581_vm12, %v8054_v35, %v8055_v0  ;;  %12583 = vst [vmem:[#allocation22_spill] sm:$0xff] %v11239_v55  ;;  %vm12587_vm12 = vmmov %vm12585_vm0  ;;  %vm12128_vm13 = vcmask 236544  }
 0x41b   : > { %v11226_v24 = vpop.permute.xlu1 %8107  ;;  %v8058_v36 = vpop.permute.xlu0 %8057  ;;  %6633 = vmatpush1.bf16.msra.mxu1 %v6632_v12  ;;  %v5162_v55 = vsel %vm5161_vm10, %v8104_v61, %v8094_v53 }
 0x41c   : > { %v8060_v4 = vunpack.i.h.bf16 %v8058_v36  ;;  %v8059_v15 = vunpack.i.l.bf16 %v8058_v36 }
 0x41d   : > { %8247 = vrot.lane.b32.xlu1 %v11031_v52, %s8409_s17  ;;  %s6814_s17 = smul.u32 56, %s12751_s22 }
 0x41e   : > { %v11244_v12 = vsel %vm12124_vm3, %v8060_v4, %v12114_v5  ;;  %v5002_v21 = vsel %vm12124_vm3, %v8069_v45, %v8059_v15  ;;  %8272 = vrot.lane.b32.xlu0 %v11031_v52, %s8414_s23  ;;  %v5003_v36 = vsel %vm12124_vm3, %v8059_v15, %v8060_v4  ;;  %v5055_v45 = vsel %vm12585_vm0, %v8084_v16, %v8074_v11 }
 0x41f   : > { %12584 = vst [vmem:[#allocation18_spill] sm:$0xff] %v11244_v12  ;;  %v6636_v56 = vpack.c.bf16 %v5002_v21, %v4948_v39  ;;  %v8113_v32 = vpop.permute.xlu1 %8112  ;;  %v8078_v23 = vpop.permute.xlu0 %8077  ;;  %v6634_v0 = vpack.c.bf16 %v5003_v36, %v4949_v46  ;;  %v12586_v15 = vunpack.i.h.bf16 %v11093_v54  ;;  %v8109_v21 = vunpack.i.l.bf16 %v11226_v24  ;;  %s251_s9 = scalar_lea.vmem %s11885_s6, %s6814_s17 }
 0x420   : > { %v8080_v5 = vunpack.i.h.bf16 %v8078_v23  ;;  %v8079_v42 = vunpack.i.l.bf16 %v8078_v23  ;;  %v8115_v35 = vunpack.i.h.bf16 %v8113_v32  ;;  %vm12594_vm0 = vcmask 228352  }
 0x421   : > { %8257 = vrot.lane.b32.xlu1 %v11031_v52, %s8411_s8  ;;  %6635 = vmatprep.subr.bf16.mxu1 %v6634_v0  ;;  %v5056_v39 = vsel %vm12587_vm12, %v8074_v11, %v12586_v15  ;;  %v12591_v11 = vunpack.i.h.bf16 %v11177_v59  ;;  %vm12595_vm12 = vcmask 220160   ;;  %vm12596_vm3 = vmmov %vm12594_vm0 }
 0x422   : > { %v11266_v23 = vsel %vm791_vm4, %v8080_v5, %v12118_v19  ;;  %v5108_v16 = vsel %vm791_vm4, %v8089_v6, %v8079_v42  ;;  %8282 = vrot.lane.b32.xlu0 %v11031_v52, %s12571_s26  ;;  %6637 = vmatpush1.bf16.msra.mxu1 %v6636_v56  ;;  %v5109_v4 = vsel %vm791_vm4, %v8079_v42, %v8080_v5  ;;  %v8114_v56 = vunpack.i.l.bf16 %v8113_v32 }
 0x423   : > { %12588 = vst [vmem:[#allocation29_spill] sm:$0xff] %v11266_v23  ;;  %v6640_v54 = vpack.c.bf16 %v5108_v16, %v5055_v45  ;;  %v11275_v36 = vpop.permute.xlu1 %8122  ;;  %v8098_v0 = vpop.permute.xlu0 %8097  ;;  %v6638_v15 = vpack.c.bf16 %v5109_v4, %v5056_v39  ;;  %v12589_v45 = vunpack.i.h.bf16 %v11226_v24  ;;  %v12590_v32 = vmov 0.0  }
 0x424   : > { %v12120_v19 = vunpack.i.h.bf16 %v11275_v36  ;;  %v8100_v6 = vunpack.i.h.bf16 %v8098_v0  ;;  %v8099_v46 = vunpack.i.l.bf16 %v8098_v0  ;;  %v8124_v42 = vunpack.i.l.bf16 %v11275_v36 }
 0x425   : > { %8267 = vrot.lane.b32.xlu1 %v11031_v52, %s8413_s14  ;;  %6639 = vmatprep.subr.bf16.mxu1 %v6638_v15 }
 0x426   : > { %v11285_v5 = vsel %vm12145_vm14, %v8115_v35, %v12120_v19  ;;  %v11290_v39 = vsel %vm5215_vm11, %v8100_v6, %v12589_v45  ;;  %v5216_v61 = vsel %vm5215_vm11, %v8109_v21, %v8099_v46  ;;  %5481 = vrot.lane.b32.xlu0 %v12590_v32, %s8423_s16  ;;  %6641 = vmatpush1.bf16.msra.mxu1 %v6640_v54 }
 0x427   : > { %v6644_v4 = vpack.c.bf16 %v5216_v61, %v5162_v55  ;;  %v11297_v0 = vpop.permute.xlu1 %8127  ;;  %v8118_v15 = vpop.permute.xlu0 %8117  ;;  %v5163_v19 = vsel %vm5161_vm10, %v8094_v53, %v12591_v11  ;;  %v5217_v45 = vsel %vm5215_vm11, %v8099_v46, %v8100_v6  ;;  %v5271_v54 = vsel %vm12145_vm14, %v8114_v56, %v8115_v35 }
 0x428   : > { %v12126_v7 = vunpack.i.h.bf16 %v11297_v0  ;;  %v8129_v21 = vunpack.i.l.bf16 %v11297_v0  ;;  %v8120_v23 = vunpack.i.h.bf16 %v8118_v15  ;;  %v8119_v12 = vunpack.i.l.bf16 %v8118_v15 }
 0x429   : > { %8277 = vrot.lane.b32.xlu1 %v11031_v52, %s8415_s24  ;;  %v6642_v55 = vpack.c.bf16 %v5217_v45, %v5163_v19  ;;  %v5270_v61 = vsel %vm12145_vm14, %v8124_v42, %v8114_v56  ;;  %v12592_v46 = vpack.i.bf16 %v11017_v20, %v10881_v44 }
 0x42a   : > { %v11312_v53 = vsel %vm12128_vm13, %v8120_v23, %v12126_v7  ;;  %v5324_v59 = vsel %vm12128_vm13, %v8129_v21, %v8119_v12  ;;  %v5325_v11 = vsel %vm12128_vm13, %v8119_v12, %v8120_v23  ;;  %vm5483_vm13 = vcmask 154624  }
 0x42b   : > { %8292 = vrot.lane.b32.xlu0 %v12592_v46, %s12574_s28  ;;  %v6648_v35 = vpack.c.bf16 %v5324_v59, %v5270_v61  ;;  %6643 = vmatprep.subr.bf16.mxu1 %v6642_v55  ;;  %v8133_v6 = vpop.permute.xlu1 %8132  ;;  %v8138_v56 = vpop.permute.xlu0 %8137  ;;  %v6646_v42 = vpack.c.bf16 %v5325_v11, %v5271_v54 }
 0x42c   : > { %6645 = vmatpush1.bf16.msra.mxu1 %v6644_v4  ;;  %v8135_v15 = vunpack.i.h.bf16 %v8133_v6  ;;  %v8134_v45 = vunpack.i.l.bf16 %v8133_v6  ;;  %v8140_v16 = vunpack.i.h.bf16 %v8138_v56  ;;  %v8139_v21 = vunpack.i.l.bf16 %v8138_v56 }
 0x42d   : > { %8287 = vrot.lane.b32.xlu1 %v11031_v52, %s12572_s29  ;;  %6647 = vmatprep.subr.bf16.mxu1 %v6646_v42  ;;  %s12598_s29 = smov 118  }
 0x42e   : > { %v5378_v12 = vsel %vm12594_vm0, %v8134_v45, %v8135_v15  ;;  %v5431_v23 = vsel %vm12595_vm12, %v8139_v21, %v8140_v16 }
 0x42f   : > { %8297 = vrot.lane.b32.xlu0 %v11031_v52, %s12593_s11  ;;  %v11328_v55 = vpop.permute.xlu1 %8142  ;;  %v8158_v61 = vpop.permute.xlu0 %8157  ;;  %v6650_v54 = vpack.c.bf16 %v5431_v23, %v5378_v12 }
 0x430   : > { %6649 = vmatpush1.bf16.msra.mxu1 %v6648_v35  ;;  %v12125_v4 = vunpack.i.h.bf16 %v11328_v55  ;;  %v8144_v59 = vunpack.i.l.bf16 %v11328_v55  ;;  %v8160_v42 = vunpack.i.h.bf16 %v8158_v61  ;;  %v8159_v23 = vunpack.i.l.bf16 %v8158_v61 }
 0x431   : > { %5428 = vrot.lane.b32.xlu1 %v12590_v32, %s8379_s12  ;;  %6651 = vmatprep.subr.bf16.mxu1 %v6650_v54 }
 0x432   : > { %v11337_v46 = vsel %vm12596_vm3, %v8135_v15, %v12125_v4  ;;  %v5377_v12 = vsel %vm12594_vm0, %v8144_v59, %v8134_v45  ;;  %vm12600_vm3 = vmmov %vm12595_vm12  ;;  %vm12606_vm0 = vcmask 146432  }
 0x433   : > { %12597 = vst [vmem:[#allocation77_spill] sm:$0xff] %v11337_v46  ;;  %8307 = vrot.lane.b32.xlu0 %v11031_v52, %s12598_s29  ;;  %v11341_v11 = vpop.permute.xlu1 %8147  ;;  %v11343_v6 = vpop.permute.xlu0 %5580  ;;  %vm12601_vm12 = vmmov %vm12600_vm3 }
 0x434   : > { %12599 = vst [vmem:[#allocation23_spill] sm:$0xff] %v11343_v6  ;;  %v12129_v35 = vunpack.i.h.bf16 %v11341_v11  ;;  %v8149_v56 = vunpack.i.l.bf16 %v11341_v11 }
 0x435   : > { %8302 = vrot.lane.b32.xlu1 %v11031_v52, %s8418_s7 }
 0x436   : > { %v5430_v15 = vsel %vm12600_vm3, %v8149_v56, %v8139_v21  ;;  %v11354_v54 = vsel %vm12601_vm12, %v8140_v16, %v12129_v35  ;;  %vm12611_vm3 = vmmov %vm12606_vm0 }
 0x437   : > { %12602 = vst [vmem:[#allocation21_spill] sm:$0xff] %v11354_v54  ;;  %8317 = vrot.lane.b32.xlu0 %v11031_v52, %s12603_s19  ;;  %v6652_v19 = vpack.c.bf16 %v5430_v15, %v5377_v12  ;;  %v8153_v7 = vpop.permute.xlu1 %8152  ;;  %v11360_v44 = vpop.permute.xlu0 %8172  ;;  %vm12612_vm12 = vmmov %vm12606_vm0 }
 0x438   : > { %12604 = vst [vmem:[#allocation20_spill] sm:$0xff] %v11360_v44  ;;  %v8155_v45 = vunpack.i.h.bf16 %v8153_v7  ;;  %v8154_v61 = vunpack.i.l.bf16 %v8153_v7  ;;  %v12131_v21 = vunpack.i.h.bf16 %v11360_v44  ;;  %v8174_v59 = vunpack.i.l.bf16 %v11360_v44 }
 0x439   : > { %8312 = vrot.lane.b32.xlu1 %v11031_v52, %s8372_s30  ;;  %6653 = vmatpush1.bf16.msra.mxu1 %v6652_v19  ;;  %v5538_v7 = vsel %vm12606_vm0, %v8159_v23, %v8160_v42  ;;  %s12608_s30 = smov 28   ;;  %vm12615_vm0 = vcmask 138240  }
 0x43a   : > { %v11369_v16 = vsel %vm4232_vm8, %v8174_v59, %v12131_v21  ;;  %v5485_v56 = vsel %vm5483_vm13, %v8154_v61, %v8155_v45  ;;  %v12607_v21 = vunpack.i.h.bf16 %v10926_v34 }
 0x43b   : > { %8327 = vrot.lane.b32.xlu0 %v11031_v52, %s12605_s10  ;;  %v11375_v12 = vpop.permute.xlu1 %8162  ;;  %v11377_v15 = vpop.permute.xlu0 %8177  ;;  %v6654_v4 = vpack.c.bf16 %v5538_v7, %v5485_v56 }
 0x43c   : > { %v12135_v35 = vunpack.i.h.bf16 %v11375_v12  ;;  %v12136_v19 = vunpack.i.h.bf16 %v11377_v15  ;;  %v8179_v44 = vunpack.i.l.bf16 %v11377_v15  ;;  %v4236_v6 = vsel %vm4232_vm8, %v12607_v21, %v8174_v59 }
 0x43d   : > { %8322 = vrot.lane.b32.xlu1 %v11031_v52, %s8420_s20  ;;  %6655 = vmatprep.subr.bf16.mxu1 %v6654_v4  ;;  %v8164_v46 = vunpack.i.l.bf16 %v11375_v12  ;;  %v12609_v4 = vunpack.i.h.bf16 %v10936_v47 }
 0x43e   : > { %v11391_v56 = vsel %vm5483_vm13, %v8155_v45, %v12135_v35  ;;  %v11396_v7 = vsel %vm4286_vm7, %v8179_v44, %v12136_v19 }
 0x43f   : > { %8337 = vrot.lane.b32.xlu0 %v11031_v52, %s12608_s30  ;;  %v4290_v34 = vsel %vm4286_vm7, %v12609_v4, %v8179_v44  ;;  %v11405_v59 = vpop.permute.xlu1 %8167  ;;  %v11407_v54 = vpop.permute.xlu0 %4946  ;;  %v5484_v47 = vsel %vm5483_vm13, %v8164_v46, %v8154_v61 }
 0x440   : > { %12610 = vst [vmem:[#allocation28_spill] sm:$0xff] %v11407_v54  ;;  %v6658_v45 = vpack.c.bf16 %v4290_v34, %v4236_v6  ;;  %v12138_v35 = vunpack.i.h.bf16 %v11405_v59  ;;  %v8169_v19 = vunpack.i.l.bf16 %v11405_v59  ;;  %v12613_v6 = vpack.c.bf16 %v10956_v22, %v10951_v8 }
 0x441   : > { %8332 = vrot.lane.b32.xlu1 %v11031_v52, %s12573_s27  ;;  %s12616_s27 = smov 17  }
 0x442   : > { %6659 = vmatprep.subr.bf16.mxu0 %v6658_v45  ;;  %v5537_v44 = vsel %vm12611_vm3, %v8169_v19, %v8159_v23  ;;  %v11418_v4 = vsel %vm12612_vm12, %v8160_v42, %v12138_v35  ;;  %v11442_v42 = vld [vmem:[%s11882_s3] sm:$0xff]  ;;  %vm12618_vm3 = vmmov %vm12615_vm0  ;;  %vm12628_vm12 = vcmask 965632  }
 0x443   : > { %8347 = vrot.lane.b32.xlu0 %v11031_v52, %s8423_s16  ;;  %6661 = vmatpush1.bf16.msra.mxu0 %v12613_v6  ;;  %v6656_v34 = vpack.c.bf16 %v5537_v44, %v5484_v47  ;;  %v5577_v21 = vpop.permute.xlu1 %5576  ;;  %v11427_v46 = vpop.permute.xlu0 %5053 }
 0x444   : > { %12614 = vst [vmem:[#allocation35_spill] sm:$0xff] %v11427_v46  ;;  %v5591_v23 = vsel %vm12615_vm0, %v5577_v21, %v11015_v9  ;;  %v5590_v61 = vsel %vm12618_vm3, %v10918_v27, %v5577_v21  ;;  %vm12632_vm0 = vcmask 736256   ;;  %vm12637_vm3 = vcmask 728064  }
 0x445   : > { %8342 = vrot.lane.b32.xlu1 %v11031_v52, %s8379_s12  ;;  %6657 = vmatpush1.bf16.msra.mxu1 %v6656_v34 }
 0x446   : > { %5864 = vmatprep.subr.mxu1 %v5591_v23  ;;  %v12620_v23 = vunpack.i.h.bf16 %v10960_v28  ;;  %v12622_v28 = vpack.c.bf16 %v11057_v31, %v11050_v57  ;;  %v12623_v57 = vunpack.i.h.bf16 %v10920_v60  ;;  %v12626_v60 = vpack.c.bf16 %v11073_v51, %v11083_v58 }
 0x447   : > { %5584 = vrot.lane.b32.xlu0 %v11017_v20, %s12616_s27  ;;  %v11435_v8 = vpop.permute.xlu1 %8182  ;;  %v11437_v22 = vpop.permute.xlu0 %5159  ;;  %v12630_v51 = vunpack.i.h.bf16 %v10938_v17 }
 0x448   : > { %12617 = vst [vmem:[#allocation31_spill] sm:$0xff] %v11437_v22  ;;  %v12137_v19 = vunpack.i.h.bf16 %v11435_v8  ;;  %v8184_v47 = vunpack.i.l.bf16 %v11435_v8 }
 0x449   : > { %8352 = vrot.lane.b32.xlu1 %v11031_v52, %s12569_s25  ;;  %5865 = vmatpush1.msra.mxu1 %v5590_v61 }
 0x44a   : > { %v11453_v44 = vsel %vm4340_vm5, %v8184_v47, %v12137_v19  ;;  %5877 = vmatmul.mubr.f32.vlgmr.msra.gmra.mrb[6].mxu1 %v11442_v42  ;;  %v4344_v61 = vsel %vm4340_vm5, %v12620_v23, %v8184_v47  ;;  %v12621_v19 = vunpack.i.h.bf16 %v10912_v13 }
 0x44b   : > { %5588 = vrot.lane.b32.xlu0 %v12590_v32, %s12616_s27  ;;  %v11458_v6 = vpop.permute.xlu1 %8187  ;;  %v11460_v27 = vpop.permute.xlu0 %5267  ;;  %6178 = vmatprep.mubr.msk.f32.mxu1 %vm5808_vm15, %v11184_v63 }
 0x44c   : > { %12619 = vst [vmem:[#allocation26_spill] sm:$0xff] %v11460_v27  ;;  %v12140_v52 = vunpack.i.h.bf16 %v11458_v6  ;;  %v8189_v21 = vunpack.i.l.bf16 %v11458_v6 }
 0x44d   : > { %5535 = vrot.lane.b32.xlu1 %v12590_v32, %s12569_s25 }
 0x44e   : > { %v11471_v34 = vsel %vm4394_vm2, %v8189_v21, %v12140_v52  ;;  %v4398_v45 = vsel %vm4394_vm2, %v12621_v19, %v8189_v21 }
 0x44f   : > { %v11481_v27 = vpop.permute.xlu1 %8192  ;;  %v11483_v22 = vpop.permute.xlu0 %4940  ;;  %v6662_v32 = vpack.c.bf16 %v4398_v45, %v4344_v61  ;;  %v5802_v45 = vld [vmem:[%s11883_s4 + $0x8] sm:$0xff]  ;;  %v12624_v61 = vunpack.i.h.bf16 %v10928_v25 }
 0x450   : > { %v12141_v46 = vunpack.i.h.bf16 %v11481_v27  ;;  %v8194_v52 = vunpack.i.l.bf16 %v11481_v27 }
 0x451   : > { %5586 = vrot.lane.b32.xlu1 %v11009_v37, %s12616_s27  ;;  %6663 = vmatprep.subr.bf16.mxu0 %v6662_v32 }
 0x452   : > { %v11492_v13 = vsel %vm4448_vm9, %v8194_v52, %v12141_v46  ;;  %6665 = vmatpush1.bf16.msra.mxu0 %v12622_v28  ;;  %v4452_v31 = vsel %vm4448_vm9, %v12623_v57, %v8194_v52  ;;  %v12627_v57 = vunpack.i.h.bf16 %v11120_v18 }
 0x453   : > { %v11500_v19 = vpop.permute.xlu1 %8197  ;;  %v11502_v47 = vpop.permute.xlu0 %4993 }
 0x454   : > { %v12142_v21 = vunpack.i.h.bf16 %v11500_v19  ;;  %v8199_v32 = vunpack.i.l.bf16 %v11500_v19 }
 0x455   : > { %5805 = vperm.xlu1 %8356, %v5802_v45  }
 0x456   : > { %v11509_v23 = vsel %vm4502_vm1, %v8199_v32, %v12142_v21  ;;  %v4506_v28 = vsel %vm4502_vm1, %v12624_v61, %v8199_v32 }
 0x457   : > { %v11519_v35 = vpop.permute.xlu1 %8202  ;;  %v11521_v54 = vpop.permute.xlu0 %5047  ;;  %v6666_v45 = vpack.c.bf16 %v4506_v28, %v4452_v31  ;;  %v12629_v31 = vunpack.i.h.bf16 %v11153_v10 }
 0x458   : > { %12625 = vst [vmem:[#allocation25_spill] sm:$0xff] %v11521_v54  ;;  %v12144_v21 = vunpack.i.l.bf16 %v11519_v35  ;;  %v5058_v61 = vsel %vm12628_vm12, %v12627_v57, %v11521_v54  ;;  %vm12639_vm12 = vcmask 89088  }
 0x459   : > { %6667 = vmatprep.subr.bf16.mxu0 %v6666_v45 }
 0x45a   : > { %6669 = vmatpush1.bf16.msra.mxu0 %v12626_v60  ;;  %v4560_v58 = vsel %vm4556_vm6, %v12630_v51, %v12144_v21  ;;  %v12631_v60 = vunpack.i.h.bf16 %v10962_v38  ;;  %v12634_v38 = vunpack.i.h.bf16 %v11199_v3 }
 0x45b   : > { %v11527_v52 = vpop.permute.xlu1 %8207 }
 0x45c   : > { %v8209_v25 = vunpack.i.l.bf16 %v11527_v52  ;;  %v11530_v32 = vpop.permute.xlu0 %5100 }
 0x45d   : > { %v5111_v28 = vsel %vm791_vm4, %v12629_v31, %v11530_v32 }
 0x45e   : > { %v6690_v45 = vpack.c.bf16 %v5111_v28, %v5058_v61  ;;  %v4614_v18 = vsel %vm12632_vm0, %v12631_v60, %v8209_v25  ;;  %v12633_v61 = vpack.c.bf16 %v11100_v1, %v11111_v49  ;;  %v12636_v1 = vunpack.i.h.bf16 %v10972_v29 }
 0x45f   : > { %v11550_v46 = vpop.permute.xlu1 %8212  ;;  %v6670_v57 = vpack.c.bf16 %v4614_v18, %v4560_v58  ;;  %v12635_v58 = vunpack.i.h.bf16 %v11226_v24  ;;  %vm12643_vm0 = vcmask 236544  }
 0x460   : > { %v11552_v54 = vpop.permute.xlu0 %5153  ;;  %v12146_v10 = vunpack.i.l.bf16 %v11550_v46 }
 0x461   : > { %6671 = vmatprep.subr.bf16.mxu0 %v6670_v57  ;;  %v5165_v51 = vsel %vm5161_vm10, %v12634_v38, %v11552_v54  ;;  %v12638_v57 = vunpack.i.h.bf16 %v10980_v30 }
 0x462   : > { %6673 = vmatpush1.bf16.msra.mxu0 %v12633_v61  ;;  %v4668_v49 = vsel %vm12637_vm3, %v12636_v1, %v12146_v10  ;;  %v12641_v1 = vunpack.i.h.bf16 %v11275_v36  ;;  %vm12644_vm3 = vcmask 7168   ;;  %v12647_v36 = vunpack.i.h.bf16 %v11002_v2  ;;  %v12653_v2 = vld [vmem:[#allocation16_spill] sm:$0xff] }
 0x463   : > { %v11558_v17 = vpop.permute.xlu1 %8217  ;;  %v12649_v10 = vunpack.i.h.bf16 %v11179_v50  ;;  %v12657_v50 = vld [vmem:[#allocation12_spill] sm:$0xff] }
 0x464   : > { %v12149_v31 = vunpack.i.l.bf16 %v11558_v17  ;;  %v11561_v28 = vpop.permute.xlu0 %5207 }
 0x465   : > { %v5219_v60 = vsel %vm5215_vm11, %v12635_v58, %v11561_v28  ;;  %v7985_v58 = vunpack.i.h.bf16 %v10910_v43  ;;  %v12645_v43 = vunpack.i.h.bf16 %v10989_v41  ;;  %v12651_v41 = vunpack.i.h.bf16 %v11064_v40 }
 0x466   : > { %v6694_v18 = vpack.c.bf16 %v5219_v60, %v5165_v51  ;;  %v4722_v3 = vsel %vm12639_vm12, %v12638_v57, %v12149_v31  ;;  %v12640_v51 = vpack.c.bf16 %v11126_v14, %v11145_v33  ;;  %v12642_v57 = vunpack.i.h.bf16 %v11297_v0 }
 0x467   : > { %v11581_v61 = vpop.permute.xlu1 %8222  ;;  %v6674_v38 = vpack.c.bf16 %v4722_v3, %v4668_v49  ;;  %v4884_v14 = vsel %vm12644_vm3, %v7985_v58, %v11201_v62  ;;  %vm12646_vm12 = vcmask 80896   ;;  %v12660_v40 = vunpack.i.h.bf16 %v11328_v55 }
 0x468   : > { %v11583_v21 = vpop.permute.xlu0 %5261  ;;  %v12147_v24 = vunpack.i.l.bf16 %v11581_v61 }
 0x469   : > { %6675 = vmatprep.subr.bf16.mxu0 %v6674_v38  ;;  %v5273_v49 = vsel %vm12145_vm14, %v12641_v1, %v11583_v21  ;;  %vm12648_vm14 = vcmask 72704  }
 0x46a   : > { %6677 = vmatpush1.bf16.msra.mxu0 %v12640_v51  ;;  %v4776_v38 = vsel %vm12646_vm12, %v12645_v43, %v12147_v24  ;;  %v12654_v24 = vld [vmem:[#allocation14_spill] sm:$0xff]  ;;  %vm12661_vm12 = vcmask 228352  }
 0x46b   : > { %v11589_v29 = vpop.permute.xlu1 %8227 }
 0x46c   : > { %v12148_v30 = vunpack.i.l.bf16 %v11589_v29  ;;  %v11593_v60 = vpop.permute.xlu0 %5315 }
 0x46d   : > { %v5327_v3 = vsel %vm12643_vm0, %v12642_v57, %v11593_v60  ;;  %vm12650_vm0 = vmmov %vm12644_vm3  ;;  %vm12652_vm3 = vcmask 973824  }
 0x46e   : > { %v6698_v33 = vpack.c.bf16 %v5327_v3, %v5273_v49  ;;  %v4830_v51 = vsel %vm12648_vm14, %v12647_v36, %v12148_v30  ;;  %v4883_v49 = vsel %vm12650_vm0, %v12649_v10, %v7985_v58  ;;  %v6682_v3 = vpack.c.bf16 %v10828_v48, %v4884_v14 }
 0x46f   : > { %v11615_v1 = vpop.permute.xlu1 %4878  ;;  %v6678_v0 = vpack.c.bf16 %v4830_v51, %v4776_v38  ;;  %v5005_v43 = vsel %vm12652_vm3, %v12651_v41, %v11502_v47  ;;  %v12655_v36 = vpack.c.bf16 %v12653_v2, %v12654_v24  ;;  %v12656_v38 = vld [vmem:[#allocation17_spill] sm:$0xff]  ;;  %v12658_v10 = vunpack.i.h.bf16 %v12657_v50 }
 0x470   : > { %v11617_v57 = vpop.permute.xlu0 %5369  ;;  %v6684_v51 = vpack.c.bf16 %v12656_v38, %v4883_v49  ;;  %vm12659_vm14 = vcmask 1039360   ;;  %v12662_v24 = vunpack.i.h.bf16 %v11341_v11  ;;  %vm12663_vm0 = vcmask 220160   ;;  %v12665_v38 = vld [vmem:[#allocation22_spill] sm:$0xff] }
 0x471   : > { %6679 = vmatprep.subr.bf16.mxu0 %v6678_v0  ;;  %v4951_v48 = vsel %vm12659_vm14, %v12658_v10, %v11483_v22  ;;  %v5380_v0 = vsel %vm12661_vm12, %v12660_v40, %v11617_v57  ;;  %v12667_v11 = vunpack.i.h.bf16 %v11375_v12  ;;  %vm12669_vm3 = vcmask 146432   ;;  %v12670_v40 = vld [vmem:[#allocation29_spill] sm:$0xff] }
 0x472   : > { %6681 = vmatpush1.bf16.msra.mxu0 %v12655_v36  ;;  %v6686_v14 = vpack.c.bf16 %v5005_v43, %v4951_v48  ;;  %v12664_v36 = vld [vmem:[#allocation18_spill] sm:$0xff]  ;;  %v12673_v12 = vpack.c.bf16 %v11290_v39, %v11220_v26  ;;  %vm12680_vm14 = vcmask 138240  }
 0x473   : > { %v11630_v30 = vpop.permute.xlu1 %4999  ;;  %6683 = vmatprep.subr.bf16.mxu0 %v6682_v3  ;;  %v12666_v43 = vpack.c.bf16 %v12664_v36, %v12665_v38  ;;  %v12674_v38 = vpack.c.bf16 %v11312_v53, %v11285_v5  ;;  %v12678_v5 = vpack.c.bf16 %v11418_v4, %v11391_v56  ;;  %v12679_v53 = vld [vmem:[#allocation23_spill] sm:$0xff]  ;;  %vm12684_vm12 = vmmov %vm12680_vm14 }
 0x474   : > { %v11637_v58 = vpop.permute.xlu0 %5422 }
 0x475   : > { %v5433_v3 = vsel %vm12663_vm0, %v12662_v24, %v11637_v58  ;;  %vm12705_vm0 = vcmask 72704  }
 0x476   : > { %v6702_v41 = vpack.c.bf16 %v5433_v3, %v5380_v0  ;;  %6685 = vmatpush1.bf16.msra.mxu0 %v6684_v51  ;;  %v12668_v51 = vunpack.i.h.bf16 %v11405_v59  ;;  %v12671_v0 = vld [vmem:[#allocation24_spill] sm:$0xff] }
 0x477   : > { %v11647_v49 = vpop.permute.xlu1 %5106  ;;  %6687 = vmatprep.subr.bf16.mxu0 %v6686_v14  ;;  %v12672_v24 = vpack.c.bf16 %v12670_v40, %v12671_v0 }
 0x478   : > { %v11649_v2 = vpop.permute.xlu0 %5475 }
 0x479   : > { %v5487_v10 = vsel %vm5483_vm13, %v12667_v11, %v11649_v2 }
 0x47a   : > { %6689 = vmatpush1.bf16.msra.mxu0 %v12666_v43 }
 0x47b   : > { %v11654_v50 = vpop.permute.xlu1 %5213  ;;  %6691 = vmatprep.subr.bf16.mxu0 %v6690_v45 }
 0x47c   : > { %v11656_v55 = vpop.permute.xlu0 %5529 }
 0x47d   : > { %v5540_v48 = vsel %vm12669_vm3, %v12668_v51, %v11656_v55  ;;  %v12676_v51 = vld [vmem:[#allocation77_spill] sm:$0xff] }
 0x47e   : > { %v6706_v14 = vpack.c.bf16 %v5540_v48, %v5487_v10  ;;  %6693 = vmatpush1.bf16.msra.mxu0 %v12672_v24 }
 0x47f   : > { %v11669_v3 = vpop.permute.xlu1 %5321  ;;  %6695 = vmatprep.subr.bf16.mxu0 %v6694_v18  ;;  %v12675_v18 = vld [vmem:[#allocation21_spill] sm:$0xff] }
 0x480   : > { %v11671_v45 = vpop.permute.xlu0 %5375  ;;  %v12677_v48 = vpack.c.bf16 %v12675_v18, %v12676_v51 }
 0x482   : > { %6697 = vmatpush1.bf16.msra.mxu0 %v12673_v12  ;;  %v12681_v12 = vld [vmem:[#allocation20_spill] sm:$0xff] }
 0x483   : > { %v11676_v36 = vpop.permute.xlu1 %5582  ;;  %6699 = vmatprep.subr.bf16.mxu0 %v6698_v33 }
 0x484   : > { %v8243_v59 = vpop.permute.xlu0 %8242 }
 0x485   : > { %v8244_v24 = vunpack.i.l.bf16 %v8243_v59 }
 0x486   : > { %6701 = vmatpush1.bf16.msra.mxu0 %v12674_v38  ;;  %v12682_v38 = vunpack.i.h.bf16 %v12681_v12  ;;  %v8245_v12 = vunpack.i.h.bf16 %v8243_v59 }
 0x487   : > { %v8233_v43 = vpop.permute.xlu1 %8232  ;;  %6703 = vmatprep.subr.bf16.mxu0 %v6702_v41  ;;  %v5593_v41 = vsel %vm12680_vm14, %v12679_v53, %v11676_v36  ;;  %vm12707_vm14 = vcmask 80896  }
 0x488   : > { %v11681_v11 = vpop.permute.xlu0 %8252  ;;  %v8234_v10 = vunpack.i.l.bf16 %v8233_v43  ;;  %v8235_v33 = vunpack.i.h.bf16 %v8233_v43 }
 0x48a   : > { %6705 = vmatpush1.bf16.msra.mxu0 %v12677_v48  ;;  %v4238_v18 = vsel %vm4232_vm8, %v12682_v38, %v8234_v10  ;;  %v4239_v38 = vsel %vm4232_vm8, %v8234_v10, %v8235_v33  ;;  %v12688_v33 = vmov 0.0|0.0  }
 0x48b   : > { %v8238_v40 = vpop.permute.xlu1 %8237  ;;  %6707 = vmatprep.subr.bf16.mxu0 %v6706_v14  ;;  %v12683_v14 = vunpack.i.h.bf16 %v11377_v15  ;;  %v8254_v15 = vunpack.i.l.bf16 %v11681_v11 }
 0x48c   : > { %v8240_v26 = vunpack.i.h.bf16 %v8238_v40  ;;  %v8239_v39 = vunpack.i.l.bf16 %v8238_v40  ;;  %v11686_v0 = vpop.permute.xlu0 %8262 }
 0x48e   : > { %6709 = vmatpush1.bf16.msra.mxu0 %v12678_v5  ;;  %v4292_v51 = vsel %vm4286_vm7, %v12683_v14, %v8239_v39  ;;  %v4293_v48 = vsel %vm4286_vm7, %v8239_v39, %v8240_v26  ;;  %v5592_v5 = vsel %vm12684_vm12, %v11015_v9, %v12679_v53  ;;  %v12685_v26 = vpack.c.bf16 %v11396_v7, %v11369_v16  ;;  %vm12708_vm12 = vmmov %vm12705_vm0 }
 0x48f   : > { %v8248_v43 = vpop.permute.xlu1 %8247  ;;  %5935 = vmatprep.subr.mxu0 %v5593_v41  ;;  %v6710_v40 = vpack.c.bf16 %v4292_v51, %v4238_v18  ;;  %v6763_v14 = vpack.c.bf16 %v4293_v48, %v4239_v38  ;;  %v12686_v39 = vunpack.i.h.bf16 %v11435_v8  ;;  %v12687_v18 = vunpack.i.h.bf16 %v11458_v6 }
 0x490   : > { %v8250_v31 = vunpack.i.h.bf16 %v8248_v43  ;;  %v8249_v56 = vunpack.i.l.bf16 %v8248_v43  ;;  %v11701_v4 = vpop.permute.xlu0 %8272  ;;  %v8210_v51 = vunpack.i.h.bf16 %v11527_v52  ;;  %v8205_v8 = vunpack.i.h.bf16 %v11519_v35 }
 0x491   : > { %6711 = vmatprep.subr.bf16.mxu1 %v6710_v40  ;;  %v4346_v41 = vsel %vm4340_vm5, %v12686_v39, %v8244_v24  ;;  %v4347_v6 = vsel %vm4340_vm5, %v8244_v24, %v8245_v12  ;;  %v8264_v43 = vunpack.i.l.bf16 %v11686_v0  ;;  %v12691_v38 = vunpack.i.h.bf16 %v11500_v19 }
 0x492   : > { %5936 = vmatpush1.msra.mxu0 %v5592_v5  ;;  %6713 = vmatpush1.bf16.msra.mxu1 %v12685_v26  ;;  %v4400_v9 = vsel %vm4394_vm2, %v12687_v18, %v8249_v56  ;;  %v4401_v59 = vsel %vm4394_vm2, %v8249_v56, %v8250_v31  ;;  %v8255_v31 = vunpack.i.h.bf16 %v11681_v11  ;;  %v12689_v56 = vpack.c.bf16 %v11471_v34, %v11453_v44 }
 0x493   : > { %v8258_v10 = vpop.permute.xlu1 %8257  ;;  %5948 = vmatmul.mubr.f32.vlgmr.msra.gmra.mrb[4].mxu0 %v11442_v42  ;;  %6762 = vmatprep.subr.bf16.mxu0 %v12688_v33  ;;  %v6714_v53 = vpack.c.bf16 %v4400_v9, %v4346_v41  ;;  %v6766_v40 = vpack.c.bf16 %v4401_v59, %v4347_v6  ;;  %v12690_v5 = vunpack.i.h.bf16 %v11481_v27  ;;  %vm12692_vm7 = vcmask 736256  }
 0x494   : > { %v8260_v16 = vunpack.i.h.bf16 %v8258_v10  ;;  %v8259_v7 = vunpack.i.l.bf16 %v8258_v10  ;;  %v11721_v48 = vpop.permute.xlu0 %8282  ;;  %6764 = vmatpush1.bf16.msra.mxu0 %v6763_v14  ;;  %6179 = vmatprep.mubr.msk.f32.mxu0 %vm5808_vm15, %v11184_v63  ;;  %v4615_v26 = vsel %vm12692_vm7, %v8209_v25, %v8210_v51  ;;  %v8220_v39 = vunpack.i.h.bf16 %v11558_v17  ;;  %vm12695_vm8 = vmmov %vm12692_vm7 }
 0x495   : > { %6715 = vmatprep.subr.bf16.mxu1 %v6714_v53  ;;  %6765 = vmatprep.subr.bf16.mxu0 %v12688_v33  ;;  %v4454_v63 = vsel %vm4448_vm9, %v12690_v5, %v8254_v15  ;;  %v4455_v27 = vsel %vm4448_vm9, %v8254_v15, %v8255_v31  ;;  %v8265_v19 = vunpack.i.h.bf16 %v11686_v0  ;;  %v8274_v18 = vunpack.i.l.bf16 %v11701_v4  ;;  %vm12696_vm5 = vmmov %vm12692_vm7 }
 0x496   : > { %6717 = vmatpush1.bf16.msra.mxu1 %v12689_v56  ;;  %v4508_v24 = vsel %vm4502_vm1, %v12691_v38, %v8259_v7  ;;  %v4509_v11 = vsel %vm4502_vm1, %v8259_v7, %v8260_v16  ;;  %v12693_v52 = vunpack.i.l.bf16 %v11519_v35  ;;  %v12694_v59 = vpack.c.bf16 %v11509_v23, %v11492_v13 }
 0x497   : > { %v8268_v12 = vpop.permute.xlu1 %8267  ;;  %v6718_v14 = vpack.c.bf16 %v4508_v24, %v4454_v63  ;;  %v6769_v9 = vpack.c.bf16 %v4509_v11, %v4455_v27  ;;  %v4562_v10 = vsel %vm4556_vm6, %v8205_v8, %v8264_v43  ;;  %v8215_v0 = vunpack.i.h.bf16 %v11550_v46 }
 0x498   : > { %v8270_v44 = vunpack.i.h.bf16 %v8268_v12  ;;  %v8269_v34 = vunpack.i.l.bf16 %v8268_v12  ;;  %v11744_v41 = vpop.permute.xlu0 %5481  ;;  %6767 = vmatpush1.bf16.msra.mxu0 %v6766_v40  ;;  %v4561_v25 = vsel %vm4556_vm6, %v12693_v52, %v8205_v8  ;;  %v12697_v35 = vunpack.i.l.bf16 %v11558_v17 }
 0x499   : > { %6719 = vmatprep.subr.bf16.mxu1 %v6718_v14  ;;  %6768 = vmatprep.subr.bf16.mxu0 %v12688_v33  ;;  %v6724_v53 = vpack.c.bf16 %v4615_v26, %v4561_v25  ;;  %vm12698_vm1 = vcmask 89088   ;;  %v8230_v40 = vunpack.i.h.bf16 %v11589_v29  ;;  %v4563_v8 = vsel %vm4556_vm6, %v8264_v43, %v8265_v19 }
 0x49a   : > { %6721 = vmatpush1.bf16.msra.mxu1 %v12694_v59  ;;  %v4616_v15 = vsel %vm12695_vm8, %v8210_v51, %v8269_v34  ;;  %v4617_v16 = vsel %vm12696_vm5, %v8269_v34, %v8270_v44  ;;  %v4723_v31 = vsel %vm12698_vm1, %v12697_v35, %v8220_v39  ;;  %v8275_v51 = vunpack.i.h.bf16 %v11701_v4  ;;  %vm12700_vm9 = vmmov %vm12698_vm1 }
 0x49b   : > { %v8278_v7 = vpop.permute.xlu1 %8277  ;;  %v6722_v6 = vpack.c.bf16 %v4616_v15, %v4562_v10  ;;  %v8284_v5 = vunpack.i.l.bf16 %v11721_v48  ;;  %vm12699_vm2 = vcmask 728064   ;;  %v6772_v17 = vpack.c.bf16 %v4617_v16, %v4563_v8  ;;  %vm12703_vm6 = vmmov %vm12698_vm1 }
 0x49c   : > { %v8280_v56 = vunpack.i.h.bf16 %v8278_v7  ;;  %v8279_v13 = vunpack.i.l.bf16 %v8278_v7  ;;  %6770 = vmatpush1.bf16.msra.mxu0 %v6769_v9  ;;  %v4670_v63 = vsel %vm12699_vm2, %v8215_v0, %v8274_v18  ;;  %v12701_v12 = vunpack.i.l.bf16 %v11550_v46  ;;  %vm12702_vm15 = vmmov %vm12699_vm2 }
 0x49d   : > { %v8293_v23 = vpop.permute.xlu0 %8292  ;;  %6723 = vmatprep.subr.bf16.mxu1 %v6722_v6  ;;  %6771 = vmatprep.subr.bf16.mxu0 %v12688_v33  ;;  %v8225_v43 = vunpack.i.h.bf16 %v11581_v61  ;;  %v12704_v25 = vunpack.i.l.bf16 %v11589_v29  ;;  %vm12706_vm3 = vmmov %vm12699_vm2  ;;  %v8285_v46 = vunpack.i.h.bf16 %v11721_v48  ;;  %vm12709_vm7 = vcmask 7168  }
 0x49e   : > { %v8295_v38 = vunpack.i.h.bf16 %v8293_v23  ;;  %v8294_v24 = vunpack.i.l.bf16 %v8293_v23  ;;  %6725 = vmatpush1.bf16.msra.mxu1 %v6724_v53  ;;  %v4724_v11 = vsel %vm12700_vm9, %v8220_v39, %v8279_v13  ;;  %v4669_v14 = vsel %vm12702_vm15, %v12701_v12, %v8215_v0  ;;  %vm12711_vm8 = vmmov %vm12707_vm14 }
 0x49f   : > { %v4725_v4 = vsel %vm12703_vm6, %v8279_v13, %v8280_v56  ;;  %v8288_v26 = vpop.permute.xlu1 %8287  ;;  %v6726_v44 = vpack.c.bf16 %v4724_v11, %v4670_v63  ;;  %v6728_v34 = vpack.c.bf16 %v4723_v31, %v4669_v14  ;;  %v4831_v9 = vsel %vm12705_vm0, %v12704_v25, %v8230_v40  ;;  %vm12712_vm5 = vmmov %vm12705_vm0 }
 0x4a0   : > { %v8290_v27 = vunpack.i.h.bf16 %v8288_v26  ;;  %v8289_v19 = vunpack.i.l.bf16 %v8288_v26  ;;  %6773 = vmatpush1.bf16.msra.mxu0 %v6772_v17  ;;  %v4671_v39 = vsel %vm12706_vm3, %v8274_v18, %v8275_v51  ;;  %v4778_v10 = vsel %vm12707_vm14, %v8225_v43, %v8284_v5  ;;  %vm12713_vm1 = vmmov %vm12711_vm8  ;;  %v12716_v51 = vld [vmem:[#allocation6_spill] sm:$0xff] }
 0x4a1   : > { %v8298_v52 = vpop.permute.xlu0 %8297  ;;  %6727 = vmatprep.subr.bf16.mxu1 %v6726_v44  ;;  %6774 = vmatprep.subr.bf16.mxu0 %v12688_v33  ;;  %v6775_v59 = vpack.c.bf16 %v4725_v4, %v4671_v39  ;;  %v4886_v53 = vsel %vm12709_vm7, %v8294_v24, %v8295_v38  ;;  %v12710_v0 = vunpack.i.l.bf16 %v11581_v61  ;;  %v4779_v35 = vsel %vm12713_vm1, %v8284_v5, %v8285_v46  ;;  %vm12714_vm2 = vmmov %vm12709_vm7 }
 0x4a2   : > { %6729 = vmatpush1.bf16.msra.mxu1 %v6728_v34  ;;  %v4832_v15 = vsel %vm12708_vm12, %v8230_v40, %v8289_v19  ;;  %v4833_v16 = vsel %vm12712_vm5, %v8289_v19, %v8290_v27  ;;  %v4885_v31 = vsel %vm12714_vm2, %v11201_v62, %v8294_v24  ;;  %v6734_v40 = vpack.c.bf16 %v11017_v20, %v4886_v53  ;;  %vm12715_vm9 = vmmov %vm12714_vm2  ;;  %v12722_v27 = vld [vmem:[#allocation28_spill] sm:$0xff] }
 0x4a3   : > { %v4777_v29 = vsel %vm12711_vm8, %v12710_v0, %v8225_v43  ;;  %v11788_v18 = vpop.permute.xlu1 %5428  ;;  %v6730_v48 = vpack.c.bf16 %v4832_v15, %v4778_v10  ;;  %v4887_v61 = vsel %vm12715_vm9, %v8295_v38, %v11615_v1  ;;  %v6778_v56 = vpack.c.bf16 %v4833_v16, %v4779_v35 }
 0x4a4   : > { %v6732_v7 = vpack.c.bf16 %v4831_v9, %v4777_v29  ;;  %6776 = vmatpush1.bf16.msra.mxu0 %v6775_v59  ;;  %v8299_v13 = vunpack.i.l.bf16 %v8298_v52  ;;  %v8300_v23 = vunpack.i.h.bf16 %v8298_v52  ;;  %v6736_v63 = vpack.c.bf16 %v12716_v51, %v4885_v31  ;;  %v12724_v52 = vld [vmem:[#allocation25_spill] sm:$0xff] }
 0x4a5   : > { %v8308_v6 = vpop.permute.xlu0 %8307  ;;  %6731 = vmatprep.subr.bf16.mxu1 %v6730_v48  ;;  %6777 = vmatprep.subr.bf16.mxu0 %v12688_v33  ;;  %v6781_v62 = vpack.c.bf16 %v11009_v37, %v4887_v61  ;;  %vm12717_vm15 = vcmask 1039360   ;;  %vm12718_vm6 = vcmask 973824   ;;  %vm12725_vm7 = vcmask 965632  }
 0x4a6   : > { %6733 = vmatpush1.bf16.msra.mxu1 %v6732_v7  ;;  %v4952_v20 = vsel %vm12717_vm15, %v11483_v22, %v8299_v13  ;;  %v8309_v1 = vunpack.i.l.bf16 %v8308_v6  ;;  %vm12719_vm0 = vmmov %vm12718_vm6  ;;  %v8310_v12 = vunpack.i.h.bf16 %v8308_v6  ;;  %v12727_v7 = vld [vmem:[#allocation35_spill] sm:$0xff] }
 0x4a7   : > { %v8303_v8 = vpop.permute.xlu1 %8302  ;;  %6735 = vmatprep.subr.bf16.mxu1 %v6734_v40  ;;  %vm12720_vm3 = vmmov %vm12719_vm0 }
 0x4a8   : > { %v8305_v5 = vunpack.i.h.bf16 %v8303_v8  ;;  %v8304_v17 = vunpack.i.l.bf16 %v8303_v8  ;;  %6779 = vmatpush1.bf16.msra.mxu0 %v6778_v56  ;;  %vm12721_vm14 = vmmov %vm12717_vm15  ;;  %v5059_v25 = vsel %vm12725_vm7, %v12724_v52, %v8309_v1  ;;  %vm12737_vm15 = vcmask 228352  }
 0x4a9   : > { %v8318_v11 = vpop.permute.xlu0 %8317  ;;  %6780 = vmatprep.subr.bf16.mxu0 %v12688_v33  ;;  %v4953_v37 = vsel %vm12721_vm14, %v8299_v13, %v8300_v23  ;;  %vm12723_vm12 = vmmov %vm12721_vm14 }
 0x4aa   : > { %v5006_v38 = vsel %vm12718_vm6, %v11502_v47, %v8304_v17  ;;  %6737 = vmatpush1.bf16.msra.mxu1 %v6736_v63  ;;  %v5007_v24 = vsel %vm12719_vm0, %v8304_v17, %v8305_v5  ;;  %v5008_v14 = vsel %vm12720_vm3, %v8305_v5, %v11630_v30  ;;  %v4954_v19 = vsel %vm12723_vm12, %v8300_v23, %v12722_v27  ;;  %vm12726_vm8 = vmmov %vm12725_vm7  ;;  %v12729_v5 = vld [vmem:[#allocation31_spill] sm:$0xff] }
 0x4ab   : > { %v6740_v43 = vpack.c.bf16 %v5006_v38, %v4952_v20  ;;  %v8313_v4 = vpop.permute.xlu1 %8312  ;;  %v6738_v22 = vpack.c.bf16 %v5007_v24, %v4953_v37  ;;  %v8319_v47 = vunpack.i.l.bf16 %v8318_v11  ;;  %v6784_v9 = vpack.c.bf16 %v5008_v14, %v4954_v19  ;;  %vm12728_vm5 = vmmov %vm12725_vm7 }
 0x4ac   : > { %v8315_v26 = vunpack.i.h.bf16 %v8313_v4  ;;  %v8314_v44 = vunpack.i.l.bf16 %v8313_v4  ;;  %6782 = vmatpush1.bf16.msra.mxu0 %v6781_v62  ;;  %v8320_v46 = vunpack.i.h.bf16 %v8318_v11  ;;  %v5060_v53 = vsel %vm12726_vm8, %v8309_v1, %v8310_v12  ;;  %vm12738_vm6 = vmmov %vm12737_vm15 }
 0x4ad   : > { %v8328_v34 = vpop.permute.xlu0 %8327  ;;  %6783 = vmatprep.subr.bf16.mxu0 %v12688_v33  ;;  %6739 = vmatprep.subr.bf16.mxu1 %v6738_v22  ;;  %v5166_v6 = vsel %vm5161_vm10, %v11552_v54, %v8319_v47  ;;  %vm12739_vm0 = vcmask 220160   ;;  %vm12742_vm12 = vmmov %vm12738_vm6  ;;  %vm12743_vm7 = vcmask 146432  }
 0x4ae   : > { %v5112_v30 = vsel %vm791_vm4, %v11530_v32, %v8314_v44  ;;  %v5113_v39 = vsel %vm791_vm4, %v8314_v44, %v8315_v26  ;;  %v5114_v59 = vsel %vm791_vm4, %v8315_v26, %v11647_v49  ;;  %6741 = vmatpush1.bf16.msra.mxu1 %v6740_v43  ;;  %v5061_v32 = vsel %vm12728_vm5, %v8310_v12, %v12727_v7  ;;  %v12735_v26 = vld [vmem:[#allocation26_spill] sm:$0xff]  ;;  %vm12740_vm3 = vmmov %vm12739_vm0 }
 0x4af   : > { %v6744_v10 = vpack.c.bf16 %v5112_v30, %v5059_v25  ;;  %v8323_v15 = vpop.permute.xlu1 %8322  ;;  %v6742_v48 = vpack.c.bf16 %v5113_v39, %v5060_v53  ;;  %v8329_v35 = vunpack.i.l.bf16 %v8328_v34  ;;  %v6787_v49 = vpack.c.bf16 %v5114_v59, %v5061_v32  ;;  %vm12741_vm14 = vmmov %vm12739_vm0 }
 0x4b0   : > { %v8325_v0 = vunpack.i.h.bf16 %v8323_v15  ;;  %v8324_v29 = vunpack.i.l.bf16 %v8323_v15  ;;  %6785 = vmatpush1.bf16.msra.mxu0 %v6784_v9  ;;  %v8330_v31 = vunpack.i.h.bf16 %v8328_v34  ;;  %v5167_v8 = vsel %vm5161_vm10, %v8319_v47, %v8320_v46  ;;  %vm12744_vm8 = vmmov %vm12743_vm7 }
 0x4b1   : > { %v8338_v16 = vpop.permute.xlu0 %8337  ;;  %6786 = vmatprep.subr.bf16.mxu0 %v12688_v33  ;;  %6743 = vmatprep.subr.bf16.mxu1 %v6742_v48  ;;  %v5168_v17 = vsel %vm5161_vm10, %v8320_v46, %v12729_v5  ;;  %vm12730_vm4 = vcmask 302080   ;;  %vm12745_vm5 = vmmov %vm12743_vm7 }
 0x4b2   : > { %v5220_v40 = vsel %vm5215_vm11, %v11561_v28, %v8324_v29  ;;  %v5221_v61 = vsel %vm5215_vm11, %v8324_v29, %v8325_v0  ;;  %v5222_v56 = vsel %vm5215_vm11, %v8325_v0, %v11654_v50  ;;  %6745 = vmatpush1.bf16.msra.mxu1 %v6744_v10  ;;  %v5274_v28 = vsel %vm12730_vm4, %v11583_v21, %v8329_v35  ;;  %vm12732_vm1 = vmmov %vm12730_vm4 }
 0x4b3   : > { %v6748_v13 = vpack.c.bf16 %v5220_v40, %v5166_v6  ;;  %v8333_v23 = vpop.permute.xlu1 %8332  ;;  %v6746_v63 = vpack.c.bf16 %v5221_v61, %v5167_v8  ;;  %v8340_v11 = vunpack.i.h.bf16 %v8338_v16  ;;  %v8339_v62 = vunpack.i.l.bf16 %v8338_v16  ;;  %vm12736_vm10 = vmmov %vm12732_vm1 }
 0x4b4   : > { %v8335_v54 = vunpack.i.h.bf16 %v8333_v23  ;;  %v8334_v51 = vunpack.i.l.bf16 %v8333_v23  ;;  %6788 = vmatpush1.bf16.msra.mxu0 %v6787_v49  ;;  %v6790_v50 = vpack.c.bf16 %v5222_v56, %v5168_v17  ;;  %vm12731_vm11 = vcmask 236544  }
 0x4b5   : > { %6789 = vmatprep.subr.bf16.mxu0 %v12688_v33  ;;  %v8348_v1 = vpop.permute.xlu0 %8347  ;;  %6747 = vmatprep.subr.bf16.mxu1 %v6746_v63  ;;  %v5275_v38 = vsel %vm12732_vm1, %v8329_v35, %v8330_v31  ;;  %vm12733_vm2 = vmmov %vm12731_vm11  ;;  %v5276_v44 = vsel %vm12736_vm10, %v8330_v31, %v12735_v26  ;;  %v5382_v22 = vsel %vm12738_vm6, %v8339_v62, %v8340_v11  ;;  %vm12746_vm4 = vcmask 138240  }
 0x4b6   : > { %v5328_v20 = vsel %vm12731_vm11, %v11593_v60, %v8334_v51  ;;  %v5329_v24 = vsel %vm12733_vm2, %v8334_v51, %v8335_v54  ;;  %vm12734_vm9 = vmmov %vm12733_vm2  ;;  %6749 = vmatpush1.bf16.msra.mxu1 %v6748_v13  ;;  %v5381_v60 = vsel %vm12737_vm15, %v11617_v57, %v8339_v62  ;;  %v8349_v34 = vunpack.i.l.bf16 %v8348_v1 }
 0x4b7   : > { %v5330_v12 = vsel %vm12734_vm9, %v8335_v54, %v11669_v3  ;;  %v6752_v14 = vpack.c.bf16 %v5328_v20, %v5274_v28  ;;  %v8343_v21 = vpop.permute.xlu1 %8342  ;;  %v6750_v43 = vpack.c.bf16 %v5329_v24, %v5275_v38  ;;  %v8350_v27 = vunpack.i.h.bf16 %v8348_v1  ;;  %vm12748_vm11 = vmmov %vm12746_vm4 }
 0x4b8   : > { %v8345_v4 = vunpack.i.h.bf16 %v8343_v21  ;;  %v8344_v37 = vunpack.i.l.bf16 %v8343_v21  ;;  %6791 = vmatpush1.bf16.msra.mxu0 %v6790_v50  ;;  %v6793_v3 = vpack.c.bf16 %v5330_v12, %v5276_v44  ;;  %v5383_v46 = vsel %vm12742_vm12, %v8340_v11, %v11671_v45 }
 0x4b9   : > { %6751 = vmatprep.subr.bf16.mxu1 %v6750_v43  ;;  %6792 = vmatprep.subr.bf16.mxu0 %v12688_v33  ;;  %v5488_v59 = vsel %vm5483_vm13, %v11649_v2, %v8349_v34  ;;  %v5489_v10 = vsel %vm5483_vm13, %v8349_v34, %v8350_v27  ;;  %v5585_v16 = vpop.permute.xlu0 %5584  ;;  %v5490_v45 = vsel %vm5483_vm13, %v8350_v27, %v11744_v41  ;;  %v12747_v6 = vmov 0.0   ;;  %vm12749_vm13 = vmmov %vm12746_vm4 }
 0x4ba   : > { %v5434_v19 = vsel %vm12739_vm0, %v11637_v58, %v8344_v37  ;;  %v5435_v47 = vsel %vm12740_vm3, %v8344_v37, %v8345_v4  ;;  %v5436_v52 = vsel %vm12741_vm14, %v8345_v4, %v11788_v18  ;;  %6753 = vmatpush1.bf16.msra.mxu1 %v6752_v14  ;;  %v5594_v41 = vsel %vm12748_vm11, %v11676_v36, %v5585_v16 }
 0x4bb   : > { %v6756_v25 = vpack.c.bf16 %v5434_v19, %v5381_v60  ;;  %v8353_v9 = vpop.permute.xlu1 %8352  ;;  %v6754_v57 = vpack.c.bf16 %v5435_v47, %v5382_v22  ;;  %v6796_v58 = vpack.c.bf16 %v5436_v52, %v5383_v46 }
 0x4bc   : > { %v8355_v30 = vunpack.i.h.bf16 %v8353_v9  ;;  %v8354_v39 = vunpack.i.l.bf16 %v8353_v9  ;;  %6794 = vmatpush1.bf16.msra.mxu0 %v6793_v3 }
 0x4bd   : > { %6755 = vmatprep.subr.bf16.mxu1 %v6754_v57  ;;  %6795 = vmatprep.subr.bf16.mxu0 %v12688_v33  ;;  %v5589_v7 = vpop.permute.xlu0 %5588 }
 0x4be   : > { %v5541_v18 = vsel %vm12743_vm7, %v11656_v55, %v8354_v39  ;;  %v5542_v15 = vsel %vm12744_vm8, %v8354_v39, %v8355_v30  ;;  %6757 = vmatpush1.bf16.msra.mxu1 %v6756_v25 }
 0x4bf   : > { %v6760_v53 = vpack.c.bf16 %v5541_v18, %v5488_v59  ;;  %v5536_v0 = vpop.permute.xlu1 %5535  ;;  %v6758_v29 = vpack.c.bf16 %v5542_v15, %v5489_v10 }
 0x4c0   : > { %v5543_v2 = vsel %vm12745_vm5, %v8355_v30, %v5536_v0  ;;  %6797 = vmatpush1.bf16.msra.mxu0 %v6796_v58 }
 0x4c1   : > { %v6799_v48 = vpack.c.bf16 %v5543_v2, %v5490_v45  ;;  %6759 = vmatprep.subr.bf16.mxu1 %v6758_v29  ;;  %6798 = vmatprep.subr.bf16.mxu0 %v12688_v33 }
 0x4c2   : > { %6761 = vmatpush1.bf16.msra.mxu1 %v6760_v53 }
 0x4c3   : > { %v5587_v55 = vpop.permute.xlu1 %5586 }
 0x4c4   : > { %6800 = vmatpush1.bf16.msra.mxu0 %v6799_v48  ;;  %v5595_v32 = vsel %vm12746_vm4, %v5585_v16, %v5587_v55  ;;  %v5596_v35 = vsel %vm12749_vm13, %v5587_v55, %v5589_v7 }
 0x4c5   : > { %6006 = vmatprep.subr.mxu1 %v5595_v32  ;;  %6077 = vmatprep.subr.mxu0 %v12747_v6 }
 0x4c6   : > { %6007 = vmatpush1.msra.mxu1 %v5594_v41 }
 0x4c7   : > { %6019 = vmatmul.mubr.f32.vlgmr.msra.gmra.mrb[8].mxu1 %v11442_v42 }
 0x4c8   : > { %6078 = vmatpush1.msra.mxu0 %v5596_v35 }
 0x4c9   : > { %6090 = vmatmul.mubr.f32.vlgmr.msra.gmra.mrb[6].mxu0 %v11442_v42 }
 0x4d4   : > { %v5806_v33 = vpop.permute.xlu1 %5805 }
 0x51d   : > { %v5878_v49 = vpop.f32.mrb[6].mxu1 }
 0x51e   : > { %v5879_v31 = vadd.f32 %v5878_v49, %v5806_v33  ;;  %v5880_v40 = vpop.f32.mrb[7].mxu1 }
 0x51f   : > { %v5881_v61 = vadd.f32 %v5880_v40, %v5806_v33 }
 0x520   : > { %v6095_v56 = vmax.f32 %v5879_v31, 0.0 }
 0x521   : > { %v6096_v36 = vmax.f32 %v5881_v61, 0.0 }
 0x522   : > { %6102 = vst [vmem:[%s251_s9] sm:$0xff] %v6095_v56 }
 0x523   : > { %6103 = vst [vmem:[%s251_s9 + $0x8] sm:$0xff] %v6096_v36 }
 0x566   : > { %v5949_v13 = vpop.f32.mrb[4].mxu0 }
 0x567   : > { %v5950_v23 = vadd.f32 %v5949_v13, %v5806_v33  ;;  %v5951_v8 = vpop.f32.mrb[5].mxu0 }
 0x568   : > { %v5952_v54 = vadd.f32 %v5951_v8, %v5806_v33 }
 0x569   : > { %v6097_v51 = vmax.f32 %v5950_v23, 0.0 }
 0x56a   : > { %v6098_v42 = vmax.f32 %v5952_v54, 0.0 }
 0x56b   : > { %6104 = vst [vmem:[%s251_s9 + $0x10] sm:$0xff] %v6097_v51 }
 0x56c   : > { %6105 = vst [vmem:[%s251_s9 + $0x18] sm:$0xff] %v6098_v42 }
 0x59a   : > { %v6020_v63 = vpop.f32.mrb[8].mxu1 }
 0x59b   : > { %v6021_v5 = vadd.f32 %v6020_v63, %v5806_v33  ;;  %v6022_v17 = vpop.f32.mrb[9].mxu1 }
 0x59c   : > { %v6091_v28 = vpop.f32.mrb[6].mxu0  ;;  %v6023_v11 = vadd.f32 %v6022_v17, %v5806_v33 }
 0x59d   : > { %v6092_v62 = vadd.f32 %v6091_v28, %v5806_v33  ;;  %v6093_v50 = vpop.f32.mrb[7].mxu0  ;;  %v6099_v20 = vmax.f32 %v6021_v5, 0.0 }
 0x59e   : > { %v6100_v1 = vmax.f32 %v6023_v11, 0.0 }
 0x59f   : > { %v6101_v38 = vmax.f32 %v6092_v62, 0.0  ;;  %6106 = vst [vmem:[%s251_s9 + $0x20] sm:$0xff] %v6099_v20 }
 0x5a0   : > { %6107 = vst [vmem:[%s251_s9 + $0x28] sm:$0xff] %v6100_v1 }
 0x5a1   : > { %6108 = vst [vmem:[%s251_s9 + $0x30] sm:$0xff] %v6101_v38 }
 0x5a2 PF: > { %s16_s21 = sadd.s32 1, %s8367_s21  }
 0x5a3   : > { %p13_p4 = scmp.ge.s32.totalorder %s16_s21, 4  }
 0x5a5   :  { %15 = sbr.rel (!%p13_p4) target bundleno = 1 (0x1), region = 74 }

</bundles_post_ra>
